<compile_context>
chip_gen: v7x
topology: tpu7x:2x2x1
jax: 0.10.0
libtpu: 0.0.40
codegen_flags: <defaults>
</compile_context>

<pallas_src>
import functools

import numpy as np
import jax
import jax.numpy as jnp
from jax.experimental import pallas as pl
from jax.experimental.pallas import tpu as pltpu


def _round_up(x, m):
    return ((x + m - 1) // m) * m


# ----------------------------------------------------------------------------
# Pallas kernel: sinusoidal embedding + proj_d / proj_a + K-reduction + add
# ----------------------------------------------------------------------------
def _geo_embed_kernel(da_ref, div_ref, wd_s_ref, wd_c_ref, wa_s_ref, wa_c_ref,
                      b_ref, emb_ref, *, angle_k, reduction_a, compute_dtype):
    """One row-tile.

    da_ref  : (tm, K+1) f32  -- col 0 = distance index, cols 1..K = angle indices
    div_ref : (1, H//2) f32  -- sinusoidal frequencies
    w*_ref  : (H//2, H)      -- projection weights split into sin / cos halves
    b_ref   : (1, H)   f32   -- b_d + b_a folded
    emb_ref : (tm, H)  f32
    """
    div = div_ref[...]

    # ---- distance branch ----
    # Range reduction (index * freq) stays in f32; only matmul operands are
    # cast to compute_dtype (bf16 by default).
    om = da_ref[:, 0:1] * div                                   # (tm, H//2)
    acc = jnp.dot(jnp.sin(om).astype(compute_dtype), wd_s_ref[...],
                  preferred_element_type=jnp.float32)
    acc = acc + jnp.dot(jnp.cos(om).astype(compute_dtype), wd_c_ref[...],
                        preferred_element_type=jnp.float32)

    # ---- angular branch ----
    if reduction_a == 'mean':
        # Linear reduction commutes with the projection: average the sin/cos
        # features over K first, then a single pair of matmuls.
        sin_sum = jnp.zeros_like(om)
        cos_sum = jnp.zeros_like(om)
        for j in range(angle_k):
            om_j = da_ref[:, j + 1:j + 2] * div
            sin_sum = sin_sum + jnp.sin(om_j)
            cos_sum = cos_sum + jnp.cos(om_j)
        inv_k = 1.0 / angle_k
        acc = acc + jnp.dot((sin_sum * inv_k).astype(compute_dtype), wa_s_ref[...],
                            preferred_element_type=jnp.float32)
        acc = acc + jnp.dot((cos_sum * inv_k).astype(compute_dtype), wa_c_ref[...],
                            preferred_element_type=jnp.float32)
    else:  # 'max': nonlinear -> reduce after the projection, per-j accumulate
        a_red = None
        for j in range(angle_k):
            om_j = da_ref[:, j + 1:j + 2] * div
            pj = jnp.dot(jnp.sin(om_j).astype(compute_dtype), wa_s_ref[...],
                         preferred_element_type=jnp.float32)
            pj = pj + jnp.dot(jnp.cos(om_j).astype(compute_dtype), wa_c_ref[...],
                              preferred_element_type=jnp.float32)
            a_red = pj if a_red is None else jnp.maximum(a_red, pj)
        acc = acc + a_red

    # Both Linear biases folded into one constant, added once (exact: the bias
    # is constant over the K-reduction).
    emb_ref[...] = acc + b_ref[...]


# ----------------------------------------------------------------------------
# Plain-JAX glue: get_embedding_indices (pairwise dist, kNN, angles, masking)
# ----------------------------------------------------------------------------
# TODO(synk): top-k kNN selection and the neighbor gather have no clean Pallas
# equivalent on TPU; they stay in plain JAX (index bookkeeping, not the hot path).
def _get_embedding_indices(points, no_overlapped_idx, *, sigma_d, sigma_a, angle_k):
    B, N, _ = points.shape
    factor_a = 180.0 / (sigma_a * np.pi)

    xy = jnp.einsum('bnd,bmd->bnm', points, points)
    sq = jnp.sum(points ** 2, axis=-1)
    sq_dist = jnp.clip(sq[:, :, None] - 2.0 * xy + sq[:, None, :], 0.0, None)
    dist_map = jnp.sqrt(sq_dist)                          # (B, N, N)
    d_indices = dist_map / sigma_d

    # k+1 smallest distances (self included), drop self
    _, knn_idx = jax.lax.top_k(-dist_map, angle_k + 1)    # (B, N, K+1)
    knn_idx = knn_idx[:, :, 1:]                           # (B, N, K)
    knn_points = jax.vmap(lambda p, i: p[i])(points, knn_idx)   # (B, N, K, 3)

    ref_vec = knn_points - points[:, :, None, :]          # (B, N, K, 3)
    anc_vec = points[:, None, :, :] - points[:, :, None, :]     # (B, N, N, 3)
    ref_b = jnp.broadcast_to(ref_vec[:, :, None, :, :], (B, N, N, angle_k, 3))
    anc_b = jnp.broadcast_to(anc_vec[:, :, :, None, :], (B, N, N, angle_k, 3))
    cross = jnp.cross(ref_b, anc_b, axis=-1)
    sin_v = jnp.linalg.norm(cross, axis=-1)
    cos_v = jnp.sum(ref_b * anc_b, axis=-1)
    angles = jnp.arctan2(sin_v, cos_v)
    a_indices = angles * factor_a                         # (B, N, N, K)

    # zero the "no overlap" columns (dim 2), same semantics as the in-place set
    if no_overlapped_idx.shape[0] > 0:
        col_mask = jnp.ones((N,), jnp.float32).at[no_overlapped_idx].set(0.0)
        d_indices = d_indices * col_mask[None, None, :]
        a_indices = a_indices * col_mask[None, None, :, None]

    return d_indices, a_indices


# ----------------------------------------------------------------------------
# Wrapper: parameter plumbing + pallas_call
# ----------------------------------------------------------------------------
def geometric_structure_embedding(points, overlapped_points_c_idx,
                                  no_overlapped_points_c_idx, params, *,
                                  sigma_d, sigma_a, angle_k,
                                  reduction_a='max', tile_m=1024,
                                  compute_dtype=jnp.bfloat16):
    """Forward pass of GeometricStructureEmbedding.

    compute_dtype: dtype of the matmul operands (bf16 by default; a documented
    precision tradeoff vs the f32 PyTorch reference -- pass jnp.float32 for
    bit-closer results). Accumulation is always f32.
    """
    del overlapped_points_c_idx  # not used by the reference forward pass
    if reduction_a not in ('max', 'mean'):
        raise ValueError(f'Unsupported reduction mode: {reduction_a}.')
    if angle_k < 1:
        raise ValueError('angle_k must be >= 1.')

    B, N, _ = points.shape
    H = params['w_d'].shape[0]
    K = angle_k

    d_indices, a_indices = _get_embedding_indices(
        points, no_overlapped_points_c_idx,
        sigma_d=sigma_d, sigma_a=sigma_a, angle_k=angle_k)

    # init_dist_angle is a trivial elementwise product with a lane-sparse
    # (.., K) output; leaving it to XLA avoids masked partial stores in-kernel.
    init_dist_angle = d_indices[..., None] * a_indices

    # Sinusoidal frequencies (SinusoidalPositionalEmbedding buffer).
    div_term = jnp.exp(jnp.arange(0, H, 2, dtype=jnp.float32)
                       * (-np.log(10000.0) / H)).reshape(1, H // 2)

    # Interleaved [sin, cos] layout folded into the weights, split into the sin
    # half and the cos half so no feature concatenation happens in-kernel:
    #   emb_interleaved @ W.T == sin @ W[:, 0::2].T + cos @ W[:, 1::2].T
    wd_s = params['w_d'][:, 0::2].T.astype(compute_dtype)   # (H//2, H)
    wd_c = params['w_d'][:, 1::2].T.astype(compute_dtype)
    wa_s = params['w_a'][:, 0::2].T.astype(compute_dtype)
    wa_c = params['w_a'][:, 1::2].T.astype(compute_dtype)
    bias = (params['b_d'] + params['b_a']).reshape(1, H).astype(jnp.float32)

    M = B * N * N
    # Tile choice: <= 1024 rows, multiple of 8 sublanes, even grid step count
    # >= 8 when M allows (balances the two v7x TensorCores, amortizes the
    # per-step pipeline overhead).
    tm_cap = max(8, min(_round_up(tile_m, 8), 1024))
    tm = max(8, min(tm_cap, _round_up(pl.cdiv(M, 8), 8)))
    n_steps = pl.cdiv(M, tm)
    if n_steps > 1 and n_steps % 2 == 1:
        n_steps += 1                      # even step count for megacore balance
    M_pad = n_steps * tm

    # Pack d and a into one lane-contiguous (M, K+1) input -> one DMA per step.
    # TODO(synk): the K+1 (~4) index lanes pad to 128 lanes in VMEM; a denser
    # packing would save ~1 MB of dead double-buffer per step (low priority).
    da = jnp.concatenate([d_indices.reshape(M, 1),
                          a_indices.reshape(M, K)], axis=-1).astype(jnp.float32)
    if M_pad != M:
        da = jnp.pad(da, ((0, M_pad - M), (0, 0)))   # pad the ragged tail only

    kernel = functools.partial(_geo_embed_kernel, angle_k=K,
                               reduction_a=reduction_a,
                               compute_dtype=compute_dtype)

    # Explicit VMEM budget (v5e scoped default is only 16 MiB), capped well
    # under the smallest physical VMEM (v7x: 64 MiB).
    w_bytes = 4 * (H // 2) * H * jnp.dtype(compute_dtype).itemsize
    vmem_bytes = (2 * tm * 128 * 4             # da double-buffer (lane-padded)
                  + 2 * tm * H * 4             # output double-buffer
                  + 2 * w_bytes                # weights + their double-buffer
                  + 4 * tm * max(H, 128) * 4   # live in-kernel intermediates
                  + (4 << 20))                 # fixed headroom
    vmem_limit = int(min(max(vmem_bytes, 32 << 20), 48 << 20))

    n_ang_mm = K if reduction_a == 'max' else 1
    cost = pl.CostEstimate(
        flops=2 * M * H * H * (1 + n_ang_mm),
        transcendentals=(K + 1) * M * H,
        bytes_accessed=M * (K + 1) * 4 + M * H * 4 + 2 * w_bytes,
    )

    # TODO(synk): for deployments with H < 128, a lane-dense output packing
    # (grouping 128 // H rows along the lane dim) would avoid masked stores;
    # skipped for robustness (production H is typically >= 128).
    emb_flat = pl.pallas_call(
        kernel,
        out_shape=jax.ShapeDtypeStruct((M_pad, H), jnp.float32),
        grid_spec=pltpu.PrefetchScalarGridSpec(
            num_scalar_prefetch=0,
            grid=(n_steps,),
            in_specs=[
                pl.BlockSpec((tm, K + 1), lambda i: (i, 0)),     # packed d|a
                pl.BlockSpec((1, H // 2), lambda i: (0, 0)),     # div_term
                pl.BlockSpec((H // 2, H), lambda i: (0, 0)),     # w_d sin half
                pl.BlockSpec((H // 2, H), lambda i: (0, 0)),     # w_d cos half
                pl.BlockSpec((H // 2, H), lambda i: (0, 0)),     # w_a sin half
                pl.BlockSpec((H // 2, H), lambda i: (0, 0)),     # w_a cos half
                pl.BlockSpec((1, H), lambda i: (0, 0)),          # b_d + b_a
            ],
            out_specs=pl.BlockSpec((tm, H), lambda i: (i, 0)),
        ),
        compiler_params=pltpu.CompilerParams(
            dimension_semantics=("parallel",),
            vmem_limit_bytes=vmem_limit),
        cost_estimate=cost,
    )(da, div_term, wd_s, wd_c, wa_s, wa_c, bias)

    embeddings = emb_flat[:M].reshape(B, N, N, H)
    return embeddings, init_dist_angle


# ----------------------------------------------------------------------------
# Pure-JAX reference (mirrors the PyTorch module) for correctness checking
# ----------------------------------------------------------------------------
def _reference(points, no_overlapped_idx, params, *, sigma_d, sigma_a,
               angle_k, reduction_a):
    H = params['w_d'].shape[0]
    d_indices, a_indices = _get_embedding_indices(
        points, no_overlapped_idx,
        sigma_d=sigma_d, sigma_a=sigma_a, angle_k=angle_k)
    div_term = jnp.exp(jnp.arange(0, H, 2, dtype=jnp.float32)
                       * (-np.log(10000.0) / H))

    def sin_emb(x):
        omega = x[..., None] * div_term                   # (..., H//2)
        emb = jnp.stack([jnp.sin(omega), jnp.cos(omega)], axis=-1)
        return emb.reshape(*x.shape, H)                   # interleaved sin/cos

    d_emb = sin_emb(d_indices) @ params['w_d'].T + params['b_d']
    a_emb = sin_emb(a_indices) @ params['w_a'].T + params['b_a']
    a_emb = a_emb.max(axis=3) if reduction_a == 'max' else a_emb.mean(axis=3)
    return d_emb + a_emb, d_indices[..., None] * a_indices


if __name__ == "__main__":
    key = jax.random.PRNGKey(0)
    B, N, H, K = 2, 16, 32, 3
    sigma_d, sigma_a = 0.2, 15.0
    reduction_a = 'max'

    k_pts, k_wd, k_bd, k_wa, k_ba = jax.random.split(key, 5)
    points = jax.random.normal(k_pts, (B, N, 3), dtype=jnp.float32)

    bound = 1.0 / np.sqrt(H)  # nn.Linear default init range
    params = {
        'w_d': jax.random.uniform(k_wd, (H, H), jnp.float32, -bound, bound),
        'b_d': jax.random.uniform(k_bd, (H,), jnp.float32, -bound, bound),
        'w_a': jax.random.uniform(k_wa, (H, H), jnp.float32, -bound, bound),
        'b_a': jax.random.uniform(k_ba, (H,), jnp.float32, -bound, bound),
    }

    overlapped_points_c_idx = jnp.array([0, 1, 2, 4, 5], dtype=jnp.int32)  # unused in fwd
    no_overlapped_points_c_idx = jnp.array([3, 7], dtype=jnp.int32)

    embeddings, init_dist_angle = geometric_structure_embedding(
        points, overlapped_points_c_idx, no_overlapped_points_c_idx, params,
        sigma_d=sigma_d, sigma_a=sigma_a, angle_k=K, reduction_a=reduction_a)
    jax.block_until_ready((embeddings, init_dist_angle))

    # correctness check against the pure-JAX reference
    ref_emb, ref_ida = _reference(
        points, no_overlapped_points_c_idx, params,
        sigma_d=sigma_d, sigma_a=sigma_a, angle_k=K, reduction_a=reduction_a)
    assert embeddings.shape == (B, N, N, H)
    assert init_dist_angle.shape == (B, N, N, K)
    assert np.allclose(np.asarray(embeddings), np.asarray(ref_emb),
                       atol=5e-2, rtol=5e-2)
    assert np.allclose(np.asarray(init_dist_angle), np.asarray(ref_ida),
                       atol=1e-4, rtol=1e-4)

    # also exercise the 'mean' path (K-reduction folded before the matmul)
    emb_mean, _ = geometric_structure_embedding(
        points, overlapped_points_c_idx, no_overlapped_points_c_idx, params,
        sigma_d=sigma_d, sigma_a=sigma_a, angle_k=K, reduction_a='mean')
    ref_mean, _ = _reference(
        points, no_overlapped_points_c_idx, params,
        sigma_d=sigma_d, sigma_a=sigma_a, angle_k=K, reduction_a='mean')
    jax.block_until_ready(emb_mean)
    assert np.allclose(np.asarray(emb_mean), np.asarray(ref_mean),
                       atol=5e-2, rtol=5e-2)

    print("KERNEL_OK")
</pallas_src>

<mosaic_0001>
module attributes {stable_mosaic.version = 11 : i64} {
  func.func @_geo_embed_kernel(%arg0: i32, %arg1: memref<64x4xf32, #tpu.memory_space<vmem>>, %arg2: memref<1x16xf32, #tpu.memory_space<vmem>>, %arg3: memref<16x32xbf16, #tpu.memory_space<vmem>>, %arg4: memref<16x32xbf16, #tpu.memory_space<vmem>>, %arg5: memref<16x32xbf16, #tpu.memory_space<vmem>>, %arg6: memref<16x32xbf16, #tpu.memory_space<vmem>>, %arg7: memref<1x32xf32, #tpu.memory_space<vmem>>, %arg8: memref<64x32xf32, #tpu.memory_space<vmem>>) attributes {dimension_semantics = [#tpu.dimension_semantics<parallel>], iteration_bounds = array<i64: 8>, scalar_prefetch = 0 : i64, scratch_operands = 0 : i64, tpu.core_type = #tpu.core_type<tc>, window_params = [{transform_indices = @transform_0, window_bounds = array<i64: 64, 4>}, {pipeline_mode = #tpu.pipeline_mode<synchronous>, transform_indices = @transform_1, window_bounds = array<i64: 1, 16>}, {pipeline_mode = #tpu.pipeline_mode<synchronous>, transform_indices = @transform_2, window_bounds = array<i64: 16, 32>}, {pipeline_mode = #tpu.pipeline_mode<synchronous>, transform_indices = @transform_3, window_bounds = array<i64: 16, 32>}, {pipeline_mode = #tpu.pipeline_mode<synchronous>, transform_indices = @transform_4, window_bounds = array<i64: 16, 32>}, {pipeline_mode = #tpu.pipeline_mode<synchronous>, transform_indices = @transform_5, window_bounds = array<i64: 16, 32>}, {pipeline_mode = #tpu.pipeline_mode<synchronous>, transform_indices = @transform_6, window_bounds = array<i64: 1, 32>}, {transform_indices = @transform_7, window_bounds = array<i64: 64, 32>}]} {
    %c0 = arith.constant 0 : index
    %c0_0 = arith.constant 0 : index
    %0 = vector.load %arg2[%c0, %c0_0] : memref<1x16xf32, #tpu.memory_space<vmem>>, vector<1x16xf32>
    %c0_1 = arith.constant 0 : index
    %c0_2 = arith.constant 0 : index
    %1 = vector.load %arg1[%c0_1, %c0_2] : memref<64x4xf32, #tpu.memory_space<vmem>>, vector<64x1xf32>
    %2 = vector.broadcast %1 : vector<64x1xf32> to vector<64x16xf32>
    %3 = vector.broadcast %0 : vector<1x16xf32> to vector<64x16xf32>
    %4 = arith.mulf %2, %3 : vector<64x16xf32>
    %5 = math.sin %4 : vector<64x16xf32>
    %6 = arith.truncf %5 : vector<64x16xf32> to vector<64x16xbf16>
    %c0_3 = arith.constant 0 : index
    %c0_4 = arith.constant 0 : index
    %7 = vector.load %arg3[%c0_3, %c0_4] : memref<16x32xbf16, #tpu.memory_space<vmem>>, vector<16x32xbf16>
    %cst = arith.constant dense<0.000000e+00> : vector<64x32xf32>
    %8 = tpu.matmul %6, %7, %cst {dimension_numbers = #tpu.dot_dimension_numbers<[1], [0], [0], [1], [0, 0, 1, 1], [], []>} : vector<64x16xbf16>, vector<16x32xbf16>, vector<64x32xf32> -> vector<64x32xf32>
    %9 = math.cos %4 : vector<64x16xf32>
    %10 = arith.truncf %9 : vector<64x16xf32> to vector<64x16xbf16>
    %c0_5 = arith.constant 0 : index
    %c0_6 = arith.constant 0 : index
    %11 = vector.load %arg4[%c0_5, %c0_6] : memref<16x32xbf16, #tpu.memory_space<vmem>>, vector<16x32xbf16>
    %cst_7 = arith.constant dense<0.000000e+00> : vector<64x32xf32>
    %12 = tpu.matmul %10, %11, %cst_7 {dimension_numbers = #tpu.dot_dimension_numbers<[1], [0], [0], [1], [0, 0, 1, 1], [], []>} : vector<64x16xbf16>, vector<16x32xbf16>, vector<64x32xf32> -> vector<64x32xf32>
    %13 = arith.addf %8, %12 : vector<64x32xf32>
    %c0_8 = arith.constant 0 : index
    %c1 = arith.constant 1 : index
    %14 = vector.load %arg1[%c0_8, %c1] : memref<64x4xf32, #tpu.memory_space<vmem>>, vector<64x1xf32>
    %15 = vector.broadcast %14 : vector<64x1xf32> to vector<64x16xf32>
    %16 = vector.broadcast %0 : vector<1x16xf32> to vector<64x16xf32>
    %17 = arith.mulf %15, %16 : vector<64x16xf32>
    %18 = math.sin %17 : vector<64x16xf32>
    %19 = arith.truncf %18 : vector<64x16xf32> to vector<64x16xbf16>
    %c0_9 = arith.constant 0 : index
    %c0_10 = arith.constant 0 : index
    %20 = vector.load %arg5[%c0_9, %c0_10] : memref<16x32xbf16, #tpu.memory_space<vmem>>, vector<16x32xbf16>
    %cst_11 = arith.constant dense<0.000000e+00> : vector<64x32xf32>
    %21 = tpu.matmul %19, %20, %cst_11 {dimension_numbers = #tpu.dot_dimension_numbers<[1], [0], [0], [1], [0, 0, 1, 1], [], []>} : vector<64x16xbf16>, vector<16x32xbf16>, vector<64x32xf32> -> vector<64x32xf32>
    %22 = math.cos %17 : vector<64x16xf32>
    %23 = arith.truncf %22 : vector<64x16xf32> to vector<64x16xbf16>
    %c0_12 = arith.constant 0 : index
    %c0_13 = arith.constant 0 : index
    %24 = vector.load %arg6[%c0_12, %c0_13] : memref<16x32xbf16, #tpu.memory_space<vmem>>, vector<16x32xbf16>
    %cst_14 = arith.constant dense<0.000000e+00> : vector<64x32xf32>
    %25 = tpu.matmul %23, %24, %cst_14 {dimension_numbers = #tpu.dot_dimension_numbers<[1], [0], [0], [1], [0, 0, 1, 1], [], []>} : vector<64x16xbf16>, vector<16x32xbf16>, vector<64x32xf32> -> vector<64x32xf32>
    %26 = arith.addf %21, %25 : vector<64x32xf32>
    %c0_15 = arith.constant 0 : index
    %c2 = arith.constant 2 : index
    %27 = vector.load %arg1[%c0_15, %c2] : memref<64x4xf32, #tpu.memory_space<vmem>>, vector<64x1xf32>
    %28 = vector.broadcast %27 : vector<64x1xf32> to vector<64x16xf32>
    %29 = vector.broadcast %0 : vector<1x16xf32> to vector<64x16xf32>
    %30 = arith.mulf %28, %29 : vector<64x16xf32>
    %31 = math.sin %30 : vector<64x16xf32>
    %32 = arith.truncf %31 : vector<64x16xf32> to vector<64x16xbf16>
    %c0_16 = arith.constant 0 : index
    %c0_17 = arith.constant 0 : index
    %33 = vector.load %arg5[%c0_16, %c0_17] : memref<16x32xbf16, #tpu.memory_space<vmem>>, vector<16x32xbf16>
    %cst_18 = arith.constant dense<0.000000e+00> : vector<64x32xf32>
    %34 = tpu.matmul %32, %33, %cst_18 {dimension_numbers = #tpu.dot_dimension_numbers<[1], [0], [0], [1], [0, 0, 1, 1], [], []>} : vector<64x16xbf16>, vector<16x32xbf16>, vector<64x32xf32> -> vector<64x32xf32>
    %35 = math.cos %30 : vector<64x16xf32>
    %36 = arith.truncf %35 : vector<64x16xf32> to vector<64x16xbf16>
    %c0_19 = arith.constant 0 : index
    %c0_20 = arith.constant 0 : index
    %37 = vector.load %arg6[%c0_19, %c0_20] : memref<16x32xbf16, #tpu.memory_space<vmem>>, vector<16x32xbf16>
    %cst_21 = arith.constant dense<0.000000e+00> : vector<64x32xf32>
    %38 = tpu.matmul %36, %37, %cst_21 {dimension_numbers = #tpu.dot_dimension_numbers<[1], [0], [0], [1], [0, 0, 1, 1], [], []>} : vector<64x16xbf16>, vector<16x32xbf16>, vector<64x32xf32> -> vector<64x32xf32>
    %39 = arith.addf %34, %38 : vector<64x32xf32>
    %40 = arith.maximumf %26, %39 : vector<64x32xf32>
    %c0_22 = arith.constant 0 : index
    %c3 = arith.constant 3 : index
    %41 = vector.load %arg1[%c0_22, %c3] : memref<64x4xf32, #tpu.memory_space<vmem>>, vector<64x1xf32>
    %42 = vector.broadcast %41 : vector<64x1xf32> to vector<64x16xf32>
    %43 = vector.broadcast %0 : vector<1x16xf32> to vector<64x16xf32>
    %44 = arith.mulf %42, %43 : vector<64x16xf32>
    %45 = math.sin %44 : vector<64x16xf32>
    %46 = arith.truncf %45 : vector<64x16xf32> to vector<64x16xbf16>
    %c0_23 = arith.constant 0 : index
    %c0_24 = arith.constant 0 : index
    %47 = vector.load %arg5[%c0_23, %c0_24] : memref<16x32xbf16, #tpu.memory_space<vmem>>, vector<16x32xbf16>
    %cst_25 = arith.constant dense<0.000000e+00> : vector<64x32xf32>
    %48 = tpu.matmul %46, %47, %cst_25 {dimension_numbers = #tpu.dot_dimension_numbers<[1], [0], [0], [1], [0, 0, 1, 1], [], []>} : vector<64x16xbf16>, vector<16x32xbf16>, vector<64x32xf32> -> vector<64x32xf32>
    %49 = math.cos %44 : vector<64x16xf32>
    %50 = arith.truncf %49 : vector<64x16xf32> to vector<64x16xbf16>
    %c0_26 = arith.constant 0 : index
    %c0_27 = arith.constant 0 : index
    %51 = vector.load %arg6[%c0_26, %c0_27] : memref<16x32xbf16, #tpu.memory_space<vmem>>, vector<16x32xbf16>
    %cst_28 = arith.constant dense<0.000000e+00> : vector<64x32xf32>
    %52 = tpu.matmul %50, %51, %cst_28 {dimension_numbers = #tpu.dot_dimension_numbers<[1], [0], [0], [1], [0, 0, 1, 1], [], []>} : vector<64x16xbf16>, vector<16x32xbf16>, vector<64x32xf32> -> vector<64x32xf32>
    %53 = arith.addf %48, %52 : vector<64x32xf32>
    %54 = arith.maximumf %40, %53 : vector<64x32xf32>
    %55 = arith.addf %13, %54 : vector<64x32xf32>
    %c0_29 = arith.constant 0 : index
    %c0_30 = arith.constant 0 : index
    %56 = vector.load %arg7[%c0_29, %c0_30] : memref<1x32xf32, #tpu.memory_space<vmem>>, vector<1x32xf32>
    %57 = vector.broadcast %56 : vector<1x32xf32> to vector<64x32xf32>
    %58 = arith.addf %55, %57 : vector<64x32xf32>
    %c0_31 = arith.constant 0 : index
    %c0_32 = arith.constant 0 : index
    %59 = vector.load %arg8[%c0_31, %c0_32] : memref<64x32xf32, #tpu.memory_space<vmem>>, vector<64x32xf32>
    tpu.vector_store %arg8[%c0_31, %c0_32], %58 {strides = array<i32>} : memref<64x32xf32, #tpu.memory_space<vmem>>, vector<64x32xf32>,
    return
  }
  func.func @transform_0(%arg0: i32) -> (i32, i32) {
    %c0_i32 = arith.constant 0 : i32
    %c0_i32_0 = arith.constant 0 : i32
    return %arg0, %c0_i32 : i32, i32
  }
  func.func @transform_1(%arg0: i32) -> (i32, i32) {
    %c0_i32 = arith.constant 0 : i32
    %c0_i32_0 = arith.constant 0 : i32
    %c0_i32_1 = arith.constant 0 : i32
    return %c0_i32, %c0_i32_0 : i32, i32
  }
  func.func @transform_2(%arg0: i32) -> (i32, i32) {
    %c0_i32 = arith.constant 0 : i32
    %c0_i32_0 = arith.constant 0 : i32
    %c0_i32_1 = arith.constant 0 : i32
    return %c0_i32, %c0_i32_0 : i32, i32
  }
  func.func @transform_3(%arg0: i32) -> (i32, i32) {
    %c0_i32 = arith.constant 0 : i32
    %c0_i32_0 = arith.constant 0 : i32
    %c0_i32_1 = arith.constant 0 : i32
    return %c0_i32, %c0_i32_0 : i32, i32
  }
  func.func @transform_4(%arg0: i32) -> (i32, i32) {
    %c0_i32 = arith.constant 0 : i32
    %c0_i32_0 = arith.constant 0 : i32
    %c0_i32_1 = arith.constant 0 : i32
    return %c0_i32, %c0_i32_0 : i32, i32
  }
  func.func @transform_5(%arg0: i32) -> (i32, i32) {
    %c0_i32 = arith.constant 0 : i32
    %c0_i32_0 = arith.constant 0 : i32
    %c0_i32_1 = arith.constant 0 : i32
    return %c0_i32, %c0_i32_0 : i32, i32
  }
  func.func @transform_6(%arg0: i32) -> (i32, i32) {
    %c0_i32 = arith.constant 0 : i32
    %c0_i32_0 = arith.constant 0 : i32
    %c0_i32_1 = arith.constant 0 : i32
    return %c0_i32, %c0_i32_0 : i32, i32
  }
  func.func @transform_7(%arg0: i32) -> (i32, i32) {
    %c0_i32 = arith.constant 0 : i32
    %c0_i32_0 = arith.constant 0 : i32
    return %arg0, %c0_i32 : i32, i32
  }
}

</mosaic_0001>

<bundles_post_ra>
// kernel: tpu_custom_call.1
= control target key start
LH: loop header
LB: loop body
LE: loop exit
PB: predicated region body
PF: predicated region fallthrough
CT: control target
= control target key end

     0   :  { %s8686_s24 = smov 0   ;;  %s12656_s0 = inlined_call_operand.vmem [shape: f32[512,4], index: 0, kind: input, shape index: {}]   ;;  %s12657_s1 = inlined_call_operand.vmem [shape: f32[1,16], index: 1, kind: input, shape index: {}]   ;;  %s12658_s2 = inlined_call_operand.vmem [shape: bf16[16,32], index: 2, kind: input, shape index: {}]   ;;  %s12659_s3 = inlined_call_operand.vmem [shape: bf16[16,32], index: 3, kind: input, shape index: {}]   ;;  %s12660_s4 = inlined_call_operand.vmem [shape: bf16[16,32], index: 4, kind: input, shape index: {}]   ;;  %s12661_s5 = inlined_call_operand.vmem [shape: bf16[16,32], index: 5, kind: input, shape index: {}]   ;;  %s12662_s6 = inlined_call_operand.vmem [shape: f32[1,32], index: 6, kind: input, shape index: {}]   ;;  %s12663_s7 = inlined_call_operand.vmem [shape: f32[512,32], index: 7, kind: output, shape index: {}]  }
   0x1 LB: > { %s7875_s25 = sadd.s32 4294967295, %s8634_s24   ;;  %p7879_p0 = scmp.ge.s32.totalorder %s8634_s24, 1  ;;  %s8634_s24 = sphi %s8686_s24, %s17_s24  }
   0x2   : > { %p238_p1 = scmp.lt.s32.totalorder %s8634_s24, 9 }
   0x4   : > { %p239_p2 = pnand %p7879_p0, %p238_p1 }
   0x6   : > { %242 = sbr.rel (%p239_p2) target bundleno = 1260 (0x4ec), region = 48 }
   0xd   : > { %s7880_s26 = sshll.u32 %s7875_s25, 3  ;;  %v8636_v0 = vmov 0   ;;  %v8637_v6 = vmov 1   ;;  %v8638_v10 = vmov 2   ;;  %v8639_v11 = vmov 3  }
   0xe   : > { %8479 = vset.pattern.permute.xlu1 %v8636_v0  ;;  %8478 = vset.pattern.permute.xlu0 %v8636_v0  ;;  %p271_p3 = scmp.lt.s32.totalorder %s7880_s26, 63  ;;  %v8705_v12 = vld [vmem:[%s12657_s1] ss:$0 sm:$0xff]  ;;  %v12680_v40 = vmov 683565275  }
   0xf   : > { %v12669_v42 = vmov 2475754826   ;;  %v12671_v47 = vmov 2131351028   ;;  %v12678_v50 = vmov 2102212464  }
  0x10   : > { %s13205_s26 = smov (!%p271_p3, %s7880_s26), 63  ;;  %v12676_v53 = vmov 920167782   ;;  %v12674_v56 = vmov 1326507024  }
  0x11   : > { %s7881_s27 = sshll.u32 %s13205_s26, 3 }
  0x12   : > { %s274_s30 = scalar_lea.vmem %s12656_s0, %s7881_s27  ;;  %s12635_s14 = scalar_lea.vmem %s12663_s7, %s7881_s27 }
  0x13   : > { %v286_v1 = vld [vmem:[%s274_s30 + $0x10] sm:$0xff]  ;;  %v284_v2 = vld [vmem:[%s274_s30] sm:$0xff]  ;;  %v287_v3 = vld [vmem:[%s274_s30 + $0x18] sm:$0xff] }
  0x14   : > { %304 = vperm.xlu1 %8479, %v286_v1   ;;  %294 = vperm.xlu0 %8478, %v284_v2   ;;  %v285_v4 = vld [vmem:[%s274_s30 + $0x8] sm:$0xff]  ;;  %v288_v7 = vld [vmem:[%s274_s30 + $0x20] sm:$0xff]  ;;  %v290_v8 = vld [vmem:[%s274_s30 + $0x30] sm:$0xff] }
  0x15   : > { %v289_v5 = vld [vmem:[%s274_s30 + $0x28] sm:$0xff]  ;;  %v291_v9 = vld [vmem:[%s274_s30 + $0x38] sm:$0xff] }
  0x18   : > { %309 = vperm.xlu1 %8479, %v287_v3   ;;  %299 = vperm.xlu0 %8478, %v285_v4  }
  0x1c   : > { %8480 = vset.pattern.permute.xlu1 %v8637_v6  ;;  %319 = vperm.xlu0 %8478, %v289_v5  }
  0x1d   : > { %2186 = vperm.xlu1 %8480, %v285_v4  }
  0x20   : > { %8482 = vset.pattern.permute.xlu0 %v8637_v6 }
  0x21   : > { %2190 = vperm.xlu1 %8480, %v286_v1   ;;  %2182 = vperm.xlu0 %8482, %v284_v2  }
  0x25   : > { %8481 = vset.pattern.permute.xlu1 %v8636_v0  ;;  %2194 = vperm.xlu0 %8482, %v287_v3  }
  0x26   : > { %314 = vperm.xlu1 %8481, %v288_v7  }
  0x29   : > { %2198 = vperm.xlu0 %8482, %v288_v7  }
  0x2a   : > { %324 = vperm.xlu1 %8481, %v290_v8  }
  0x2d   : > { %2210 = vperm.xlu0 %8482, %v291_v9  }
  0x2e   : > { %329 = vperm.xlu1 %8481, %v291_v9  }
  0x31   : > { %8485 = vset.pattern.permute.xlu0 %v8638_v10 }
  0x32   : > { %8483 = vset.pattern.permute.xlu1 %v8637_v6  ;;  %4060 = vperm.xlu0 %8485, %v285_v4  }
  0x33   : > { %2202 = vperm.xlu1 %8483, %v289_v5  }
  0x36   : > { %4076 = vperm.xlu0 %8485, %v289_v5  }
  0x37   : > { %2206 = vperm.xlu1 %8483, %v290_v8  }
  0x3a   : > { %8488 = vset.pattern.permute.xlu0 %v8639_v11 }
  0x3b   : > { %8484 = vset.pattern.permute.xlu1 %v8638_v10  ;;  %5922 = vperm.xlu0 %8488, %v284_v2  }
  0x3c   : > { %4056 = vperm.xlu1 %8484, %v284_v2  }
  0x3f   : > { %5934 = vperm.xlu0 %8488, %v287_v3  }
  0x40   : > { %4064 = vperm.xlu1 %8484, %v286_v1  }
  0x43   : > { %5938 = vperm.xlu0 %8488, %v288_v7  }
  0x44   : > { %4068 = vperm.xlu1 %8484, %v287_v3  }
  0x47   : > { %5950 = vperm.xlu0 %8488, %v291_v9  }
  0x48   : > { %8486 = vset.pattern.permute.xlu1 %v8639_v11 }
  0x49   : > { %5926 = vperm.xlu1 %8486, %v285_v4  }
  0x4d   : > { %5930 = vperm.xlu1 %8486, %v286_v1  }
  0x51   : > { %8487 = vset.pattern.permute.xlu1 %v8638_v10 }
  0x52   : > { %4072 = vperm.xlu1 %8487, %v288_v7  }
  0x56   : > { %4080 = vperm.xlu1 %8487, %v290_v8  }
  0x5a   : > { %4084 = vperm.xlu1 %8487, %v291_v9  }
  0x5e   : > { %8489 = vset.pattern.permute.xlu1 %v8639_v11 }
  0x5f   : > { %5942 = vperm.xlu1 %8489, %v289_v5  }
  0x63   : > { %5946 = vperm.xlu1 %8489, %v290_v8  }
  0x93   : > { %v305_v13 = vpop.permute.xlu1 %304  ;;  %v295_v14 = vpop.permute.xlu0 %294 }
  0x94   : > { %v8708_v15 = vmul.f32 %v8705_v12, %v305_v13  ;;  %v8711_v16 = vmul.f32 %v8705_v12, %v295_v14 }
  0x96   : > { %12832 = vst [vmem:[#allocation2_spill] sm:$0xff] %v8708_v15  ;;  %v554_v17 = vand.u32 2147483647, %v8708_v15  ;;  %v557_v18 = vand.u32 2139095040, %v8708_v15  ;;  %v349_v19 = vand.u32 2139095040, %v8711_v16 }
  0x97   : > { %v310_v20 = vpop.permute.xlu1 %309  ;;  %v12666_v35 = vand.u32 2147483647, %v8711_v16 }
  0x98   : > { %v558_v21 = vshrl.u32 %v557_v18, 23  ;;  %v8717_v22 = vmul.f32 %v8705_v12, %v310_v20  ;;  %v350_v23 = vshrl.u32 %v349_v19, 23  ;;  %v561_v25 = vand.u32 8388607, %v554_v17 }
  0x9a   : > { %12833 = vst [vmem:[#allocation3_spill] sm:$0xff] %v8717_v22  ;;  %v7893_v24 = vadd.s32 4294967169, %v558_v21  ;;  %v7885_v26 = vadd.s32 4294967169, %v350_v23  ;;  %v661_v27 = vand.u32 2139095040, %v8717_v22  ;;  %v562_v30 = vor.u32 8388608, %v561_v25 }
  0x9c   : > { %v564_v28 = vadd.s32 1, %v7893_v24  ;;  %v356_v29 = vadd.s32 1, %v7885_v26  ;;  %v662_v31 = vshrl.u32 %v661_v27, 23  ;;  %v8723_v38 = vshll.u32 %v562_v30, 8 }
  0x9e   : > { %vm565_vm0 = vcmp.gt.s32.totalorder %v564_v28, 0  ;;  %vm357_vm1 = vcmp.gt.s32.totalorder %v356_v29, 0  ;;  %v7897_v39 = vadd.s32 4294967169, %v662_v31 }
  0x9f   : > { %v566_v32 = vsel %vm565_vm0, %v564_v28, 0  ;;  %v358_v34 = vsel %vm357_vm1, %v356_v29, 0 }
  0xa0   : > { %v568_v33 = vand.u32 31, %v566_v32  ;;  %v567_v36 = vshrl.u32 %v566_v32, 5  ;;  %v8727_v44 = vshrl.u32 %v358_v34, 5  ;;  %v360_v45 = vand.u32 31, %v358_v34 }
  0xa1   : > { %v353_v32 = vand.u32 8388607, %v12666_v35 }
  0xa2   : > { %v569_v37 = vsub.s32 32, %v568_v33  ;;  %v571_v41 = vshll.u32 %v12680_v40, %v568_v33  ;;  %v574_v43 = vshll.u32 %v12669_v42, %v568_v33  ;;  %v577_v49 = vshll.u32 %v12671_v47, %v568_v33 }
  0xa3   : > { %v580_v52 = vshll.u32 %v12678_v50, %v568_v33  ;;  %v583_v55 = vshll.u32 %v12676_v53, %v568_v33  ;;  %vm586_vm2 = vcmp.lt.s32.totalorder %v567_v36, 1  ;;  %vm589_vm3 = vcmp.lt.s32.totalorder %v567_v36, 4 }
  0xa4   : > { %v572_v46 = vshrl.u32 %v12669_v42, %v569_v37  ;;  %v575_v48 = vshrl.u32 %v12671_v47, %v569_v37  ;;  %v578_v51 = vshrl.u32 %v12678_v50, %v569_v37  ;;  %v581_v54 = vshrl.u32 %v12676_v53, %v569_v37 }
  0xa5   : > { %v584_v57 = vshrl.u32 %v12674_v56, %v569_v37  ;;  %v361_v63 = vsub.s32 32, %v360_v45  ;;  %v570_v0 = vshrl.u32 %v12680_v40, %v569_v37  ;;  %vm587_vm4 = vcmp.lt.s32.totalorder %v567_v36, 2 }
  0xa6   : > { %v573_v58 = vor.u32 %v572_v46, %v571_v41  ;;  %v576_v59 = vor.u32 %v575_v48, %v574_v43  ;;  %v579_v60 = vor.u32 %v578_v51, %v577_v49  ;;  %v582_v61 = vor.u32 %v581_v54, %v580_v52  ;;  %v300_v52 = vpop.permute.xlu0 %299 }
  0xa7   : > { %v585_v62 = vor.u32 %v584_v57, %v583_v55  ;;  %vm588_vm5 = vcmp.lt.s32.totalorder %v567_v36, 3  ;;  %v363_v9 = vshll.u32 %v12680_v40, %v360_v45  ;;  %v364_v14 = vshrl.u32 %v12669_v42, %v361_v63 }
  0xa8   : > { %v591_v1 = vsel %vm589_vm3, %v579_v60, 2102212464  ;;  %v594_v2 = vsel %vm586_vm2, %v573_v58, %v576_v59  ;;  %v598_v3 = vsel %vm586_vm2, %v576_v59, %v579_v60  ;;  %v595_v4 = vsel %vm589_vm3, %v582_v61, 920167782 }
  0xa9   : > { %v599_v5 = vsel %vm589_vm3, %v585_v62, 1326507024  ;;  %v590_v6 = vsel %vm586_vm2, %v570_v0, %v573_v58  ;;  %v596_v7 = vsel %vm588_vm5, %v579_v60, %v595_v4  ;;  %v592_v10 = vsel %vm588_vm5, %v576_v59, %v591_v1 }
  0xaa   : > { %v600_v8 = vsel %vm588_vm5, %v582_v61, %v599_v5  ;;  %v597_v11 = vsel %vm587_vm4, %v594_v2, %v596_v7  ;;  %v366_v23 = vshll.u32 %v12669_v42, %v360_v45  ;;  %v367_v24 = vshrl.u32 %v12671_v47, %v361_v63 }
  0xab   : > { %v601_v13 = vsel %vm587_vm4, %v598_v3, %v600_v8  ;;  %v8747_v20 = vmul.u32.u64.low %v8723_v38, %v597_v11  ;;  %v8748_v21 = vmul.u32.u64.high %v8723_v38, %v597_v11, %v8747_v20  ;;  %v369_v25 = vshll.u32 %v12671_v47, %v360_v45 }
  0xac   : > { %v8743_v18 = vmul.u32.u64.low %v8723_v38, %v601_v13  ;;  %v8744_v19 = vmul.u32.u64.high %v8723_v38, %v601_v13, %v8743_v18  ;;  %v370_v26 = vshrl.u32 %v12678_v50, %v361_v63  ;;  %v372_v27 = vshll.u32 %v12678_v50, %v360_v45 }
  0xad   : > { %v373_v28 = vshrl.u32 %v12676_v53, %v361_v63  ;;  %v375_v29 = vshll.u32 %v12676_v53, %v360_v45  ;;  %v376_v30 = vshrl.u32 %v12674_v56, %v361_v63  ;;  %v593_v31 = vsel %vm587_vm4, %v590_v6, %v592_v10 }
  0xae   : > { %v668_v33 = vadd.s32 1, %v7897_v39  ;;  %vm611_vm6 = vc.u32 %v8744_v19, %v8747_v20  ;;  %v612_v34 = vadd.s32 1, %v8748_v21  ;;  %v365_v37 = vor.u32 %v364_v14, %v363_v9 }
  0xaf   : > { %v374_v41 = vor.u32 %v373_v28, %v372_v27  ;;  %v368_v43 = vor.u32 %v367_v24, %v366_v23  ;;  %v371_v46 = vor.u32 %v370_v26, %v369_v25  ;;  %v377_v48 = vor.u32 %v376_v30, %v375_v29 }
  0xb0   : > { %vm381_vm7 = vcmp.lt.s32.totalorder %v8727_v44, 4  ;;  %vm378_vm8 = vcmp.lt.s32.totalorder %v8727_v44, 1  ;;  %vm380_vm9 = vcmp.lt.s32.totalorder %v8727_v44, 3  ;;  %v613_v39 = vsel %vm611_vm6, %v612_v34, %v8748_v21 }
  0xb1   : > { %v387_v36 = vsel %vm381_vm7, %v374_v41, 920167782  ;;  %v354_v45 = vor.u32 8388608, %v353_v32  ;;  %v391_v49 = vsel %vm381_vm7, %v377_v48, 1326507024  ;;  %v609_v51 = vmul.u32 %v8723_v38, %v593_v31 }
  0xb2   : > { %vm669_vm10 = vcmp.gt.s32.totalorder %v668_v33, 0  ;;  %vm379_vm11 = vcmp.lt.s32.totalorder %v8727_v44, 2  ;;  %v386_v54 = vsel %vm378_vm8, %v365_v37, %v368_v43  ;;  %v388_v55 = vsel %vm380_vm9, %v371_v46, %v387_v36 }
  0xb3   : > { %v658_v57 = vand.u32 2147483647, %v8717_v22  ;;  %v614_v58 = vadd.s32 %v613_v39, %v609_v51  ;;  %v390_v59 = vsel %vm378_vm8, %v368_v43, %v371_v46  ;;  %v392_v60 = vsel %vm380_vm9, %v374_v41, %v391_v49 }
  0xb4   : > { %v670_v38 = vsel %vm669_vm10, %v668_v33, 0  ;;  %v8784_v61 = vshll.u32 %v354_v45, 8  ;;  %v8787_v0 = vmul.f32 %v8705_v12, %v300_v52  ;;  %v389_v1 = vsel %vm379_vm11, %v386_v54, %v388_v55 }
  0xb5   : > { %v672_v62 = vand.u32 31, %v670_v38  ;;  %v362_v2 = vshrl.u32 %v12680_v40, %v361_v63  ;;  %v393_v3 = vsel %vm379_vm11, %v390_v59, %v392_v60  ;;  %v615_v5 = vadd.s32 536870912, %v614_v58 }
  0xb6   : > { %12834 = vst [vmem:[#allocation4_spill] sm:$0xff] %v8787_v0  ;;  %v665_v6 = vand.u32 8388607, %v658_v57  ;;  %v383_v7 = vsel %vm381_vm7, %v371_v46, 2102212464  ;;  %v8799_v8 = vmul.u32.u64.low %v8784_v61, %v389_v1  ;;  %v8800_v9 = vmul.u32.u64.high %v8784_v61, %v389_v1, %v8799_v8 }
  0xb7   : > { %v673_v4 = vsub.s32 32, %v672_v62  ;;  %v453_v10 = vand.u32 2139095040, %v8787_v0  ;;  %v8805_v63 = vmul.u32.u64.low %v8784_v61, %v393_v3  ;;  %v8806_v11 = vmul.u32.u64.high %v8784_v61, %v393_v3, %v8805_v63 }
  0xb8   : > { %v382_v18 = vsel %vm378_vm8, %v362_v2, %v365_v37  ;;  %v675_v21 = vshll.u32 %v12680_v40, %v672_v62  ;;  %v678_v23 = vshll.u32 %v12669_v42, %v672_v62  ;;  %v8815_v25 = vshrl.u32 %v615_v5, 30 }
  0xb9   : > { %v676_v13 = vshrl.u32 %v12669_v42, %v673_v4  ;;  %v679_v14 = vshrl.u32 %v12671_v47, %v673_v4  ;;  %v682_v24 = vshrl.u32 %v12678_v50, %v673_v4  ;;  %v384_v26 = vsel %vm380_vm9, %v368_v43, %v383_v7 }
  0xba   : > { %v671_v27 = vshrl.u32 %v670_v38, 5  ;;  %v681_v28 = vshll.u32 %v12671_v47, %v672_v62  ;;  %v684_v31 = vshll.u32 %v12678_v50, %v672_v62  ;;  %v685_v32 = vshrl.u32 %v12676_v53, %v673_v4 }
  0xbb   : > { %v677_v29 = vor.u32 %v676_v13, %v675_v21  ;;  %v680_v30 = vor.u32 %v679_v14, %v678_v23  ;;  %v687_v34 = vshll.u32 %v12676_v53, %v672_v62  ;;  %v688_v37 = vshrl.u32 %v12674_v56, %v673_v4 }
  0xbc   : > { %v683_v33 = vor.u32 %v682_v24, %v681_v28  ;;  %v454_v41 = vshrl.u32 %v453_v10, 23  ;;  %v666_v46 = vor.u32 8388608, %v665_v6  ;;  %v686_v48 = vor.u32 %v685_v32, %v684_v31  ;;  %v320_v32 = vpop.permute.xlu0 %319 }
  0xbd   : > { %v385_v43 = vsel %vm379_vm11, %v382_v18, %v384_v26  ;;  %v689_v36 = vor.u32 %v688_v37, %v687_v34  ;;  %vm690_vm12 = vcmp.lt.s32.totalorder %v671_v27, 1  ;;  %vm693_vm13 = vcmp.lt.s32.totalorder %v671_v27, 4 }
  0xbe   : > { %v617_v39 = vshll.u32 %v8815_v25, 30  ;;  %vm692_vm14 = vcmp.lt.s32.totalorder %v671_v27, 3  ;;  %v698_v45 = vsel %vm690_vm12, %v677_v29, %v680_v30  ;;  %v699_v49 = vsel %vm693_vm13, %v686_v48, 920167782 }
  0xbf   : > { %v404_v51 = vadd.s32 1, %v8800_v9  ;;  %v700_v52 = vsel %vm692_vm14, %v683_v33, %v699_v49  ;;  %v702_v54 = vsel %vm690_vm12, %v680_v30, %v683_v33  ;;  %v7889_v55 = vadd.s32 4294967169, %v454_v41 }
  0xc0   : > { %vm403_vm15 = vc.u32 %v8806_v11, %v8799_v8  ;;  %vm691_vm0 = vcmp.lt.s32.totalorder %v671_v27, 2  ;;  %v703_v44 = vsel %vm693_vm13, %v689_v36, 1326507024  ;;  %v706_v38 = vshll.u32 %v666_v46, 8 }
  0xc1   : > { %v701_v59 = vsel %vm691_vm0, %v698_v45, %v700_v52  ;;  %v704_v60 = vsel %vm692_vm14, %v686_v48, %v703_v44  ;;  %v8837_v62 = vsub.s32 %v614_v58, %v617_v39  ;;  %v401_v1 = vmul.u32 %v8784_v61, %v385_v43 }
  0xc2   : > { %v705_v2 = vsel %vm691_vm0, %v702_v54, %v704_v60  ;;  %v405_v3 = vsel %vm403_vm15, %v404_v51, %v8800_v9  ;;  %v460_v7 = vadd.s32 1, %v7889_v55  ;;  %v695_v10 = vsel %vm693_vm13, %v683_v33, 2102212464 }
  0xc3   : > { %v8842_v5 = vmul.u32.u64.low %v706_v38, %v705_v2  ;;  %v8843_v6 = vmul.u32.u64.high %v706_v38, %v705_v2, %v8842_v5  ;;  %v8846_v63 = vmul.u32.u64.low %v706_v38, %v701_v59  ;;  %v8847_v13 = vmul.u32.u64.high %v706_v38, %v701_v59, %v8846_v63 }
  0xc4   : > { %v674_v14 = vshrl.u32 %v12680_v40, %v673_v4  ;;  %vm461_vm1 = vcmp.gt.s32.totalorder %v460_v7, 0  ;;  %v406_v58 = vadd.s32 %v405_v3, %v401_v1  ;;  %v620_v61 = vsub.s32 0, %v8837_v62 }
  0xc5   : > { %v696_v9 = vsel %vm692_vm14, %v680_v30, %v695_v10  ;;  %v462_v21 = vsel %vm461_vm1, %v460_v7, 0  ;;  %v716_v23 = vadd.s32 1, %v8847_v13  ;;  %vm715_vm2 = vc.u32 %v8843_v6, %v8846_v63 }
  0xc6   : > { %v694_v18 = vsel %vm690_vm12, %v674_v14, %v677_v29  ;;  %v407_v24 = vadd.s32 536870912, %v406_v58  ;;  %v464_v28 = vand.u32 31, %v462_v21  ;;  %v7894_v4 = vmin.u32 %v620_v61, %v8837_v62 }
  0xc7   : > { %v697_v26 = vsel %vm691_vm0, %v694_v18, %v696_v9  ;;  %v717_v31 = vsel %vm715_vm2, %v716_v23, %v8847_v13  ;;  %v8863_v41 = vmul.f32 %v8705_v12, %v320_v32  ;;  %v12664_v27 = vand.u32 2147483647, %v8787_v0 }
  0xc8   : > { %v713_v33 = vmul.u32 %v706_v38, %v697_v26  ;;  %v8860_v34 = vshrl.u32 %v407_v24, 30  ;;  %v465_v29 = vsub.s32 32, %v464_v28  ;;  %v622_v30 = vclz %v7894_v4 }
  0xc9   : > { %12836 = vst [vmem:[#allocation6_spill] sm:$0xff] %v8863_v41  ;;  %v476_v48 = vshll.u32 %v12678_v50, %v464_v28  ;;  %v8869_v45 = vshrl.u32 %v462_v21, 5  ;;  %v869_v49 = vand.u32 2139095040, %v8863_v41  ;;  %v467_v51 = vshll.u32 %v12680_v40, %v464_v28 }
  0xca   : > { %12835 = vst [vmem:[#allocation5_spill] sm:$0xff] %v8860_v34  ;;  %v718_v37 = vadd.s32 %v717_v31, %v713_v33  ;;  %v409_v46 = vshll.u32 %v8860_v34, 30  ;;  %v477_v43 = vshrl.u32 %v12676_v53, %v465_v29  ;;  %v7895_v36 = vadd.s32 4294967294, %v622_v30 }
  0xcb   : > { %v468_v52 = vshrl.u32 %v12669_v42, %v465_v29  ;;  %v470_v54 = vshll.u32 %v12669_v42, %v464_v28  ;;  %v471_v55 = vshrl.u32 %v12671_v47, %v465_v29  ;;  %v473_v44 = vshll.u32 %v12671_v47, %v464_v28 }
  0xcc   : > { %v719_v39 = vadd.s32 536870912, %v718_v37  ;;  %v474_v59 = vshrl.u32 %v12678_v50, %v465_v29  ;;  %v479_v60 = vshll.u32 %v12676_v53, %v464_v28  ;;  %v480_v38 = vshrl.u32 %v12674_v56, %v465_v29 }
  0xcd   : > { %v8880_v1 = vsub.s32 %v406_v58, %v409_v46  ;;  %v478_v2 = vor.u32 %v477_v43, %v476_v48  ;;  %v457_v5 = vand.u32 8388607, %v12664_v27  ;;  %vm485_vm3 = vcmp.lt.s32.totalorder %v8869_v45, 4 }
  0xce   : > { %v8882_v3 = vshrl.u32 %v719_v39, 30  ;;  %v870_v7 = vshrl.u32 %v869_v49, 23  ;;  %vm7896_vm4 = vcmp.lt.s32.totalorder %v7895_v36, 0  ;;  %v469_v10 = vor.u32 %v468_v52, %v467_v51 }
  0xcf   : > { %v472_v13 = vor.u32 %v471_v55, %v470_v54  ;;  %v475_v14 = vor.u32 %v474_v59, %v473_v44  ;;  %v481_v61 = vor.u32 %v480_v38, %v479_v60  ;;  %v412_v18 = vsub.s32 0, %v8880_v1 }
  0xd0   : > { %vm482_vm5 = vcmp.lt.s32.totalorder %v8869_v45, 1  ;;  %vm484_vm6 = vcmp.lt.s32.totalorder %v8869_v45, 3  ;;  %v491_v58 = vsel %vm485_vm3, %v478_v2, 920167782  ;;  %v8892_v9 = vsel %vm7896_vm4, 0, %v7895_v36 }
  0xd1   : > { %v721_v21 = vshll.u32 %v8882_v3, 30  ;;  %v458_v23 = vor.u32 8388608, %v457_v5  ;;  %v7905_v24 = vadd.s32 4294967169, %v870_v7  ;;  %v640_v26 = vsub.s32 4, %v8815_v25 }
  0xd2   : > { %vm483_vm7 = vcmp.lt.s32.totalorder %v8869_v45, 2  ;;  %v490_v28 = vsel %vm482_vm5, %v469_v10, %v472_v13  ;;  %v492_v4 = vsel %vm484_vm6, %v475_v14, %v491_v58  ;;  %v495_v31 = vsel %vm485_vm3, %v481_v61, 1326507024 }
  0xd3   : > { %v876_v32 = vadd.s32 1, %v7905_v24  ;;  %v630_v33 = vsub.s32 4294967266, %v8892_v9  ;;  %v7886_v30 = vmin.u32 %v412_v18, %v8880_v1  ;;  %v466_v46 = vshrl.u32 %v12680_v40, %v465_v29 }
  0xd4   : > { %vm556_vm8 = vcmp.lt.s32.totalorder %v8708_v15, 0  ;;  %v8907_v48 = vsub.s32 %v718_v37, %v721_v21  ;;  %v8909_v43 = vshll.u32 %v458_v23, 8  ;;  %v12668_v36 = vand.u32 2147483647, %v8863_v41 }
  0xd5   : > { %v493_v39 = vsel %vm483_vm7, %v490_v28, %v492_v4  ;;  %v494_v49 = vsel %vm482_vm5, %v472_v13, %v475_v14  ;;  %v496_v51 = vsel %vm484_vm6, %v478_v2, %v495_v31  ;;  %vm877_vm9 = vcmp.gt.s32.totalorder %v876_v32, 0  ;;  %v2187_v4 = vpop.permute.xlu1 %2186 }
  0xd6   : > { %v610_v29 = vadd.s32 %v8747_v20, %v8744_v19  ;;  %v626_v37 = vsub.s32 32, %v8892_v9  ;;  %v8924_v52 = vsel %vm556_vm8, %v640_v26, %v8815_v25  ;;  %v878_v54 = vsel %vm877_vm9, %v876_v32, 0 }
  0xd7   : > { %v631_v55 = vadd.s32 127, %v630_v33  ;;  %v414_v44 = vclz %v7886_v30  ;;  %v486_v59 = vsel %vm482_vm5, %v466_v46, %v469_v10  ;;  %v880_v60 = vand.u32 31, %v878_v54 }
  0xd8   : > { %v497_v38 = vsel %vm483_vm7, %v494_v49, %v496_v51  ;;  %v8931_v2 = vmul.u32.u64.low %v8909_v43, %v493_v39  ;;  %v8932_v19 = vmul.u32.u64.high %v8909_v43, %v493_v39, %v8931_v2  ;;  %v873_v20 = vand.u32 8388607, %v12668_v36 }
  0xd9   : > { %v724_v25 = vsub.s32 0, %v8907_v48  ;;  %v881_v5 = vsub.s32 32, %v880_v60  ;;  %v883_v7 = vshll.u32 %v12680_v40, %v880_v60  ;;  %v886_v61 = vshll.u32 %v12669_v42, %v880_v60 }
  0xda   : > { %v487_v10 = vsel %vm485_vm3, %v475_v14, 2102212464  ;;  %v8942_v18 = vshrl.u32 %v878_v54, 5  ;;  %v889_v58 = vshll.u32 %v12671_v47, %v880_v60  ;;  %v892_v21 = vshll.u32 %v12678_v50, %v880_v60 }
  0xdb   : > { %v8947_v23 = vmul.u32.u64.low %v8909_v43, %v497_v38  ;;  %v8948_v24 = vmul.u32.u64.high %v8909_v43, %v497_v38, %v8947_v23  ;;  %v884_v26 = vshrl.u32 %v12669_v42, %v881_v5  ;;  %v887_v28 = vshrl.u32 %v12671_v47, %v881_v5 }
  0xdc   : > { %v874_v31 = vor.u32 8388608, %v873_v20  ;;  %v890_v32 = vshrl.u32 %v12678_v50, %v881_v5  ;;  %v893_v14 = vshrl.u32 %v12676_v53, %v881_v5  ;;  %v895_v33 = vshll.u32 %v12676_v53, %v880_v60 }
  0xdd   : > { %v488_v30 = vsel %vm484_vm6, %v472_v13, %v487_v10  ;;  %v885_v46 = vor.u32 %v884_v26, %v883_v7  ;;  %v888_v39 = vor.u32 %v887_v28, %v886_v61  ;;  %v896_v49 = vshrl.u32 %v12674_v56, %v881_v5 }
  0xde   : > { %vm8960_vm10 = vcmp.le.f32.partialorder %v554_v17, 0.7853982  ;;  %v891_v54 = vor.u32 %v890_v32, %v889_v58  ;;  %v894_v38 = vor.u32 %v893_v14, %v892_v21  ;;  %vm898_vm11 = vcmp.lt.s32.totalorder %v8942_v18, 1  ;;  %v2191_v14 = vpop.permute.xlu1 %2190 }
  0xdf   : > { %v8966_v20 = vmul.f32 %v8705_v12, %v2187_v4  ;;  %v7887_v60 = vadd.s32 4294967294, %v414_v44  ;;  %v7898_v13 = vmin.u32 %v724_v25, %v8907_v48  ;;  %v897_v7 = vor.u32 %v896_v49, %v895_v33 }
  0xe0   : > { %vm900_vm12 = vcmp.lt.s32.totalorder %v8942_v18, 3  ;;  %vm899_vm13 = vcmp.lt.s32.totalorder %v8942_v18, 2  ;;  %vm901_vm14 = vcmp.lt.s32.totalorder %v8942_v18, 4  ;;  %v906_v17 = vsel %vm898_vm11, %v885_v46, %v888_v39 }
  0xe1   : > { %12839 = vst [vmem:[#allocation7_spill] sm:$0xff] %v8966_v20  ;;  %v8974_v61 = vshll.u32 %v874_v31, 8  ;;  %v632_v10 = vshll.u32 %v631_v55, 23  ;;  %v489_v58 = vsel %vm483_vm7, %v486_v59, %v488_v30  ;;  %v508_v44 = vadd.s32 1, %v8932_v19 }
  0xe2   : > { %v907_v25 = vsel %vm901_vm14, %v894_v38, 920167782  ;;  %v910_v23 = vsel %vm898_vm11, %v888_v39, %v891_v54  ;;  %v911_v26 = vsel %vm901_vm14, %v897_v7, 1326507024  ;;  %v2328_v28 = vand.u32 2139095040, %v8966_v20 }
  0xe3   : > { %v908_v21 = vsel %vm900_vm12, %v891_v54, %v907_v25  ;;  %v628_v55 = vshrl.u32 %v610_v29, %v626_v37  ;;  %vm7888_vm15 = vcmp.lt.s32.totalorder %v7887_v60, 0  ;;  %vm507_vm0 = vc.u32 %v8948_v24, %v8931_v2 }
  0xe4   : > { %v909_v45 = vsel %vm899_vm13, %v906_v17, %v908_v21  ;;  %v726_v59 = vclz %v7898_v13  ;;  %v912_v4 = vsel %vm900_vm12, %v894_v38, %v911_v26  ;;  %v627_v29 = vshll.u32 %v8837_v62, %v8892_v9 }
  0xe5   : > { %v8995_v31 = vmul.u32.u64.low %v8974_v61, %v909_v45  ;;  %v8996_v32 = vmul.u32.u64.high %v8974_v61, %v909_v45, %v8995_v31  ;;  %v633_v37 = vor.u32 4788187, %v632_v10  ;;  %v505_v33 = vmul.u32 %v8909_v43, %v489_v58 }
  0xe6   : > { %v913_v30 = vsel %vm899_vm13, %v910_v23, %v912_v4  ;;  %v509_v49 = vsel %vm507_vm0, %v508_v44, %v8932_v19  ;;  %v2329_v7 = vshrl.u32 %v2328_v28, 23  ;;  %v9012_v17 = vsel %vm8960_vm10, 0, %v8924_v52 }
  0xe7   : > { %v9006_v13 = vmul.u32.u64.low %v8974_v61, %v913_v30  ;;  %v9007_v38 = vmul.u32.u64.high %v8974_v61, %v913_v30, %v9006_v13  ;;  %12840 = vst [vmem:[#allocation8_spill] sm:$0xff] %v9012_v17  ;;  %v417_v25 = vsel %vm7888_vm15, 0, %v7887_v60  ;;  %v882_v62 = vshrl.u32 %v12680_v40, %v881_v5 }
  0xe8   : > { %v9016_v9 = vmul.f32 %v8705_v12, %v2191_v14  ;;  %v629_v43 = vor.u32 %v628_v55, %v627_v29  ;;  %v7899_v10 = vadd.s32 4294967294, %v726_v59  ;;  %v903_v19 = vsel %vm901_vm14, %v891_v54, 2102212464 }
  0xe9   : > { %v7963_v58 = vadd.s32 4294967169, %v2329_v7  ;;  %v510_v44 = vadd.s32 %v509_v49, %v505_v33  ;;  %v634_v21 = vand.u32 2147483647, %v633_v37  ;;  %v402_v23 = vadd.s32 %v8799_v8, %v8806_v11 }
  0xea   : > { %12841 = vst [vmem:[#allocation9_spill] sm:$0xff] %v9016_v9  ;;  %v418_v26 = vsub.s32 32, %v417_v25  ;;  %v647_v60 = vadd.s32 3, %v9012_v17  ;;  %v902_v5 = vsel %vm898_vm11, %v882_v62, %v885_v46  ;;  %v904_v28 = vsel %vm900_vm12, %v888_v39, %v903_v19 }
  0xeb   : > { %v2335_v52 = vadd.s32 1, %v7963_v58  ;;  %v2432_v55 = vand.u32 2139095040, %v9016_v9  ;;  %v636_v45 = vcvt.s32.f32 %v629_v43  ;;  %vm7900_vm1 = vcmp.lt.s32.totalorder %v7899_v10, 0 }
  0xec   : > { %v924_v54 = vadd.s32 1, %v8996_v32  ;;  %v422_v59 = vsub.s32 4294967266, %v417_v25  ;;  %v511_v4 = vadd.s32 536870912, %v510_v44  ;;  %vm923_vm3 = vc.u32 %v9007_v38, %v8995_v31 }
  0xed   : > { %vm2336_vm2 = vcmp.gt.s32.totalorder %v2335_v52, 0  ;;  %v637_v11 = vmul.f32 %v636_v45, %v634_v21  ;;  %v420_v14 = vshrl.u32 %v402_v23, %v418_v26  ;;  %v905_v46 = vsel %vm899_vm13, %v902_v5, %v904_v28 }
  0xee   : > { %v2337_v8 = vsel %vm2336_vm2, %v2335_v52, 0  ;;  %v9033_v39 = vsel %vm7900_vm1, 0, %v7899_v10  ;;  %v2433_v37 = vshrl.u32 %v2432_v55, 23  ;;  %v9035_v33 = vand.u32 3, %v647_v60 }
  0xef   : > { %v2339_v29 = vand.u32 31, %v2337_v8  ;;  %v419_v30 = vshll.u32 %v8880_v1, %v417_v25  ;;  %v925_v49 = vsel %vm923_vm3, %v924_v54, %v8996_v32  ;;  %v9041_v7 = vadd.s32 127, %v422_v59 }
  0xf0   : > { %12842 = vst [vmem:[#allocation10_spill] sm:$0xff] %v9035_v33  ;;  %v714_v62 = vadd.s32 %v8846_v63, %v8843_v6  ;;  %v9045_v43 = vshrl.u32 %v511_v4, 30  ;;  %v921_v18 = vmul.u32 %v8974_v61, %v905_v46  ;;  %v638_v10 = vxor.u32 2147483648, %v637_v11 }
  0xf1   : > { %v9039_v13 = vsub.s32 32, %v2339_v29  ;;  %v9048_v19 = vor.u32 %v420_v14, %v419_v30  ;;  %v730_v58 = vsub.s32 32, %v9033_v39  ;;  %v12665_v1 = vand.u32 2147483647, %v8966_v20 }
  0xf2   : > { %12843 = vst [vmem:[#allocation11_spill] sm:$0xff] %v9045_v43  ;;  %v9052_v25 = vadd.s32 %v925_v49, %v921_v18  ;;  %v7967_v6 = vadd.s32 4294967169, %v2433_v37  ;;  %v9058_v63 = vshrl.u32 %v2337_v8, 5  ;;  %v2351_v26 = vshll.u32 %v12678_v50, %v2339_v29  ;;  %v2183_v37 = vpop.permute.xlu0 %2182 }
  0xf3   : > { %v2343_v32 = vshrl.u32 %v12669_v42, %v9039_v13  ;;  %v2352_v21 = vshrl.u32 %v12676_v53, %v9039_v13  ;;  %v2346_v61 = vshrl.u32 %v12671_v47, %v9039_v13  ;;  %v2349_v23 = vshrl.u32 %v12678_v50, %v9039_v13 }
  0xf4   : > { %v734_v52 = vsub.s32 4294967266, %v9033_v39  ;;  %v513_v60 = vshll.u32 %v9045_v43, 30  ;;  %v2342_v5 = vshll.u32 %v12680_v40, %v2339_v29  ;;  %v2345_v28 = vshll.u32 %v12669_v42, %v2339_v29 }
  0xf5   : > { %v2348_v55 = vshll.u32 %v12671_v47, %v2339_v29  ;;  %v2353_v45 = vor.u32 %v2352_v21, %v2351_v26  ;;  %v2354_v54 = vshll.u32 %v12676_v53, %v2339_v29  ;;  %v2355_v59 = vshrl.u32 %v12674_v56, %v9039_v13 }
  0xf6   : > { %v927_v4 = vadd.s32 536870912, %v9052_v25  ;;  %v2332_v8 = vand.u32 8388607, %v12665_v1  ;;  %v9076_v14 = vor.u32 %v2343_v32, %v2342_v5  ;;  %v2439_v46 = vadd.s32 1, %v7967_v6 }
  0xf7   : > { %v9078_v30 = vor.u32 %v2346_v61, %v2345_v28  ;;  %v9080_v49 = vor.u32 %v2349_v23, %v2348_v55  ;;  %v2356_v18 = vor.u32 %v2355_v59, %v2354_v54  ;;  %vm2360_vm4 = vcmp.lt.s32.totalorder %v9058_v63, 4 }
  0xf8   : > { %v735_v29 = vadd.s32 127, %v734_v52  ;;  %v9083_v21 = vsub.s32 %v510_v44, %v513_v60  ;;  %v2366_v26 = vsel %vm2360_vm4, %v2353_v45, 920167782  ;;  %v12667_v27 = vand.u32 2147483647, %v9016_v9 }
  0xf9   : > { %v639_v32 = vsel %vm556_vm8, %v638_v10, %v637_v11  ;;  %v732_v61 = vshrl.u32 %v714_v62, %v730_v58  ;;  %v9092_v23 = vmul.f32 %v8705_v12, %v2183_v37  ;;  %v2333_v5 = vor.u32 8388608, %v2332_v8 }
  0xfa   : > { %vm2357_vm5 = vcmp.lt.s32.totalorder %v9058_v63, 1  ;;  %vm2359_vm6 = vcmp.lt.s32.totalorder %v9058_v63, 3  ;;  %vm2440_vm7 = vcmp.gt.s32.totalorder %v2439_v46, 0  ;;  %v9096_v44 = vshrl.u32 %v927_v4, 30 }
  0xfb   : > { %12844 = vst [vmem:[#allocation12_spill] sm:$0xff] %v9092_v23  ;;  %v2365_v52 = vsel %vm2357_vm5, %v9076_v14, %v9078_v30  ;;  %v2367_v11 = vsel %vm2359_vm6, %v9080_v49, %v2366_v26  ;;  %v2370_v12 = vsel %vm2360_vm4, %v2356_v18, 1326507024  ;;  %v736_v62 = vshll.u32 %v735_v29, 23 }
  0xfc   : > { %v516_v10 = vsub.s32 0, %v9083_v21  ;;  %v2436_v58 = vand.u32 8388607, %v12667_v27  ;;  %v2441_v60 = vsel %vm2440_vm7, %v2439_v46, 0  ;;  %v9113_v28 = vsel %vm8960_vm10, %v8708_v15, %v639_v32 }
  0xfd   : > { %v731_v55 = vshll.u32 %v8907_v48, %v9033_v39  ;;  %vm2358_vm8 = vcmp.lt.s32.totalorder %v9058_v63, 2  ;;  %v2224_v54 = vand.u32 2139095040, %v9092_v23  ;;  %v2369_v4 = vsel %vm2357_vm5, %v9078_v30, %v9080_v49 }
  0xfe   : > { %v2368_v59 = vsel %vm2358_vm8, %v2365_v52, %v2367_v11  ;;  %v2371_v51 = vsel %vm2359_vm6, %v2353_v45, %v2370_v12  ;;  %v2443_v8 = vand.u32 31, %v2441_v60  ;;  %v929_v39 = vshll.u32 %v9096_v44, 30 }
  0xff   : > { %v9127_v46 = vor.u32 %v732_v61, %v731_v55  ;;  %v9131_v37 = vshll.u32 %v2333_v5, 8  ;;  %v9133_v18 = vor.u32 4788187, %v736_v62  ;;  %v7890_v29 = vmin.u32 %v516_v10, %v9083_v21 }
 0x100   : > { %v2437_v26 = vor.u32 8388608, %v2436_v58  ;;  %v2444_v32 = vsub.s32 32, %v2443_v8  ;;  %v2372_v52 = vsel %vm2358_vm8, %v2369_v4, %v2371_v51  ;;  %v2225_v61 = vshrl.u32 %v2224_v54, 23 }
 0x101   : > { %v9139_v45 = vmul.u32.u64.low %v9131_v37, %v2368_v59  ;;  %v9140_v11 = vmul.u32.u64.high %v9131_v37, %v2368_v59, %v9139_v45  ;;  %v2446_v12 = vshll.u32 %v12680_v40, %v2443_v8  ;;  %v2449_v62 = vshll.u32 %v12669_v42, %v2443_v8 }
 0x102   : > { %v2447_v5 = vshrl.u32 %v12669_v42, %v2444_v32  ;;  %v2450_v55 = vshrl.u32 %v12671_v47, %v2444_v32  ;;  %v9148_v10 = vsub.s32 %v9052_v25, %v929_v39  ;;  %v2442_v58 = vshrl.u32 %v2441_v60, 5 }
 0x103   : > { %v2452_v4 = vshll.u32 %v12671_v47, %v2443_v8  ;;  %v2453_v51 = vshrl.u32 %v12678_v50, %v2444_v32  ;;  %v2455_v54 = vshll.u32 %v12678_v50, %v2443_v8  ;;  %v2456_v35 = vshrl.u32 %v12676_v53, %v2444_v32 }
 0x104   : > { %v2448_v59 = vor.u32 %v2447_v5, %v2446_v12  ;;  %v2451_v1 = vor.u32 %v2450_v55, %v2449_v62  ;;  %v518_v27 = vclz %v7890_v29  ;;  %v7959_v48 = vadd.s32 4294967169, %v2225_v61 }
 0x105   : > { %v9155_v36 = vmul.u32.u64.low %v9131_v37, %v2372_v52  ;;  %v9156_v42 = vmul.u32.u64.high %v9131_v37, %v2372_v52, %v9155_v36  ;;  %v2454_v6 = vor.u32 %v2453_v51, %v2452_v4  ;;  %v2457_v25 = vor.u32 %v2456_v35, %v2455_v54 }
 0x106   : > { %v2458_v60 = vshll.u32 %v12676_v53, %v2443_v8  ;;  %v2459_v39 = vshrl.u32 %v12674_v56, %v2444_v32  ;;  %v932_v47 = vsub.s32 0, %v9148_v10  ;;  %v2341_v12 = vshrl.u32 %v12680_v40, %v9039_v13 }
 0x107   : > { %vm2461_vm9 = vcmp.lt.s32.totalorder %v2442_v58, 1  ;;  %v2477_v5 = vshll.u32 %v2437_v26, 8  ;;  %vm660_vm10 = vcmp.lt.s32.totalorder %v8717_v22, 0  ;;  %v2362_v36 = vsel %vm2360_vm4, %v9080_v49, 2102212464 }
 0x108   : > { %v2460_v29 = vor.u32 %v2459_v39, %v2458_v60  ;;  %vm2464_vm11 = vcmp.lt.s32.totalorder %v2442_v58, 4  ;;  %v2469_v35 = vsel %vm2461_vm9, %v2448_v59, %v2451_v1  ;;  %v2361_v8 = vsel %vm2357_vm5, %v2341_v12, %v9076_v14 }
 0x109   : > { %vm2463_vm12 = vcmp.lt.s32.totalorder %v2442_v58, 3  ;;  %v2470_v52 = vsel %vm2464_vm11, %v2457_v25, 920167782  ;;  %v2231_v61 = vadd.s32 1, %v7959_v48  ;;  %vm2462_vm13 = vcmp.lt.s32.totalorder %v2442_v58, 2 }
 0x10a   : > { %v2471_v13 = vsel %vm2463_vm12, %v2454_v6, %v2470_v52  ;;  %v2473_v26 = vsel %vm2461_vm9, %v2451_v1, %v2454_v6  ;;  %v2474_v62 = vsel %vm2464_vm11, %v2460_v29, 1326507024  ;;  %v2363_v49 = vsel %vm2359_vm6, %v9078_v30, %v2362_v36 }
 0x10b   : > { %v2445_v55 = vshrl.u32 %v12680_v40, %v2444_v32  ;;  %v2466_v4 = vsel %vm2464_vm11, %v2454_v6, 2102212464  ;;  %v2472_v51 = vsel %vm2462_vm13, %v2469_v35, %v2471_v13  ;;  %v2383_v14 = vadd.s32 1, %v9140_v11 }
 0x10c   : > { %v2475_v54 = vsel %vm2463_vm12, %v2457_v25, %v2474_v62  ;;  %v9180_v48 = vmul.u32.u64.low %v2477_v5, %v2472_v51  ;;  %v9181_v60 = vmul.u32.u64.high %v2477_v5, %v2472_v51, %v9180_v48  ;;  %vm2382_vm14 = vc.u32 %v9156_v42, %v9139_v45 }
 0x10d   : > { %v2465_v39 = vsel %vm2461_vm9, %v2445_v55, %v2448_v59  ;;  %v2476_v30 = vsel %vm2462_vm13, %v2473_v26, %v2475_v54  ;;  %vm2232_vm15 = vcmp.gt.s32.totalorder %v2231_v61, 0  ;;  %v2467_v6 = vsel %vm2463_vm12, %v2451_v1, %v2466_v4 }
 0x10e   : > { %v9189_v32 = vmul.u32.u64.low %v2477_v5, %v2476_v30  ;;  %v9190_v12 = vmul.u32.u64.high %v2477_v5, %v2476_v30, %v9189_v32  ;;  %v2233_v36 = vsel %vm2232_vm15, %v2231_v61, 0  ;;  %vm9194_vm0 = vcmp.le.f32.partialorder %v658_v57, 0.7853982 }
 0x10f   : > { %v7891_v29 = vadd.s32 4294967294, %v518_v27  ;;  %v7906_v35 = vmin.u32 %v932_v47, %v9148_v10  ;;  %v2364_v59 = vsel %vm2358_vm8, %v2361_v8, %v2363_v49  ;;  %v2235_v52 = vand.u32 31, %v2233_v36 }
 0x110   : > { %8494 = vcosq.f32 %v9113_v28  ;;  %v12847_v1 = vshll.u32 %v9041_v7, 23  ;;  %v428_v61 = vcvt.s32.f32 %v9048_v19  ;;  %v2487_v26 = vadd.s32 1, %v9181_v60 }
 0x111   : > { %v12848_v57 = vsub.s32 4, %v8882_v3  ;;  %v2384_v47 = vsel %vm2382_vm14, %v2383_v14, %v9140_v11  ;;  %v2468_v63 = vsel %vm2462_vm13, %v2465_v39, %v2467_v6  ;;  %v9216_v8 = vsub.s32 32, %v2235_v52 }
 0x112   : > { %v425_v13 = vor.u32 4788187, %v12847_v1  ;;  %v738_v7 = vand.u32 2147483647, %v9133_v18  ;;  %v740_v19 = vcvt.s32.f32 %v9127_v46  ;;  %v2380_v62 = vmul.u32 %v9131_v37, %v2364_v59 }
 0x113   : > { %v745_v27 = vsel %vm660_vm10, %v12848_v57, %v8882_v3  ;;  %vm2486_vm1 = vc.u32 %v9190_v12, %v9180_v48  ;;  %vm7892_vm2 = vcmp.lt.s32.totalorder %v7891_v29, 0  ;;  %v934_v3 = vclz %v7906_v35 }
 0x114   : > { %v2488_v49 = vsel %vm2486_vm1, %v2487_v26, %v9181_v60  ;;  %v12673_v55 = vand.u32 2147483647, %v9092_v23  ;;  %v9225_v11 = vadd.s32 %v2384_v47, %v2380_v62  ;;  %v2484_v58 = vmul.u32 %v2477_v5, %v2468_v63  ;;  %v2195_v62 = vpop.permute.xlu0 %2194 }
 0x115   : > { %v2247_v4 = vshll.u32 %v12678_v50, %v2235_v52  ;;  %v2248_v18 = vshrl.u32 %v12676_v53, %v9216_v8  ;;  %v9230_v46 = vshrl.u32 %v2233_v36, 5  ;;  %v2238_v37 = vshll.u32 %v12680_v40, %v2235_v52 }
 0x116   : > { %v12849_v51 = vmov 2475754826   ;;  %v12850_v54 = vmov 2131351028   ;;  %v9235_v30 = vadd.s32 %v2488_v49, %v2484_v58  ;;  %v2245_v6 = vshrl.u32 %v12678_v50, %v9216_v8 }
 0x117   : > { %v2241_v14 = vshll.u32 %v12849_v51, %v2235_v52  ;;  %v2244_v39 = vshll.u32 %v12850_v54, %v2235_v52  ;;  %v2239_v60 = vshrl.u32 %v12849_v51, %v9216_v8  ;;  %v2242_v5 = vshrl.u32 %v12850_v54, %v9216_v8 }
 0x118   : > { %8496 = vsinq.f32 %v9113_v28  ;;  %v426_v32 = vand.u32 2147483647, %v425_v13  ;;  %v2250_v36 = vshll.u32 %v12676_v53, %v2235_v52  ;;  %v2251_v35 = vshrl.u32 %v12674_v56, %v9216_v8 }
 0x119   : > { %v741_v59 = vmul.f32 %v740_v19, %v738_v7  ;;  %v9249_v1 = vsel %vm9194_vm0, 0, %v745_v27  ;;  %v2228_v26 = vand.u32 8388607, %v12673_v55  ;;  %v2249_v57 = vor.u32 %v2248_v18, %v2247_v4 }
 0x11a   : > { %12851 = vst [vmem:[#allocation13_spill] sm:$0xff] %v9249_v1  ;;  %v9254_v47 = vsel %vm7892_vm2, 0, %v7891_v29  ;;  %v7907_v63 = vadd.s32 4294967294, %v934_v3  ;;  %v2386_v28 = vadd.s32 536870912, %v9225_v11  ;;  %vm2256_vm3 = vcmp.lt.s32.totalorder %v9230_v46, 4  ;;  %v9258_v52 = vpop.eup %8494 }
 0x11b   : > { %12852 = vst [vmem:[#allocation14_spill] sm:$0xff] %v9258_v52  ;;  %v2490_v13 = vadd.s32 536870912, %v9235_v30  ;;  %v2240_v7 = vor.u32 %v2239_v60, %v2238_v37  ;;  %v2243_v19 = vor.u32 %v2242_v5, %v2241_v14  ;;  %v2246_v27 = vor.u32 %v2245_v6, %v2244_v39  ;;  %v315_v39 = vpop.permute.xlu1 %314 }
 0x11c   : > { %v429_v49 = vmul.f32 %v428_v61, %v426_v32  ;;  %v2252_v58 = vor.u32 %v2251_v35, %v2250_v36  ;;  %vm2253_vm4 = vcmp.lt.s32.totalorder %v9230_v46, 1  ;;  %vm2255_vm5 = vcmp.lt.s32.totalorder %v9230_v46, 3  ;;  %v9272_v61 = vld [vmem:[%s12657_s1] ss:$0 sm:$0xff] }
 0x11d   : > { %v742_v29 = vxor.u32 2147483648, %v741_v59  ;;  %v751_v3 = vadd.s32 3, %v9249_v1  ;;  %v2229_v4 = vor.u32 8388608, %v2228_v26  ;;  %v2262_v18 = vsel %vm2256_vm3, %v2249_v57, 920167782 }
 0x11e   : > { %v526_v55 = vsub.s32 4294967266, %v9254_v47  ;;  %vm7908_vm6 = vcmp.lt.s32.totalorder %v7907_v63, 0  ;;  %v9267_v37 = vshrl.u32 %v2386_v28, 30  ;;  %v9275_v14 = vmul.f32 %v9272_v61, %v2195_v62 }
 0x11f   : > { %vm348_vm7 = vcmp.lt.s32.totalorder %v8711_v16, 0  ;;  %v9278_v60 = vshrl.u32 %v2490_v13, 30  ;;  %vm2254_vm8 = vcmp.lt.s32.totalorder %v9230_v46, 2  ;;  %v2261_v5 = vsel %vm2253_vm4, %v2240_v7, %v2243_v19 }
 0x120   : > { %12853 = vst [vmem:[#allocation15_spill] sm:$0xff] %v9267_v37  ;;  %12854 = vst [vmem:[#allocation16_spill] sm:$0xff] %v9275_v14  ;;  %v2263_v6 = vsel %vm2255_vm5, %v2246_v27, %v2262_v18  ;;  %v430_v32 = vxor.u32 2147483648, %v429_v49  ;;  %v522_v36 = vsub.s32 32, %v9254_v47  ;;  %v2265_v35 = vsel %vm2253_vm4, %v2243_v19, %v2246_v27 }
 0x121   : > { %v2266_v26 = vsel %vm2256_vm3, %v2252_v58, 1326507024  ;;  %v743_v28 = vsel %vm660_vm10, %v742_v29, %v741_v59  ;;  %v9294_v62 = vshll.u32 %v2229_v4, 8  ;;  %v9297_v56 = vmul.f32 %v9272_v61, %v315_v39 }
 0x122   : > { %v2267_v13 = vsel %vm2255_vm5, %v2249_v57, %v2266_v26  ;;  %v9299_v18 = vpop.eup %8496  ;;  %v506_v53 = vadd.s32 %v8931_v2, %v8948_v24  ;;  %v527_v50 = vadd.s32 127, %v526_v55  ;;  %v9304_v40 = vsel %vm7908_vm6, 0, %v7907_v63 }
 0x123   : > { %12855 = vst [vmem:[#allocation17_spill] sm:$0xff] %v9297_v56  ;;  %12856 = vst [vmem:[#allocation18_spill] sm:$0xff] %v9299_v18  ;;  %v2264_v59 = vsel %vm2254_vm8, %v2261_v5, %v2263_v6  ;;  %v2388_v58 = vshll.u32 %v9267_v37, 30  ;;  %v2492_v57 = vshll.u32 %v9278_v60, 30  ;;  %v2268_v29 = vsel %vm2254_vm8, %v2265_v35, %v2267_v13 }
 0x124   : > { %v2536_v4 = vand.u32 2139095040, %v9275_v14  ;;  %v746_v2 = vsel %vm9194_vm0, %v8717_v22, %v743_v28  ;;  %v523_v24 = vshll.u32 %v9083_v21, %v9254_v47  ;;  %v524_v55 = vshrl.u32 %v506_v53, %v522_v36 }
 0x125   : > { %v12857_v63 = vmov 683565275   ;;  %v9321_v5 = vmul.u32.u64.low %v9294_v62, %v2264_v59  ;;  %v9322_v6 = vmul.u32.u64.high %v9294_v62, %v2264_v59, %v9321_v5  ;;  %v765_v35 = vand.u32 2139095040, %v9297_v56 }
 0x126   : > { %v2237_v39 = vshrl.u32 %v12857_v63, %v9216_v8  ;;  %v2537_v26 = vshrl.u32 %v2536_v4, 23  ;;  %v942_v13 = vsub.s32 4294967266, %v9304_v40  ;;  %v2258_v25 = vsel %vm2256_vm3, %v2246_v27, 2102212464 }
 0x127   : > { %v9330_v28 = vmul.u32.u64.low %v9294_v62, %v2268_v29  ;;  %v9331_v21 = vmul.u32.u64.high %v9294_v62, %v2268_v29, %v9330_v28  ;;  %v528_v53 = vshll.u32 %v527_v50, 23  ;;  %v9334_v8 = vsub.s32 %v9225_v11, %v2388_v58 }
 0x128   : > { %v9337_v47 = vsub.s32 %v9235_v30, %v2492_v57  ;;  %v7971_v36 = vadd.s32 4294967169, %v2537_v26  ;;  %v9341_v59 = vsel %vm348_vm7, %v430_v32, %v429_v49  ;;  %8498 = vcosq.f32 %v746_v2 }
 0x129   : > { %12858 = vst [vmem:[#allocation19_spill] sm:$0xff] %v9341_v59  ;;  %v9343_v4 = vand.u32 3, %v751_v3  ;;  %v9345_v27 = vor.u32 %v524_v55, %v523_v24  ;;  %8500 = vsinq.f32 %v746_v2  ;;  %v2257_v50 = vsel %vm2253_vm4, %v2237_v39, %v2240_v7 }
 0x12a   : > { %v2259_v11 = vsel %vm2255_vm5, %v2243_v19, %v2258_v25  ;;  %v766_v58 = vshrl.u32 %v765_v35, 23  ;;  %v922_v30 = vadd.s32 %v8995_v31, %v9007_v38  ;;  %v938_v57 = vsub.s32 32, %v9304_v40 }
 0x12b   : > { %12859 = vst [vmem:[#allocation20_spill] sm:$0xff] %v9343_v4  ;;  %v943_v49 = vadd.s32 127, %v942_v13  ;;  %v2543_v32 = vadd.s32 1, %v7971_v36  ;;  %v9354_v29 = vor.u32 4788187, %v528_v53  ;;  %v2391_v3 = vsub.s32 0, %v9334_v8 }
 0x12c   : > { %v2495_v2 = vsub.s32 0, %v9337_v47  ;;  %v12682_v24 = vand.u32 2147483647, %v9275_v14  ;;  %v2260_v55 = vsel %vm2254_vm8, %v2257_v50, %v2259_v11  ;;  %v939_v31 = vshll.u32 %v9148_v10, %v9304_v40 }
 0x12d   : > { %vm2544_vm9 = vcmp.gt.s32.totalorder %v2543_v32, 0  ;;  %v2279_v38 = vadd.s32 1, %v9322_v6  ;;  %v7901_v26 = vadd.s32 4294967169, %v766_v58  ;;  %v940_v35 = vshrl.u32 %v922_v30, %v938_v57 }
 0x12e   : > { %v2545_v39 = vsel %vm2544_vm9, %v2543_v32, 0  ;;  %v944_v13 = vshll.u32 %v943_v49, 23  ;;  %vm2278_vm10 = vc.u32 %v9331_v21, %v9321_v5  ;;  %v7964_v28 = vmin.u32 %v2391_v3, %v9334_v8 }
 0x12f   : > { %v2547_v25 = vand.u32 31, %v2545_v39  ;;  %v7968_v53 = vmin.u32 %v2495_v2, %v9337_v47  ;;  %v2276_v46 = vmul.u32 %v9294_v62, %v2260_v55  ;;  %v2540_v36 = vand.u32 8388607, %v12682_v24 }
 0x130   : > { %v9373_v40 = vshrl.u32 %v2545_v39, 5  ;;  %v2280_v58 = vsel %vm2278_vm10, %v2279_v38, %v9322_v6  ;;  %v12860_v57 = vmov 2102212464   ;;  %v772_v32 = vadd.s32 1, %v7901_v26 }
 0x131   : > { %v2548_v10 = vsub.s32 32, %v2547_v25  ;;  %v2550_v50 = vshll.u32 %v12857_v63, %v2547_v25  ;;  %v2553_v11 = vshll.u32 %v12849_v51, %v2547_v25  ;;  %v2556_v30 = vshll.u32 %v12850_v54, %v2547_v25 }
 0x132   : > { %v2559_v49 = vshll.u32 %v12860_v57, %v2547_v25  ;;  %v9380_v3 = vpop.eup %8498  ;;  %v12862_v39 = vmov 920167782   ;;  %v945_v19 = vor.u32 4788187, %v944_v13  ;;  %v2541_v37 = vor.u32 8388608, %v2540_v36 }
 0x133   : > { %12861 = vst [vmem:[#allocation21_spill] sm:$0xff] %v9380_v3  ;;  %v2551_v62 = vshrl.u32 %v12849_v51, %v2548_v10  ;;  %v2554_v2 = vshrl.u32 %v12850_v54, %v2548_v10  ;;  %v2557_v55 = vshrl.u32 %v12860_v57, %v2548_v10  ;;  %v2562_v24 = vshll.u32 %v12862_v39, %v2547_v25  ;;  %v9386_v7 = vpop.eup %8500 }
 0x134   : > { %12863 = vst [vmem:[#allocation22_spill] sm:$0xff] %v9386_v7  ;;  %v2560_v6 = vshrl.u32 %v12862_v39, %v2548_v10  ;;  %v12864_v38 = vmov 1326507024   ;;  %vm868_vm11 = vcmp.lt.s32.totalorder %v8863_v41, 0  ;;  %v2497_v26 = vclz %v7968_v53 }
 0x135   : > { %v2563_v1 = vshrl.u32 %v12864_v38, %v2548_v10  ;;  %v2552_v17 = vor.u32 %v2551_v62, %v2550_v50  ;;  %v2555_v3 = vor.u32 %v2554_v2, %v2553_v11  ;;  %vm2565_vm12 = vcmp.lt.s32.totalorder %v9373_v40, 1 }
 0x136   : > { %v2393_v4 = vclz %v7964_v28  ;;  %v9392_v22 = vadd.s32 %v2280_v58, %v2276_v46  ;;  %v2558_v52 = vor.u32 %v2557_v55, %v2556_v30  ;;  %v2561_v25 = vor.u32 %v2560_v6, %v2559_v49 }
 0x137   : > { %v2564_v15 = vor.u32 %v2563_v1, %v2562_v24  ;;  %vm2567_vm13 = vcmp.lt.s32.totalorder %v9373_v40, 3  ;;  %vm2568_vm14 = vcmp.lt.s32.totalorder %v9373_v40, 4  ;;  %vm773_vm15 = vcmp.gt.s32.totalorder %v772_v32, 0 }
 0x138   : > { %v530_v13 = vand.u32 2147483647, %v9354_v29  ;;  %vm2566_vm0 = vcmp.lt.s32.totalorder %v9373_v40, 2  ;;  %v2573_v53 = vsel %vm2565_vm12, %v2552_v17, %v2555_v3  ;;  %v9400_v36 = vshll.u32 %v2541_v37, 8 }
 0x139   : > { %v941_v28 = vor.u32 %v940_v35, %v939_v31  ;;  %v7969_v46 = vadd.s32 4294967294, %v2497_v26  ;;  %v2574_v50 = vsel %vm2568_vm14, %v2561_v25, 920167782  ;;  %v12694_v1 = vand.u32 2147483647, %v9297_v56 }
 0x13a   : > { %v2282_v24 = vadd.s32 536870912, %v9392_v22  ;;  %v2575_v11 = vsel %vm2567_vm13, %v2558_v52, %v2574_v50  ;;  %v2577_v29 = vsel %vm2565_vm12, %v2555_v3, %v2558_v52  ;;  %v774_v58 = vsel %vm773_vm15, %v772_v32, 0 }
 0x13b   : > { %v946_v30 = vand.u32 2147483647, %v945_v19  ;;  %v7965_v49 = vadd.s32 4294967294, %v2393_v4  ;;  %v2576_v37 = vsel %vm2566_vm0, %v2573_v53, %v2575_v11  ;;  %v2578_v31 = vsel %vm2568_vm14, %v2564_v15, 1326507024 }
 0x13c   : > { %v2549_v35 = vshrl.u32 %v12857_v63, %v2548_v10  ;;  %v2579_v62 = vsel %vm2567_vm13, %v2561_v25, %v2578_v31  ;;  %v9418_v2 = vmul.u32.u64.low %v9400_v36, %v2576_v37  ;;  %v9419_v55 = vmul.u32.u64.high %v9400_v36, %v2576_v37, %v9418_v2 }
 0x13d   : > { %v2570_v19 = vsel %vm2568_vm14, %v2558_v52, 2102212464  ;;  %v2580_v4 = vsel %vm2566_vm0, %v2577_v29, %v2579_v62  ;;  %v769_v32 = vand.u32 8388607, %v12694_v1  ;;  %v776_v15 = vand.u32 31, %v774_v58 }
 0x13e   : > { %v948_v6 = vcvt.s32.f32 %v941_v28  ;;  %v12865_v10 = vsub.s32 4, %v9096_v44  ;;  %vm7970_vm1 = vcmp.lt.s32.totalorder %v7969_v46, 0  ;;  %v9435_v25 = vshrl.u32 %v2282_v24, 30 }
 0x13f   : > { %v12867_v52 = vcvt.s32.f32 %v9345_v27  ;;  %v9442_v50 = vmul.u32.u64.low %v9400_v36, %v2580_v4  ;;  %v9443_v11 = vmul.u32.u64.high %v9400_v36, %v2580_v4, %v9442_v50  ;;  %v9445_v29 = vsub.s32 32, %v776_v15 }
 0x140   : > { %v9433_v26 = vsel %vm868_vm11, %v12865_v10, %v9096_v44  ;;  %12866 = vst [vmem:[#allocation23_spill] sm:$0xff] %v9435_v25  ;;  %v949_v28 = vmul.f32 %v948_v6, %v946_v30  ;;  %vm7966_vm2 = vcmp.lt.s32.totalorder %v7965_v49, 0  ;;  %v2569_v37 = vsel %vm2565_vm12, %v2549_v35, %v2552_v17 }
 0x141   : > { %v9439_v53 = vmul.f32 %v12867_v52, %v530_v13  ;;  %v2571_v44 = vsel %vm2567_vm13, %v2555_v3, %v2570_v19  ;;  %v9451_v24 = vsel %vm7970_vm1, 0, %v7969_v46  ;;  %v770_v31 = vor.u32 8388608, %v769_v32 }
 0x142   : > { %v780_v27 = vshrl.u32 %v12849_v51, %v9445_v29  ;;  %v783_v13 = vshrl.u32 %v12850_v54, %v9445_v29  ;;  %v2284_v62 = vshll.u32 %v9435_v25, 30  ;;  %v779_v30 = vshll.u32 %v12857_v63, %v776_v15 }
 0x143   : > { %v782_v4 = vshll.u32 %v12849_v51, %v776_v15  ;;  %v786_v17 = vshrl.u32 %v12860_v57, %v9445_v29  ;;  %v2572_v3 = vsel %vm2566_vm0, %v2569_v37, %v2571_v44  ;;  %v2591_v46 = vadd.s32 1, %v9419_v55  ;;  %v2199_v37 = vpop.permute.xlu0 %2198 }
 0x144   : > { %v9465_v35 = vshrl.u32 %v774_v58, 5  ;;  %v785_v19 = vshll.u32 %v12850_v54, %v776_v15  ;;  %vm2590_vm3 = vc.u32 %v9443_v11, %v9418_v2  ;;  %v9470_v32 = vor.u32 %v780_v27, %v779_v30 }
 0x145   : > { %v9472_v6 = vor.u32 %v783_v13, %v782_v4  ;;  %v788_v10 = vshll.u32 %v12860_v57, %v776_v15  ;;  %v789_v40 = vshrl.u32 %v12862_v39, %v9445_v29  ;;  %v791_v50 = vshll.u32 %v12862_v39, %v776_v15 }
 0x146   : > { %v787_v52 = vor.u32 %v786_v17, %v785_v19  ;;  %v792_v58 = vshrl.u32 %v12864_v38, %v9445_v29  ;;  %vm452_vm4 = vcmp.lt.s32.totalorder %v8787_v0, 0  ;;  %v12868_v44 = vand.u32 2147483647, %v8863_v41 }
 0x147   : > { %v950_v13 = vxor.u32 2147483648, %v949_v28  ;;  %v2396_v30 = vsel %vm7966_vm2, 0, %v7965_v49  ;;  %v2505_v4 = vsub.s32 4294967266, %v9451_v24  ;;  %v2588_v17 = vmul.u32 %v9400_v36, %v2572_v3 }
 0x148   : > { %vm9483_vm5 = vcmp.le.f32.partialorder %v12868_v44, 0.7853982  ;;  %v2592_v15 = vsel %vm2590_vm3, %v2591_v46, %v9419_v55  ;;  %v790_v19 = vor.u32 %v789_v40, %v788_v10  ;;  %v793_v1 = vor.u32 %v792_v58, %v791_v50 }
 0x149   : > { %vm794_vm6 = vcmp.lt.s32.totalorder %v9465_v35, 1  ;;  %vm797_vm8 = vcmp.lt.s32.totalorder %v9465_v35, 4  ;;  %v9497_v25 = vshll.u32 %v770_v31, 8  ;;  %v9500_v49 = vmul.f32 %v9272_v61, %v2199_v37 }
 0x14a   : > { %v802_v44 = vsel %vm794_vm6, %v9470_v32, %v9472_v6  ;;  %v9503_v36 = vsub.s32 %v9392_v22, %v2284_v62  ;;  %vm796_vm9 = vcmp.lt.s32.totalorder %v9465_v35, 3  ;;  %v803_v55 = vsel %vm797_vm8, %v790_v19, 920167782 }
 0x14b   : > { %12871 = vst [vmem:[#allocation24_spill] sm:$0xff] %v9500_v49  ;;  %v806_v3 = vsel %vm794_vm6, %v9472_v6, %v787_v52  ;;  %v9511_v46 = vadd.s32 %v2592_v15, %v2588_v17  ;;  %vm795_vm10 = vcmp.lt.s32.totalorder %v9465_v35, 2  ;;  %v804_v31 = vsel %vm796_vm9, %v787_v52, %v803_v55 }
 0x14c   : > { %v807_v22 = vsel %vm797_vm8, %v793_v1, 1326507024  ;;  %v534_v62 = vxor.u32 2147483648, %v9439_v53  ;;  %v2397_v10 = vsub.s32 32, %v2396_v30  ;;  %v805_v40 = vsel %vm795_vm10, %v802_v44, %v804_v31 }
 0x14d   : > { %v808_v50 = vsel %vm796_vm9, %v790_v19, %v807_v22  ;;  %v2401_v58 = vsub.s32 4294967266, %v2396_v30  ;;  %v9526_v17 = vmul.u32.u64.low %v9497_v25, %v805_v40  ;;  %v9527_v15 = vmul.u32.u64.high %v9497_v25, %v805_v40, %v9526_v17 }
 0x14e   : > { %v809_v37 = vsel %vm795_vm10, %v806_v3, %v808_v50  ;;  %v2381_v1 = vadd.s32 %v9139_v45, %v9156_v42  ;;  %v2506_v55 = vadd.s32 127, %v2505_v4  ;;  %v951_v19 = vsel %vm868_vm11, %v950_v13, %v949_v28 }
 0x14f   : > { %v9533_v7 = vmul.u32.u64.low %v9497_v25, %v809_v37  ;;  %v9534_v33 = vmul.u32.u64.high %v9497_v25, %v809_v37, %v9533_v7  ;;  %v2287_v44 = vsub.s32 0, %v9503_v36  ;;  %v2594_v3 = vadd.s32 536870912, %v9511_v46 }
 0x150   : > { %v2640_v31 = vand.u32 2139095040, %v9500_v49  ;;  %v9544_v22 = vsel %vm452_vm4, %v534_v62, %v9439_v53  ;;  %v9549_v42 = vsel %vm9483_vm5, 0, %v9433_v26  ;;  %vm2431_vm12 = vcmp.lt.s32.totalorder %v9016_v9, 0 }
 0x151   : > { %12872 = vst [vmem:[#allocation25_spill] sm:$0xff] %v9544_v22  ;;  %12873 = vst [vmem:[#allocation26_spill] sm:$0xff] %v9549_v42  ;;  %v2501_v45 = vsub.s32 32, %v9451_v24  ;;  %v2399_v7 = vshrl.u32 %v2381_v1, %v2397_v10  ;;  %v2402_v28 = vadd.s32 127, %v2401_v58  ;;  %v799_v13 = vsel %vm797_vm8, %v787_v52, 2102212464  ;;  %v325_v1 = vpop.permute.xlu1 %324 }
 0x152   : > { %v2641_v4 = vshrl.u32 %v2640_v31, 23  ;;  %v9558_v53 = vsel %vm9483_vm5, %v8863_v41, %v951_v19  ;;  %v12874_v62 = vand.u32 2147483647, %v9016_v9  ;;  %v2485_v40 = vadd.s32 %v9180_v48, %v9190_v12 }
 0x153   : > { %v2507_v10 = vshll.u32 %v2506_v55, 23  ;;  %v778_v50 = vshrl.u32 %v12857_v63, %v9445_v29  ;;  %v2398_v52 = vshll.u32 %v9334_v8, %v2396_v30  ;;  %v7960_v58 = vmin.u32 %v2287_v44, %v9503_v36 }
 0x154   : > { %vm9562_vm11 = vcmp.le.f32.partialorder %v12874_v62, 0.7853982  ;;  %v9572_v27 = vshrl.u32 %v2594_v3, 30  ;;  %v7975_v37 = vadd.s32 4294967169, %v2641_v4  ;;  %v2503_v19 = vshrl.u32 %v2485_v40, %v2501_v45 }
 0x155   : > { %v2515_v31 = vsub.s32 4, %v9278_v60  ;;  %v798_v62 = vsel %vm794_vm6, %v778_v50, %v9470_v32  ;;  %v800_v48 = vsel %vm796_vm9, %v9472_v6, %v799_v13  ;;  %v9581_v12 = vor.u32 %v2399_v7, %v2398_v52 }
 0x156   : > { %v2403_v8 = vshll.u32 %v2402_v28, 23  ;;  %v820_v29 = vadd.s32 1, %v9527_v15  ;;  %v2647_v30 = vadd.s32 1, %v7975_v37  ;;  %v2502_v55 = vshll.u32 %v9337_v47, %v9451_v24 }
 0x157   : > { %v2508_v44 = vor.u32 4788187, %v2507_v10  ;;  %vm819_vm13 = vc.u32 %v9534_v33, %v9526_v17  ;;  %v9589_v3 = vmul.f32 %v9272_v61, %v325_v1  ;;  %v2289_v32 = vclz %v7960_v58 }
 0x158   : > { %v2596_v45 = vshll.u32 %v9572_v27, 30  ;;  %v801_v6 = vsel %vm795_vm10, %v798_v62, %v800_v48  ;;  %vm2648_vm14 = vcmp.gt.s32.totalorder %v2647_v30, 0  ;;  %8502 = vcosq.f32 %v9558_v53 }
 0x159   : > { %12877 = vst [vmem:[#allocation27_spill] sm:$0xff] %v9589_v3  ;;  %v2504_v7 = vor.u32 %v2503_v19, %v2502_v55  ;;  %v2516_v47 = vsel %vm2431_vm12, %v2515_v31, %v9278_v60  ;;  %v2649_v24 = vsel %vm2648_vm14, %v2647_v30, 0  ;;  %v2404_v28 = vor.u32 4788187, %v2403_v8 }
 0x15a   : > { %v821_v13 = vsel %vm819_vm13, %v820_v29, %v9527_v15  ;;  %v12699_v4 = vand.u32 2147483647, %v9500_v49  ;;  %v2651_v40 = vand.u32 31, %v2649_v24  ;;  %v2407_v10 = vcvt.s32.f32 %v9581_v12 }
 0x15b   : > { %v2509_v50 = vand.u32 2147483647, %v2508_v44  ;;  %v817_v35 = vmul.u32 %v9497_v25, %v801_v6  ;;  %v973_v52 = vand.u32 2139095040, %v9589_v3  ;;  %v9605_v58 = vsel %vm9562_vm11, 0, %v2516_v47 }
 0x15c   : > { %12878 = vst [vmem:[#allocation28_spill] sm:$0xff] %v9605_v58  ;;  %v7961_v37 = vadd.s32 4294967294, %v2289_v32  ;;  %v9608_v60 = vsub.s32 %v9511_v46, %v2596_v45  ;;  %v2652_v1 = vsub.s32 32, %v2651_v40  ;;  %v2511_v15 = vcvt.s32.f32 %v2504_v7 }
 0x15d   : > { %v9610_v19 = vadd.s32 %v821_v13, %v817_v35  ;;  %v2654_v31 = vshll.u32 %v12857_v63, %v2651_v40  ;;  %v2657_v62 = vshll.u32 %v12849_v51, %v2651_v40  ;;  %v2644_v25 = vand.u32 8388607, %v12699_v4 }
 0x15e   : > { %v9616_v48 = vshrl.u32 %v2649_v24, 5  ;;  %v2655_v12 = vshrl.u32 %v12849_v51, %v2652_v1  ;;  %v2658_v8 = vshrl.u32 %v12850_v54, %v2652_v1  ;;  %v2405_v29 = vand.u32 2147483647, %v2404_v28 }
 0x15f   : > { %v9620_v46 = vmul.f32 %v2511_v15, %v2509_v50  ;;  %v2660_v30 = vshll.u32 %v12850_v54, %v2651_v40  ;;  %v974_v55 = vshrl.u32 %v973_v52, 23  ;;  %vm7962_vm15 = vcmp.lt.s32.totalorder %v7961_v37, 0 }
 0x160   : > { %v2599_v44 = vsub.s32 0, %v9608_v60  ;;  %v2661_v32 = vshrl.u32 %v12860_v57, %v2652_v1  ;;  %v2663_v45 = vshll.u32 %v12860_v57, %v2651_v40  ;;  %v823_v6 = vadd.s32 536870912, %v9610_v19 }
 0x161   : > { %v2656_v7 = vor.u32 %v2655_v12, %v2654_v31  ;;  %v2659_v47 = vor.u32 %v2658_v8, %v2657_v62  ;;  %v2664_v24 = vshrl.u32 %v12862_v39, %v2652_v1  ;;  %v2645_v13 = vor.u32 8388608, %v2644_v25 }
 0x162   : > { %v2666_v28 = vshll.u32 %v12862_v39, %v2651_v40  ;;  %v2667_v50 = vshrl.u32 %v12864_v38, %v2652_v1  ;;  %vm2669_vm0 = vcmp.lt.s32.totalorder %v9616_v48, 1  ;;  %v9631_v35 = vpop.eup %8502  ;;  %v9633_v52 = vsel %vm7962_vm15, 0, %v7961_v37 }
 0x163   : > { %12879 = vst [vmem:[#allocation29_spill] sm:$0xff] %v9631_v35  ;;  %v2662_v15 = vor.u32 %v2661_v32, %v2660_v30  ;;  %v2665_v4 = vor.u32 %v2664_v24, %v2663_v45  ;;  %v7909_v41 = vadd.s32 4294967169, %v974_v55  ;;  %v7972_v42 = vmin.u32 %v2599_v44, %v9608_v60 }
 0x164   : > { %v2668_v31 = vor.u32 %v2667_v50, %v2666_v28  ;;  %vm2671_vm1 = vcmp.lt.s32.totalorder %v9616_v48, 3  ;;  %vm2672_vm2 = vcmp.lt.s32.totalorder %v9616_v48, 4  ;;  %v9638_v62 = vshrl.u32 %v823_v6, 30 }
 0x165   : > { %vm2670_vm3 = vcmp.lt.s32.totalorder %v9616_v48, 2  ;;  %v2677_v40 = vsel %vm2669_vm0, %v2656_v7, %v2659_v47  ;;  %v2297_v25 = vsub.s32 4294967266, %v9633_v52  ;;  %v2678_v12 = vsel %vm2672_vm2, %v2665_v4, 920167782 }
 0x166   : > { %v2682_v8 = vsel %vm2672_vm2, %v2668_v31, 1326507024  ;;  %v2685_v30 = vshll.u32 %v2645_v13, 8  ;;  %v2653_v55 = vshrl.u32 %v12857_v63, %v2652_v1  ;;  %v2679_v44 = vsel %vm2671_vm1, %v2662_v15, %v2678_v12 }
 0x167   : > { %v2681_v32 = vsel %vm2669_vm0, %v2659_v47, %v2662_v15  ;;  %v980_v45 = vadd.s32 1, %v7909_v41  ;;  %v2601_v6 = vclz %v7972_v42  ;;  %v2674_v24 = vsel %vm2672_vm2, %v2662_v15, 2102212464 }
 0x168   : > { %v2680_v28 = vsel %vm2670_vm3, %v2677_v40, %v2679_v44  ;;  %v2683_v50 = vsel %vm2671_vm1, %v2665_v4, %v2682_v8  ;;  %v9654_v37 = vmul.f32 %v2407_v10, %v2405_v29  ;;  %v2513_v13 = vxor.u32 2147483648, %v9620_v46 }
 0x169   : > { %v2522_v1 = vadd.s32 3, %v9605_v58  ;;  %v825_v31 = vshll.u32 %v9638_v62, 30  ;;  %v2298_v12 = vadd.s32 127, %v2297_v25  ;;  %v2684_v41 = vsel %vm2670_vm3, %v2681_v32, %v2683_v50 }
 0x16a   : > { %v9661_v42 = vmul.u32.u64.low %v2685_v30, %v2680_v28  ;;  %v9662_v15 = vmul.u32.u64.high %v2685_v30, %v2680_v28, %v9661_v42  ;;  %v2673_v40 = vsel %vm2669_vm0, %v2653_v55, %v2656_v7  ;;  %v2675_v4 = vsel %vm2671_vm1, %v2659_v47, %v2674_v24  ;;  %v2211_v55 = vpop.permute.xlu0 %2210 }
 0x16b   : > { %v12880_v10 = vand.u32 2147483647, %v9589_v3  ;;  %vm981_vm5 = vcmp.gt.s32.totalorder %v980_v45, 0  ;;  %v7973_v8 = vadd.s32 4294967294, %v2601_v6  ;;  %8504 = vsinq.f32 %v9558_v53 }
 0x16c   : > { %v9671_v44 = vmul.u32.u64.low %v2685_v30, %v2684_v41  ;;  %v9672_v25 = vmul.u32.u64.high %v2685_v30, %v2684_v41, %v9671_v44  ;;  %v982_v35 = vsel %vm981_vm5, %v980_v45, 0  ;;  %v9675_v32 = vand.u32 3, %v2522_v1 }
 0x16d   : > { %v977_v29 = vand.u32 8388607, %v12880_v10  ;;  %v9678_v28 = vsub.s32 %v9610_v19, %v825_v31  ;;  %v984_v7 = vand.u32 31, %v982_v35  ;;  %v2277_v24 = vadd.s32 %v9321_v5, %v9331_v21 }
 0x16e   : > { %12881 = vst [vmem:[#allocation30_spill] sm:$0xff] %v9675_v32  ;;  %v2676_v6 = vsel %vm2670_vm3, %v2673_v40, %v2675_v4  ;;  %v2695_v50 = vadd.s32 1, %v9662_v15  ;;  %v2514_v53 = vsel %vm2431_vm12, %v2513_v13, %v9620_v46  ;;  %v2293_v45 = vsub.s32 32, %v9633_v52 }
 0x16f   : > { %v2299_v19 = vshll.u32 %v2298_v12, 23  ;;  %v985_v1 = vsub.s32 32, %v984_v7  ;;  %vm7974_vm6 = vcmp.lt.s32.totalorder %v7973_v8, 0  ;;  %vm2694_vm8 = vc.u32 %v9672_v25, %v9661_v42 }
 0x170   : > { %v978_v31 = vor.u32 8388608, %v977_v29  ;;  %v9693_v5 = vmul.f32 %v9272_v61, %v2211_v55  ;;  %v828_v21 = vsub.s32 0, %v9678_v28  ;;  %v2692_v48 = vmul.u32 %v2685_v30, %v2676_v6 }
 0x171   : > { %v987_v41 = vshll.u32 %v12857_v63, %v984_v7  ;;  %v988_v40 = vshrl.u32 %v12849_v51, %v985_v1  ;;  %v2696_v46 = vsel %vm2694_vm8, %v2695_v50, %v9662_v15  ;;  %v990_v13 = vshll.u32 %v12849_v51, %v984_v7 }
 0x172   : > { %12882 = vst [vmem:[#allocation31_spill] sm:$0xff] %v9693_v5  ;;  %v991_v12 = vshrl.u32 %v12850_v54, %v985_v1  ;;  %v994_v4 = vshrl.u32 %v12860_v57, %v985_v1  ;;  %v983_v10 = vshrl.u32 %v982_v35, 5  ;;  %v993_v29 = vshll.u32 %v12850_v54, %v984_v7 }
 0x173   : > { %v996_v44 = vshll.u32 %v12860_v57, %v984_v7  ;;  %v997_v55 = vshrl.u32 %v12862_v39, %v985_v1  ;;  %v989_v30 = vor.u32 %v988_v40, %v987_v41  ;;  %v1000_v47 = vshrl.u32 %v12864_v38, %v985_v1 }
 0x174   : > { %v992_v6 = vor.u32 %v991_v12, %v990_v13  ;;  %v2952_v58 = vand.u32 2139095040, %v9693_v5  ;;  %vm12776_vm9 = vcmp.lt.s32.totalorder %v8966_v20, 0  ;;  %v9708_v15 = vadd.s32 %v2696_v46, %v2692_v48 }
 0x175   : > { %v995_v50 = vor.u32 %v994_v4, %v993_v29  ;;  %v998_v32 = vor.u32 %v997_v55, %v996_v44  ;;  %v999_v35 = vshll.u32 %v12862_v39, %v984_v7  ;;  %v9714_v18 = vsel %vm9562_vm11, %v9016_v9, %v2514_v53  ;;  %v9719_v13 = vpop.eup %8504 }
 0x176   : > { %v2295_v22 = vshrl.u32 %v2277_v24, %v2293_v45  ;;  %v9716_v41 = vor.u32 4788187, %v2299_v19  ;;  %v2604_v40 = vsel %vm7974_vm6, 0, %v7973_v8  ;;  %12883 = vst [vmem:[#allocation32_spill] sm:$0xff] %v9719_v13  ;;  %v7902_v12 = vmin.u32 %v828_v21, %v9678_v28 }
 0x177   : > { %v1001_v48 = vor.u32 %v1000_v47, %v999_v35  ;;  %vm1002_vm10 = vcmp.lt.s32.totalorder %v983_v10, 1  ;;  %v1018_v46 = vshll.u32 %v978_v31, 8  ;;  %v986_v4 = vshrl.u32 %v12857_v63, %v985_v1 }
 0x178   : > { %vm1005_vm12 = vcmp.lt.s32.totalorder %v983_v10, 4  ;;  %v1010_v7 = vsel %vm1002_vm10, %v989_v30, %v992_v6  ;;  %v2953_v29 = vshrl.u32 %v2952_v58, 23  ;;  %v2698_v26 = vadd.s32 536870912, %v9708_v15 }
 0x179   : > { %vm1004_vm11 = vcmp.lt.s32.totalorder %v983_v10, 3  ;;  %v1007_v24 = vsel %vm1005_vm12, %v995_v50, 2102212464  ;;  %v1011_v53 = vsel %vm1005_vm12, %v998_v32, 920167782  ;;  %v2605_v45 = vsub.s32 32, %v2604_v40 }
 0x17a   : > { %vm1003_vm13 = vcmp.lt.s32.totalorder %v983_v10, 2  ;;  %v1012_v8 = vsel %vm1004_vm11, %v995_v50, %v1011_v53  ;;  %v1014_v19 = vsel %vm1002_vm10, %v992_v6, %v995_v50  ;;  %v2609_v44 = vsub.s32 4294967266, %v2604_v40 }
 0x17b   : > { %v1006_v55 = vsel %vm1002_vm10, %v986_v4, %v989_v30  ;;  %v1013_v47 = vsel %vm1003_vm13, %v1010_v7, %v1012_v8  ;;  %v1015_v21 = vsel %vm1005_vm12, %v1001_v48, 1326507024  ;;  %v1008_v31 = vsel %vm1004_vm11, %v992_v6, %v1007_v24 }
 0x17c   : > { %v1016_v35 = vsel %vm1004_vm11, %v998_v32, %v1015_v21  ;;  %v9725_v1 = vmul.u32.u64.low %v1018_v46, %v1013_v47  ;;  %v9726_v13 = vmul.u32.u64.high %v1018_v46, %v1013_v47, %v9725_v1  ;;  %v830_v58 = vclz %v7902_v12 }
 0x17d   : > { %v9729_v9 = vshrl.u32 %v2698_v26, 30  ;;  %v1017_v43 = vsel %vm1003_vm13, %v1014_v19, %v1016_v35  ;;  %v7987_v0 = vadd.s32 4294967169, %v2953_v29  ;;  %v12884_v50 = vxor.u32 2147483648, %v9654_v37  ;;  %v330_v26 = vpop.permute.xlu1 %329 }
 0x17e   : > { %v2294_v32 = vshll.u32 %v9503_v36, %v9633_v52  ;;  %v9741_v6 = vmul.u32.u64.low %v1018_v46, %v1017_v43  ;;  %v9742_v48 = vmul.u32.u64.high %v1018_v46, %v1017_v43, %v9741_v6  ;;  %v2589_v12 = vadd.s32 %v9418_v2, %v9443_v11 }
 0x17f   : > { %v9737_v30 = vsel %vm12776_vm9, %v12884_v50, %v9654_v37  ;;  %v2610_v4 = vadd.s32 127, %v2609_v44  ;;  %v1009_v7 = vsel %vm1003_vm13, %v1006_v55, %v1008_v31  ;;  %v2959_v29 = vadd.s32 1, %v7987_v0 }
 0x180   : > { %12885 = vst [vmem:[#allocation33_spill] sm:$0xff] %v9737_v30  ;;  %8506 = vcosq.f32 %v9714_v18  ;;  %v9748_v24 = vor.u32 %v2295_v22, %v2294_v32  ;;  %v1028_v53 = vadd.s32 1, %v9726_v13  ;;  %v2607_v36 = vshrl.u32 %v2589_v12, %v2605_v45 }
 0x181   : > { %v7903_v52 = vadd.s32 4294967294, %v830_v58  ;;  %v2700_v43 = vshll.u32 %v9729_v9, 30  ;;  %vm2960_vm14 = vcmp.gt.s32.totalorder %v2959_v29, 0  ;;  %v1025_v8 = vmul.u32 %v1018_v46, %v1009_v7 }
 0x182   : > { %vm1027_vm15 = vc.u32 %v9742_v48, %v9725_v1  ;;  %v2961_v2 = vsel %vm2960_vm14, %v2959_v29, 0  ;;  %v9756_v0 = vmul.f32 %v9272_v61, %v330_v26  ;;  %v2606_v11 = vshll.u32 %v9608_v60, %v2604_v40 }
 0x183   : > { %v2611_v22 = vshll.u32 %v2610_v4, 23  ;;  %v1029_v10 = vsel %vm1027_vm15, %v1028_v53, %v9726_v13  ;;  %v2963_v19 = vand.u32 31, %v2961_v2  ;;  %v818_v44 = vadd.s32 %v9526_v17, %v9534_v33 }
 0x184   : > { %v1030_v55 = vadd.s32 %v1029_v10, %v1025_v8  ;;  %v12714_v46 = vand.u32 2147483647, %v9693_v5  ;;  %v9764_v47 = vor.u32 %v2607_v36, %v2606_v11  ;;  %vm7904_vm0 = vcmp.lt.s32.totalorder %v7903_v52, 0 }
 0x185   : > { %v9767_v21 = vsub.s32 %v9708_v15, %v2700_v43  ;;  %v2964_v31 = vsub.s32 32, %v2963_v19  ;;  %v2966_v40 = vshll.u32 %v12857_v63, %v2963_v19  ;;  %v2969_v13 = vshll.u32 %v12849_v51, %v2963_v19 }
 0x186   : > { %v1031_v60 = vadd.s32 536870912, %v1030_v55  ;;  %v1077_v35 = vand.u32 2139095040, %v9756_v0  ;;  %v9772_v58 = vor.u32 4788187, %v2611_v22  ;;  %v2972_v50 = vshll.u32 %v12850_v54, %v2963_v19 }
 0x187   : > { %v2967_v33 = vshrl.u32 %v12849_v51, %v2964_v31  ;;  %v2970_v17 = vshrl.u32 %v12850_v54, %v2964_v31  ;;  %v9777_v32 = vsel %vm7904_vm0, 0, %v7903_v52  ;;  %v2956_v6 = vand.u32 8388607, %v12714_v46 }
 0x188   : > { %v9779_v15 = vshrl.u32 %v1031_v60, 30  ;;  %v2973_v12 = vshrl.u32 %v12860_v57, %v2964_v31  ;;  %v2703_v4 = vsub.s32 0, %v9767_v21  ;;  %v2962_v7 = vshrl.u32 %v2961_v2, 5 }
 0x189   : > { %v2975_v29 = vshll.u32 %v12860_v57, %v2963_v19  ;;  %v2976_v26 = vshrl.u32 %v12862_v39, %v2964_v31  ;;  %v2968_v52 = vor.u32 %v2967_v33, %v2966_v40  ;;  %v2971_v43 = vor.u32 %v2970_v17, %v2969_v13 }
 0x18a   : > { %v9787_v53 = vpop.eup %8506  ;;  %v1033_v36 = vshll.u32 %v9779_v15, 30  ;;  %v1078_v8 = vshrl.u32 %v1077_v35, 23  ;;  %v2974_v11 = vor.u32 %v2973_v12, %v2972_v50  ;;  %v2978_v10 = vshll.u32 %v12862_v39, %v2963_v19 }
 0x18b   : > { %12886 = vst [vmem:[#allocation34_spill] sm:$0xff] %v9787_v53  ;;  %v2977_v22 = vor.u32 %v2976_v26, %v2975_v29  ;;  %v2979_v60 = vshrl.u32 %v12864_v38, %v2964_v31  ;;  %v2613_v46 = vand.u32 2147483647, %v9772_v58  ;;  %v834_v2 = vsub.s32 32, %v9777_v32 }
 0x18c   : > { %v838_v45 = vsub.s32 4294967266, %v9777_v32  ;;  %v2957_v37 = vor.u32 8388608, %v2956_v6  ;;  %v7976_v53 = vmin.u32 %v2703_v4, %v9767_v21  ;;  %v2965_v30 = vshrl.u32 %v12857_v63, %v2964_v31 }
 0x18d   : > { %v2980_v40 = vor.u32 %v2979_v60, %v2978_v10  ;;  %vm2981_vm1 = vcmp.lt.s32.totalorder %v2962_v7, 1  ;;  %v9797_v13 = vsub.s32 %v1030_v55, %v1033_v36  ;;  %vm2982_vm2 = vcmp.lt.s32.totalorder %v2962_v7, 2 }
 0x18e   : > { %vm2983_vm3 = vcmp.lt.s32.totalorder %v2962_v7, 3  ;;  %vm2984_vm5 = vcmp.lt.s32.totalorder %v2962_v7, 4  ;;  %vm2535_vm6 = vcmp.lt.s32.totalorder %v9275_v14, 0  ;;  %v2989_v35 = vsel %vm2981_vm1, %v2968_v52, %v2971_v43 }
 0x18f   : > { %v2986_v19 = vsel %vm2984_vm5, %v2974_v11, 2102212464  ;;  %v2990_v58 = vsel %vm2984_vm5, %v2977_v22, 920167782  ;;  %v7913_v33 = vadd.s32 4294967169, %v1078_v8  ;;  %v836_v17 = vshrl.u32 %v818_v44, %v834_v2 }
 0x190   : > { %v839_v50 = vadd.s32 127, %v838_v45  ;;  %v2991_v6 = vsel %vm2983_vm3, %v2974_v11, %v2990_v58  ;;  %v2997_v12 = vshll.u32 %v2957_v37, 8  ;;  %v2705_v31 = vclz %v7976_v53 }
 0x191   : > { %v2992_v4 = vsel %vm2982_vm2, %v2989_v35, %v2991_v6  ;;  %v2993_v55 = vsel %vm2981_vm1, %v2971_v43, %v2974_v11  ;;  %v2994_v29 = vsel %vm2984_vm5, %v2980_v40, 1326507024  ;;  %v1036_v26 = vsub.s32 0, %v9797_v13 }
 0x192   : > { %v2985_v36 = vsel %vm2981_vm1, %v2965_v30, %v2968_v52  ;;  %v2987_v10 = vsel %vm2983_vm3, %v2971_v43, %v2986_v19  ;;  %v2995_v60 = vsel %vm2983_vm3, %v2977_v22, %v2994_v29  ;;  %v1084_v37 = vadd.s32 1, %v7913_v33  ;;  %v4061_v22 = vpop.permute.xlu0 %4060 }
 0x193   : > { %v2996_v44 = vsel %vm2982_vm2, %v2993_v55, %v2995_v60  ;;  %v9809_v45 = vmul.u32.u64.low %v2997_v12, %v2992_v4  ;;  %v9810_v8 = vmul.u32.u64.high %v2997_v12, %v2992_v4, %v9809_v45  ;;  %v2615_v53 = vcvt.s32.f32 %v9764_v47 }
 0x194   : > { %v9814_v2 = vmul.u32.u64.low %v2997_v12, %v2996_v44  ;;  %v9815_v11 = vmul.u32.u64.high %v2997_v12, %v2996_v44, %v9814_v2  ;;  %v12716_v40 = vand.u32 2147483647, %v9756_v0  ;;  %v2303_v30 = vcvt.s32.f32 %v9748_v24 }
 0x195   : > { %v835_v52 = vshll.u32 %v9678_v28, %v9777_v32  ;;  %v7977_v43 = vadd.s32 4294967294, %v2705_v31  ;;  %vm1085_vm8 = vcmp.gt.s32.totalorder %v1084_v37, 0  ;;  %v9821_v19 = vmul.f32 %v2615_v53, %v2613_v46 }
 0x196   : > { %v840_v35 = vshll.u32 %v839_v50, 23  ;;  %v2988_v58 = vsel %vm2982_vm2, %v2985_v36, %v2987_v10  ;;  %v1086_v33 = vsel %vm1085_vm8, %v1084_v37, 0  ;;  %8508 = vsinq.f32 %v9714_v18 }
 0x197   : > { %v9825_v47 = vor.u32 %v836_v17, %v835_v52  ;;  %v7910_v6 = vmin.u32 %v1036_v26, %v9797_v13  ;;  %v3007_v24 = vadd.s32 1, %v9810_v8  ;;  %v12887_v4 = vand.u32 2147483647, %v9716_v41 }
 0x198   : > { %v12888_v46 = vsub.s32 4, %v9572_v27  ;;  %v1081_v18 = vand.u32 8388607, %v12716_v40  ;;  %v9843_v7 = vmul.f32 %v9272_v61, %v4061_v22  ;;  %vm7978_vm10 = vcmp.lt.s32.totalorder %v7977_v43, 0 }
 0x199   : > { %v9831_v28 = vmul.f32 %v2303_v30, %v12887_v4  ;;  %v3004_v17 = vmul.u32 %v2997_v12, %v2988_v58  ;;  %vm3006_vm12 = vc.u32 %v9815_v11, %v9809_v45  ;;  %v1088_v41 = vand.u32 31, %v1086_v33 }
 0x19a   : > { %v9838_v32 = vsel %vm2535_vm6, %v12888_v46, %v9572_v27  ;;  %12889 = vst [vmem:[#allocation35_spill] sm:$0xff] %v9843_v7  ;;  %v2617_v50 = vxor.u32 2147483648, %v9821_v19  ;;  %v9848_v31 = vor.u32 4788187, %v840_v35  ;;  %v848_v55 = vsub.s32 4, %v9638_v62 }
 0x19b   : > { %v3008_v27 = vsel %vm3006_vm12, %v3007_v24, %v9810_v8  ;;  %v844_v29 = vcvt.s32.f32 %v9825_v47  ;;  %v1038_v26 = vclz %v7910_v6  ;;  %v1089_v61 = vsub.s32 32, %v1088_v41 }
 0x19c   : > { %v9853_v36 = vadd.s32 %v3008_v27, %v3004_v17  ;;  %v9855_v10 = vsel %vm7978_vm10, 0, %v7977_v43  ;;  %v1082_v12 = vor.u32 8388608, %v1081_v18  ;;  %v9857_v60 = vshrl.u32 %v1086_v33, 5 }
 0x19d   : > { %v4202_v44 = vand.u32 2139095040, %v9843_v7  ;;  %v1091_v37 = vshll.u32 %v12857_v63, %v1088_v41  ;;  %v1092_v53 = vshrl.u32 %v12849_v51, %v1089_v61  ;;  %v1094_v2 = vshll.u32 %v12849_v51, %v1088_v41 }
 0x19e   : > { %v1095_v8 = vshrl.u32 %v12850_v54, %v1089_v61  ;;  %v1097_v30 = vshll.u32 %v12850_v54, %v1088_v41  ;;  %v1098_v52 = vshrl.u32 %v12860_v57, %v1089_v61  ;;  %v1100_v43 = vshll.u32 %v12860_v57, %v1088_v41 }
 0x19f   : > { %v1101_v22 = vshrl.u32 %v12862_v39, %v1089_v61  ;;  %v7911_v35 = vadd.s32 4294967294, %v1038_v26  ;;  %v3010_v58 = vadd.s32 536870912, %v9853_v36  ;;  %v1093_v33 = vor.u32 %v1092_v53, %v1091_v37 }
 0x1a0   : > { %v1096_v6 = vor.u32 %v1095_v8, %v1094_v2  ;;  %v12890_v24 = vand.u32 2147483647, %v9275_v14  ;;  %v1099_v46 = vor.u32 %v1098_v52, %v1097_v30  ;;  %v1103_v17 = vshll.u32 %v12862_v39, %v1088_v41  ;;  %v9877_v40 = vpop.eup %8508 }
 0x1a1   : > { %v1102_v18 = vor.u32 %v1101_v22, %v1100_v43  ;;  %v1104_v27 = vshrl.u32 %v12864_v38, %v1089_v61  ;;  %12893 = vst [vmem:[#allocation36_spill] sm:$0xff] %v9877_v40  ;;  %v842_v26 = vand.u32 2147483647, %v9848_v31  ;;  %v2693_v37 = vadd.s32 %v9661_v42, %v9672_v25 }
 0x1a2   : > { %vm9871_vm11 = vcmp.le.f32.partialorder %v12890_v24, 0.7853982  ;;  %v2709_v53 = vsub.s32 32, %v9855_v10  ;;  %vm1106_vm13 = vcmp.lt.s32.totalorder %v9857_v60, 1  ;;  %v2713_v2 = vsub.s32 4294967266, %v9855_v10 }
 0x1a3   : > { %v1105_v8 = vor.u32 %v1104_v27, %v1103_v17  ;;  %vm1109_vm14 = vcmp.lt.s32.totalorder %v9857_v60, 4  ;;  %v1114_v41 = vsel %vm1106_vm13, %v1093_v33, %v1096_v6  ;;  %vm764_vm15 = vcmp.lt.s32.totalorder %v9297_v56, 0 }
 0x1a4   : > { %vm1108_vm0 = vcmp.lt.s32.totalorder %v9857_v60, 3  ;;  %v1115_v31 = vsel %vm1109_vm14, %v1102_v18, 920167782  ;;  %v9892_v42 = vshll.u32 %v1082_v12, 8  ;;  %v4203_v25 = vshrl.u32 %v4202_v44, 23 }
 0x1a5   : > { %vm7912_vm1 = vcmp.lt.s32.totalorder %v7911_v35, 0  ;;  %v9894_v30 = vshrl.u32 %v3010_v58, 30  ;;  %vm1107_vm2 = vcmp.lt.s32.totalorder %v9857_v60, 2  ;;  %v1116_v52 = vsel %vm1108_vm0, %v1099_v46, %v1115_v31 }
 0x1a6   : > { %v2711_v43 = vshrl.u32 %v2693_v37, %v2709_v53  ;;  %v1117_v22 = vsel %vm1107_vm2, %v1114_v41, %v1116_v52  ;;  %v1118_v24 = vsel %vm1106_vm13, %v1096_v6, %v1099_v46  ;;  %v1119_v12 = vsel %vm1109_vm14, %v1105_v8, 1326507024 }
 0x1a7   : > { %v2714_v17 = vadd.s32 127, %v2713_v2  ;;  %v1120_v44 = vsel %vm1108_vm0, %v1102_v18, %v1119_v12  ;;  %v9908_v58 = vmul.u32.u64.low %v9892_v42, %v1117_v22  ;;  %v9909_v27 = vmul.u32.u64.high %v9892_v42, %v1117_v22, %v9908_v58 }
 0x1a8   : > { %v9912_v31 = vsel %vm7912_vm1, 0, %v7911_v35  ;;  %v1090_v37 = vshrl.u32 %v12857_v63, %v1089_v61  ;;  %v1111_v53 = vsel %vm1109_vm14, %v1099_v46, 2102212464  ;;  %v1121_v41 = vsel %vm1107_vm2, %v1118_v24, %v1120_v44 }
 0x1a9   : > { %v3012_v2 = vshll.u32 %v9894_v30, 30  ;;  %v9921_v8 = vmul.u32.u64.low %v9892_v42, %v1121_v41  ;;  %v9922_v18 = vmul.u32.u64.high %v9892_v42, %v1121_v41, %v9921_v8  ;;  %v8037_v52 = vadd.s32 4294967169, %v4203_v25 }
 0x1aa   : > { %v2618_v61 = vsel %vm2535_vm6, %v2617_v50, %v9821_v19  ;;  %v9933_v35 = vsel %vm9871_vm11, 0, %v9838_v32  ;;  %v2710_v46 = vshll.u32 %v9767_v21, %v9855_v10  ;;  %v9939_v24 = vmul.f32 %v844_v29, %v842_v26 }
 0x1ab   : > { %12894 = vst [vmem:[#allocation37_spill] sm:$0xff] %v9933_v35  ;;  %v1110_v25 = vsel %vm1106_vm13, %v1090_v37, %v1093_v33  ;;  %v1112_v12 = vsel %vm1108_vm0, %v1096_v6, %v1111_v53  ;;  %v4209_v44 = vadd.s32 1, %v8037_v52  ;;  %v2715_v50 = vshll.u32 %v2714_v17, 23 }
 0x1ac   : > { %v9945_v19 = vor.u32 %v2711_v43, %v2710_v46  ;;  %v1046_v32 = vsub.s32 4294967266, %v9912_v31  ;;  %v12717_v41 = vand.u32 2147483647, %v9843_v7  ;;  %v9950_v21 = vadd.s32 3, %v9933_v35  ;;  %v9987_v46 = vld [vmem:[%s12657_s1] ss:$0 sm:$0xff] }
 0x1ad   : > { %v9957_v47 = vsel %vm764_vm15, %v848_v55, %v9638_v62  ;;  %v9960_v29 = vsub.s32 %v9853_v36, %v3012_v2  ;;  %vm4210_vm3 = vcmp.gt.s32.totalorder %v4209_v44, 0  ;;  %v9965_v10 = vsel %vm9871_vm11, %v9275_v14, %v2618_v61  ;;  %v2203_v36 = vpop.permute.xlu1 %2202 }
 0x1ae   : > { %v1113_v33 = vsel %vm1107_vm2, %v1110_v25, %v1112_v12  ;;  %v1132_v6 = vadd.s32 1, %v9909_v27  ;;  %v4211_v26 = vsel %vm4210_vm3, %v4209_v44, 0  ;;  %v1026_v62 = vadd.s32 %v9725_v1, %v9742_v48 }
 0x1af   : > { %vm1131_vm5 = vc.u32 %v9922_v18, %v9908_v58  ;;  %v4213_v55 = vand.u32 31, %v4211_v26  ;;  %v2716_v17 = vor.u32 4788187, %v2715_v50  ;;  %v2719_v4 = vcvt.s32.f32 %v9945_v19 }
 0x1b0   : > { %v1047_v37 = vadd.s32 127, %v1046_v32  ;;  %v4206_v60 = vand.u32 8388607, %v12717_v41  ;;  %v1042_v53 = vsub.s32 32, %v9912_v31  ;;  %v3015_v2 = vsub.s32 0, %v9960_v29 }
 0x1b1   : > { %v1129_v8 = vmul.u32 %v9892_v42, %v1113_v33  ;;  %v4214_v52 = vsub.s32 32, %v4213_v55  ;;  %v1133_v1 = vsel %vm1131_vm5, %v1132_v6, %v9909_v27  ;;  %v4216_v48 = vshll.u32 %v12857_v63, %v4213_v55 }
 0x1b2   : > { %v4219_v61 = vshll.u32 %v12849_v51, %v4213_v55  ;;  %v9990_v25 = vmul.f32 %v9987_v46, %v2203_v36  ;;  %v4222_v42 = vshll.u32 %v12850_v54, %v4213_v55  ;;  %v4225_v27 = vshll.u32 %v12860_v57, %v4213_v55 }
 0x1b3   : > { %v4217_v12 = vshrl.u32 %v12849_v51, %v4214_v52  ;;  %v4220_v44 = vshrl.u32 %v12850_v54, %v4214_v52  ;;  %v1048_v19 = vshll.u32 %v1047_v37, 23  ;;  %v4212_v50 = vshrl.u32 %v4211_v26, 5 }
 0x1b4   : > { %v4223_v32 = vshrl.u32 %v12860_v57, %v4214_v52  ;;  %v4226_v33 = vshrl.u32 %v12862_v39, %v4214_v52  ;;  %v2717_v6 = vand.u32 2147483647, %v2716_v17  ;;  %v1043_v41 = vshll.u32 %v9797_v13, %v9912_v31 }
 0x1b5   : > { %v7988_v36 = vmin.u32 %v3015_v2, %v9960_v29  ;;  %v10001_v43 = vadd.s32 %v1133_v1, %v1129_v8  ;;  %v4207_v22 = vor.u32 8388608, %v4206_v60  ;;  %v4218_v35 = vor.u32 %v4217_v12, %v4216_v48 }
 0x1b6   : > { %v4221_v14 = vor.u32 %v4220_v44, %v4219_v61  ;;  %v2744_v40 = vand.u32 2139095040, %v9990_v25  ;;  %vm2223_vm6 = vcmp.lt.s32.totalorder %v9092_v23, 0  ;;  %v4224_v26 = vor.u32 %v4223_v32, %v4222_v42 }
 0x1b7   : > { %v4227_v37 = vor.u32 %v4226_v33, %v4225_v27  ;;  %v4228_v20 = vshll.u32 %v12862_v39, %v4213_v55  ;;  %v4229_v17 = vshrl.u32 %v12864_v38, %v4214_v52  ;;  %v12895_v34 = vand.u32 2147483647, %v9297_v56 }
 0x1b8   : > { %v1044_v31 = vshrl.u32 %v1026_v62, %v1042_v53  ;;  %v1049_v60 = vor.u32 4788187, %v1048_v19  ;;  %v4215_v2 = vshrl.u32 %v12857_v63, %v4214_v52  ;;  %vm4231_vm10 = vcmp.lt.s32.totalorder %v4212_v50, 1 }
 0x1b9   : > { %vm10009_vm8 = vcmp.le.f32.partialorder %v12895_v34, 0.7853982  ;;  %v1135_v8 = vadd.s32 536870912, %v10001_v43  ;;  %v4230_v1 = vor.u32 %v4229_v17, %v4228_v20  ;;  %vm4233_vm12 = vcmp.lt.s32.totalorder %v4212_v50, 3 }
 0x1ba   : > { %vm4234_vm11 = vcmp.lt.s32.totalorder %v4212_v50, 4  ;;  %vm4232_vm13 = vcmp.lt.s32.totalorder %v4212_v50, 2  ;;  %v4239_v48 = vsel %vm4231_vm10, %v4218_v35, %v4221_v14  ;;  %v4247_v61 = vshll.u32 %v4207_v22, 8 }
 0x1bb   : > { %v4236_v55 = vsel %vm4234_vm11, %v4224_v26, 2102212464  ;;  %v3017_v12 = vclz %v7988_v36  ;;  %v4240_v44 = vsel %vm4234_vm11, %v4227_v37, 920167782  ;;  %v4243_v34 = vsel %vm4231_vm10, %v4221_v14, %v4224_v26 }
 0x1bc   : > { %v2745_v42 = vshrl.u32 %v2744_v40, 23  ;;  %v4235_v27 = vsel %vm4231_vm10, %v4215_v2, %v4218_v35  ;;  %v4237_v62 = vsel %vm4233_vm12, %v4221_v14, %v4236_v55  ;;  %v4241_v53 = vsel %vm4233_vm12, %v4224_v26, %v4240_v44 }
 0x1bd   : > { %v4244_v52 = vsel %vm4234_vm11, %v4230_v1, 1326507024  ;;  %v2720_v19 = vmul.f32 %v2719_v4, %v2717_v6  ;;  %v10017_v32 = vshrl.u32 %v1135_v8, 30  ;;  %v4242_v20 = vsel %vm4232_vm13, %v4239_v48, %v4241_v53 }
 0x1be   : > { %v4245_v33 = vsel %vm4233_vm12, %v4227_v37, %v4244_v52  ;;  %vm2639_vm14 = vcmp.lt.s32.totalorder %v9500_v49, 0  ;;  %v1045_v22 = vor.u32 %v1044_v31, %v1043_v41  ;;  %v7989_v14 = vadd.s32 4294967294, %v3017_v12 }
 0x1bf   : > { %v4246_v36 = vsel %vm4232_vm13, %v4243_v34, %v4245_v33  ;;  %v10023_v17 = vmul.u32.u64.low %v4247_v61, %v4242_v20  ;;  %v10024_v40 = vmul.u32.u64.high %v4247_v61, %v4242_v20, %v10023_v17  ;;  %v4238_v35 = vsel %vm4232_vm13, %v4235_v27, %v4237_v62  ;;  %v4077_v27 = vpop.permute.xlu0 %4076 }
 0x1c0   : > { %v10028_v26 = vmul.u32.u64.low %v4247_v61, %v4246_v36  ;;  %v10029_v4 = vmul.u32.u64.high %v4247_v61, %v4246_v36, %v10028_v26  ;;  %v12898_v6 = vxor.u32 2147483648, %v9831_v28  ;;  %v12900_v41 = vxor.u32 2147483648, %v9939_v24 }
 0x1c1   : > { %v1050_v2 = vand.u32 2147483647, %v1049_v60  ;;  %v7979_v8 = vadd.s32 4294967169, %v2745_v42  ;;  %8510 = vcosq.f32 %v9965_v10  ;;  %v10045_v50 = vand.u32 3, %v9950_v21 }
 0x1c2   : > { %v10036_v37 = vsel %vm2223_vm6, %v12898_v6, %v9831_v28  ;;  %v847_v31 = vsel %vm764_vm15, %v12900_v41, %v9939_v24  ;;  %v10050_v1 = vsel %vm10009_vm8, 0, %v9957_v47  ;;  %v1137_v28 = vshll.u32 %v10017_v32, 30 }
 0x1c3   : > { %12899 = vst [vmem:[#allocation38_spill] sm:$0xff] %v10036_v37  ;;  %12901 = vst [vmem:[#allocation39_spill] sm:$0xff] %v10045_v50  ;;  %v1052_v55 = vcvt.s32.f32 %v1045_v22  ;;  %v4254_v48 = vmul.u32 %v4247_v61, %v4238_v35  ;;  %v4257_v12 = vadd.s32 1, %v10024_v40  ;;  %v2751_v44 = vadd.s32 1, %v7979_v8 }
 0x1c4   : > { %12902 = vst [vmem:[#allocation40_spill] sm:$0xff] %v10050_v1  ;;  %v850_v24 = vsel %vm10009_vm8, %v9297_v56, %v847_v31  ;;  %v2721_v60 = vxor.u32 2147483648, %v2720_v19  ;;  %v2723_v21 = vsub.s32 4, %v9729_v9  ;;  %vm7990_vm15 = vcmp.lt.s32.totalorder %v7989_v14, 0 }
 0x1c5   : > { %8512 = vsinq.f32 %v9965_v10  ;;  %v1053_v34 = vmul.f32 %v1052_v55, %v1050_v2  ;;  %vm4256_vm0 = vc.u32 %v10029_v4, %v10023_v17  ;;  %vm2752_vm1 = vcmp.gt.s32.totalorder %v2751_v44, 0 }
 0x1c6   : > { %vm972_vm2 = vcmp.lt.s32.totalorder %v9589_v3, 0  ;;  %v10063_v47 = vsub.s32 %v10001_v43, %v1137_v28  ;;  %v4258_v61 = vsel %vm4256_vm0, %v4257_v12, %v10024_v40  ;;  %v12726_v13 = vand.u32 2147483647, %v9990_v25  ;;  %v2207_v12 = vpop.permute.xlu1 %2206 }
 0x1c7   : > { %v2753_v42 = vsel %vm2752_vm1, %v2751_v44, 0  ;;  %8514 = vcosq.f32 %v850_v24  ;;  %v10067_v62 = vsel %vm7990_vm15, 0, %v7989_v14  ;;  %v4259_v10 = vadd.s32 %v4258_v61, %v4254_v48 }
 0x1c8   : > { %v2755_v53 = vand.u32 31, %v2753_v42  ;;  %8516 = vsinq.f32 %v850_v24  ;;  %v10071_v52 = vsel %vm2639_vm14, %v2721_v60, %v2720_v19  ;;  %v10076_v43 = vsel %vm2639_vm14, %v2723_v21, %v9729_v9 }
 0x1c9   : > { %v1054_v33 = vxor.u32 2147483648, %v1053_v34  ;;  %v4260_v22 = vadd.s32 536870912, %v4259_v10  ;;  %v10080_v40 = vmul.f32 %v9987_v46, %v4077_v27  ;;  %v3025_v14 = vsub.s32 4294967266, %v10067_v62 }
 0x1ca   : > { %v2756_v36 = vsub.s32 32, %v2755_v53  ;;  %v1140_v35 = vsub.s32 0, %v10063_v47  ;;  %v2748_v19 = vand.u32 8388607, %v12726_v13  ;;  %v10086_v26 = vshrl.u32 %v2753_v42, 5 }
 0x1cb   : > { %12903 = vst [vmem:[#allocation41_spill] sm:$0xff] %v10080_v40  ;;  %v2758_v9 = vshll.u32 %v12857_v63, %v2755_v53  ;;  %v2761_v41 = vshll.u32 %v12849_v51, %v2755_v53  ;;  %v10092_v2 = vpop.eup %8510  ;;  %v2764_v8 = vshll.u32 %v12850_v54, %v2755_v53  ;;  %v2767_v55 = vshll.u32 %v12860_v57, %v2755_v53 }
 0x1cc   : > { %v2759_v6 = vshrl.u32 %v12849_v51, %v2756_v36  ;;  %v2762_v31 = vshrl.u32 %v12850_v54, %v2756_v36  ;;  %12904 = vst [vmem:[#allocation42_spill] sm:$0xff] %v10092_v2  ;;  %v2765_v28 = vshrl.u32 %v12860_v57, %v2756_v36  ;;  %v2768_v48 = vshrl.u32 %v12862_v39, %v2756_v36 }
 0x1cd   : > { %v10098_v44 = vshrl.u32 %v4260_v22, 30  ;;  %v4618_v21 = vand.u32 2139095040, %v10080_v40  ;;  %v2770_v27 = vshll.u32 %v12862_v39, %v2755_v53  ;;  %v2771_v13 = vshrl.u32 %v12864_v38, %v2756_v36 }
 0x1ce   : > { %v2760_v24 = vor.u32 %v2759_v6, %v2758_v9  ;;  %v2763_v60 = vor.u32 %v2762_v31, %v2761_v41  ;;  %v2766_v61 = vor.u32 %v2765_v28, %v2764_v8  ;;  %v2769_v42 = vor.u32 %v2768_v48, %v2767_v55 }
 0x1cf   : > { %v10103_v20 = vpop.eup %8512  ;;  %v12906_v1 = vand.u32 2147483647, %v9500_v49  ;;  %v1055_v22 = vsel %vm972_vm2, %v1054_v33, %v1053_v34  ;;  %v3005_v9 = vadd.s32 %v9809_v45, %v9815_v11  ;;  %v3021_v6 = vsub.s32 32, %v10067_v62 }
 0x1d0   : > { %12905 = vst [vmem:[#allocation43_spill] sm:$0xff] %v10103_v20  ;;  %v10117_v53 = vmul.f32 %v9987_v46, %v2207_v12  ;;  %v3026_v41 = vadd.s32 127, %v3025_v14  ;;  %v2749_v31 = vor.u32 8388608, %v2748_v19  ;;  %v2772_v8 = vor.u32 %v2771_v13, %v2770_v27 }
 0x1d1   : > { %vm10107_vm3 = vcmp.le.f32.partialorder %v12906_v1, 0.7853982  ;;  %vm2773_vm5 = vcmp.lt.s32.totalorder %v10086_v26, 1  ;;  %v10120_v1 = vpop.eup %8514  ;;  %v12911_v28 = vand.u32 2147483647, %v9589_v3  ;;  %v7914_v45 = vmin.u32 %v1140_v35, %v10063_v47 }
 0x1d2   : > { %12909 = vst [vmem:[#allocation44_spill] sm:$0xff] %v10117_v53  ;;  %12910 = vst [vmem:[#allocation45_spill] sm:$0xff] %v10120_v1  ;;  %v4262_v11 = vshll.u32 %v10098_v44, 30  ;;  %vm2776_vm10 = vcmp.lt.s32.totalorder %v10086_v26, 4  ;;  %v2781_v34 = vsel %vm2773_vm5, %v2760_v24, %v2763_v60  ;;  %v10133_v13 = vpop.eup %8516  ;;  %vm2775_vm12 = vcmp.lt.s32.totalorder %v10086_v26, 3 }
 0x1d3   : > { %vm10124_vm8 = vcmp.le.f32.partialorder %v12911_v28, 0.7853982  ;;  %12914 = vst [vmem:[#allocation46_spill] sm:$0xff] %v10133_v13  ;;  %v2778_v33 = vsel %vm2776_vm10, %v2766_v61, 2102212464  ;;  %v4619_v19 = vshrl.u32 %v4618_v21, 23  ;;  %v2757_v48 = vshrl.u32 %v12857_v63, %v2756_v36 }
 0x1d4   : > { %v2782_v14 = vsel %vm2776_vm10, %v2769_v42, 920167782  ;;  %vm2774_vm11 = vcmp.lt.s32.totalorder %v10086_v26, 2  ;;  %v2785_v12 = vsel %vm2773_vm5, %v2763_v60, %v2766_v61  ;;  %vm2951_vm13 = vcmp.lt.s32.totalorder %v9693_v5, 0 }
 0x1d5   : > { %v2783_v35 = vsel %vm2775_vm12, %v2766_v61, %v2782_v14  ;;  %v3027_v27 = vshll.u32 %v3026_v41, 23  ;;  %v2786_v1 = vsel %vm2776_vm10, %v2772_v8, 1326507024  ;;  %v2789_v13 = vshll.u32 %v2749_v31, 8 }
 0x1d6   : > { %v2784_v28 = vsel %vm2774_vm11, %v2781_v34, %v2783_v35  ;;  %v10145_v2 = vsub.s32 %v4259_v10, %v4262_v11  ;;  %v2777_v36 = vsel %vm2773_vm5, %v2757_v48, %v2760_v24  ;;  %v2779_v21 = vsel %vm2775_vm12, %v2763_v60, %v2778_v33 }
 0x1d7   : > { %v2787_v14 = vsel %vm2775_vm12, %v2769_v42, %v2786_v1  ;;  %v10155_v41 = vmul.u32.u64.low %v2789_v13, %v2784_v28  ;;  %v10156_v50 = vmul.u32.u64.high %v2789_v13, %v2784_v28, %v10155_v41  ;;  %v8053_v8 = vadd.s32 4294967169, %v4619_v19 }
 0x1d8   : > { %v2788_v61 = vsel %vm2774_vm11, %v2785_v12, %v2787_v14  ;;  %v3023_v31 = vshrl.u32 %v3005_v9, %v3021_v6  ;;  %v1142_v10 = vclz %v7914_v45  ;;  %v2725_v24 = vsel %vm10107_vm3, %v9500_v49, %v10071_v52 }
 0x1d9   : > { %v10159_v11 = vmul.u32.u64.low %v2789_v13, %v2788_v61  ;;  %v10160_v34 = vmul.u32.u64.high %v2789_v13, %v2788_v61, %v10159_v11  ;;  %v10169_v60 = vsel %vm10107_vm3, 0, %v10076_v43  ;;  %v12916_v42 = vsub.s32 4, %v9779_v15 }
 0x1da   : > { %12915 = vst [vmem:[#allocation47_spill] sm:$0xff] %v10169_v60  ;;  %v4625_v6 = vadd.s32 1, %v8053_v8  ;;  %v3022_v1 = vshll.u32 %v9960_v29, %v10067_v62  ;;  %v3028_v45 = vor.u32 4788187, %v3027_v27  ;;  %v3035_v33 = vsub.s32 4, %v9894_v30 }
 0x1db   : > { %v10176_v9 = vsel %vm972_vm2, %v12916_v42, %v9779_v15  ;;  %v2780_v52 = vsel %vm2774_vm11, %v2777_v36, %v2779_v21  ;;  %v10186_v56 = vsel %vm10124_vm8, %v9589_v3, %v1055_v22  ;;  %v4265_v43 = vsub.s32 0, %v10145_v2 }
 0x1dc   : > { %v2799_v15 = vadd.s32 1, %v10156_v50  ;;  %vm4626_vm14 = vcmp.gt.s32.totalorder %v4625_v6, 0  ;;  %v3024_v19 = vor.u32 %v3023_v31, %v3022_v1  ;;  %v7915_v48 = vadd.s32 4294967294, %v1142_v10 }
 0x1dd   : > { %v12734_v29 = vand.u32 2147483647, %v10080_v40  ;;  %v2848_v62 = vand.u32 2139095040, %v10117_v53  ;;  %8518 = vcosq.f32 %v2725_v24  ;;  %v2796_v35 = vmul.u32 %v2789_v13, %v2780_v52 }
 0x1de   : > { %vm2798_vm15 = vc.u32 %v10160_v34, %v10155_v41  ;;  %v4627_v26 = vsel %vm4626_vm14, %v4625_v6, 0  ;;  %8520 = vsinq.f32 %v2725_v24  ;;  %v3029_v22 = vand.u32 2147483647, %v3028_v45 }
 0x1df   : > { %v10197_v12 = vsel %vm2951_vm13, %v3035_v33, %v9894_v30  ;;  %v2800_v27 = vsel %vm2798_vm15, %v2799_v15, %v10156_v50  ;;  %8522 = vcosq.f32 %v10186_v56  ;;  %v8038_v28 = vmin.u32 %v4265_v43, %v10145_v2 }
 0x1e0   : > { %v2801_v36 = vadd.s32 %v2800_v27, %v2796_v35  ;;  %v4629_v21 = vand.u32 31, %v4627_v26  ;;  %v3031_v13 = vcvt.s32.f32 %v3024_v19  ;;  %vm7916_vm0 = vcmp.lt.s32.totalorder %v7915_v48, 0 }
 0x1e1   : > { %v4622_v14 = vand.u32 8388607, %v12734_v29  ;;  %v2849_v61 = vshrl.u32 %v2848_v62, 23  ;;  %v4628_v50 = vshrl.u32 %v4627_v26, 5  ;;  %v10210_v6 = vsel %vm7916_vm0, 0, %v7915_v48 }
 0x1e2   : > { %v2802_v8 = vadd.s32 536870912, %v2801_v36  ;;  %v4630_v31 = vsub.s32 32, %v4629_v21  ;;  %v4632_v10 = vshll.u32 %v12857_v63, %v4629_v21  ;;  %v4635_v30 = vshll.u32 %v12849_v51, %v4629_v21 }
 0x1e3   : > { %v10206_v11 = vmul.f32 %v3031_v13, %v3029_v22  ;;  %v4638_v24 = vshll.u32 %v12850_v54, %v4629_v21  ;;  %v4641_v42 = vshll.u32 %v12860_v57, %v4629_v21  ;;  %v4267_v1 = vclz %v8038_v28 }
 0x1e4   : > { %v4633_v45 = vshrl.u32 %v12849_v51, %v4630_v31  ;;  %v4636_v33 = vshrl.u32 %v12850_v54, %v4630_v31  ;;  %v4623_v52 = vor.u32 8388608, %v4622_v14  ;;  %v4639_v43 = vshrl.u32 %v12860_v57, %v4630_v31 }
 0x1e5   : > { %v4642_v15 = vshrl.u32 %v12862_v39, %v4630_v31  ;;  %v4644_v19 = vshll.u32 %v12862_v39, %v4629_v21  ;;  %v10217_v62 = vshrl.u32 %v2802_v8, 30  ;;  %v7983_v22 = vadd.s32 4294967169, %v2849_v61 }
 0x1e6   : > { %v4634_v35 = vor.u32 %v4633_v45, %v4632_v10  ;;  %v4637_v26 = vor.u32 %v4636_v33, %v4635_v30  ;;  %v4640_v27 = vor.u32 %v4639_v43, %v4638_v24  ;;  %v4645_v28 = vshrl.u32 %v12864_v38, %v4630_v31 }
 0x1e7   : > { %v4643_v48 = vor.u32 %v4642_v15, %v4641_v42  ;;  %vm4647_vm1 = vcmp.lt.s32.totalorder %v4628_v50, 1  ;;  %v10220_v13 = vpop.eup %8518  ;;  %v12918_v14 = vand.u32 2147483647, %v9693_v5  ;;  %v1146_v21 = vsub.s32 32, %v10210_v6 }
 0x1e8   : > { %12917 = vst [vmem:[#allocation48_spill] sm:$0xff] %v10220_v13  ;;  %v4631_v8 = vshrl.u32 %v12857_v63, %v4630_v31  ;;  %vm4649_vm3 = vcmp.lt.s32.totalorder %v4628_v50, 3  ;;  %vm4650_vm5 = vcmp.lt.s32.totalorder %v4628_v50, 4  ;;  %v10230_v61 = vpop.eup %8520  ;;  %v1150_v10 = vsub.s32 4294967266, %v10210_v6 }
 0x1e9   : > { %vm10224_vm2 = vcmp.le.f32.partialorder %v12918_v14, 0.7853982  ;;  %12921 = vst [vmem:[#allocation49_spill] sm:$0xff] %v10230_v61  ;;  %v4646_v30 = vor.u32 %v4645_v28, %v4644_v19  ;;  %vm4648_vm10 = vcmp.lt.s32.totalorder %v4628_v50, 2  ;;  %v4663_v24 = vshll.u32 %v4623_v52, 8  ;;  %v10233_v42 = vpop.eup %8522 }
 0x1ea   : > { %12922 = vst [vmem:[#allocation50_spill] sm:$0xff] %v10233_v42  ;;  %v2804_v45 = vshll.u32 %v10217_v62, 30  ;;  %v4652_v33 = vsel %vm4650_vm5, %v4640_v27, 2102212464  ;;  %v4655_v43 = vsel %vm4647_vm1, %v4634_v35, %v4637_v26  ;;  %v4656_v15 = vsel %vm4650_vm5, %v4643_v48, 920167782 }
 0x1eb   : > { %v1130_v31 = vadd.s32 %v9908_v58, %v9922_v18  ;;  %v8039_v14 = vadd.s32 4294967294, %v4267_v1  ;;  %v4657_v60 = vsel %vm4649_vm3, %v4640_v27, %v4656_v15  ;;  %v2855_v13 = vadd.s32 1, %v7983_v22 }
 0x1ec   : > { %v3033_v19 = vxor.u32 2147483648, %v10206_v11  ;;  %v4651_v52 = vsel %vm4647_vm1, %v4631_v8, %v4634_v35  ;;  %v4658_v28 = vsel %vm4648_vm10, %v4655_v43, %v4657_v60  ;;  %v4659_v49 = vsel %vm4647_vm1, %v4637_v26, %v4640_v27 }
 0x1ed   : > { %v4653_v61 = vsel %vm4649_vm3, %v4637_v26, %v4652_v33  ;;  %v4660_v42 = vsel %vm4650_vm5, %v4646_v30, 1326507024  ;;  %v10248_v3 = vmul.u32.u64.low %v4663_v24, %v4658_v28  ;;  %v10249_v20 = vmul.u32.u64.high %v4663_v24, %v4658_v28, %v10248_v3 }
 0x1ee   : > { %v1148_v58 = vshrl.u32 %v1130_v31, %v1146_v21  ;;  %v1151_v18 = vadd.s32 127, %v1150_v10  ;;  %v10252_v1 = vsub.s32 %v2801_v36, %v2804_v45  ;;  %v4661_v22 = vsel %vm4649_vm3, %v4643_v48, %v4660_v42 }
 0x1ef   : > { %vm8040_vm12 = vcmp.lt.s32.totalorder %v8039_v14, 0  ;;  %v4662_v35 = vsel %vm4648_vm10, %v4659_v49, %v4661_v22  ;;  %v12744_v60 = vand.u32 2147483647, %v10117_v53  ;;  %vm2856_vm11 = vcmp.gt.s32.totalorder %v2855_v13, 0 }
 0x1f0   : > { %v4654_v26 = vsel %vm4648_vm10, %v4651_v52, %v4653_v61  ;;  %v10258_v27 = vmul.u32.u64.low %v4663_v24, %v4662_v35  ;;  %v10259_v8 = vmul.u32.u64.high %v4663_v24, %v4662_v35, %v10258_v27  ;;  %v2857_v30 = vsel %vm2856_vm11, %v2855_v13, 0 }
 0x1f1   : > { %v10264_v21 = vsel %vm10124_vm8, 0, %v10176_v9  ;;  %8524 = vsinq.f32 %v10186_v56  ;;  %v10270_v49 = vsel %vm10224_vm2, 0, %v10197_v12  ;;  %v2859_v36 = vand.u32 31, %v2857_v30 }
 0x1f2   : > { %12923 = vst [vmem:[#allocation51_spill] sm:$0xff] %v10264_v21  ;;  %12924 = vst [vmem:[#allocation52_spill] sm:$0xff] %v10270_v49  ;;  %v1147_v50 = vshll.u32 %v10063_v47, %v10210_v6  ;;  %v10274_v48 = vsel %vm8040_vm12, 0, %v8039_v14  ;;  %v2807_v13 = vsub.s32 0, %v10252_v1  ;;  %v4673_v61 = vadd.s32 1, %v10249_v20 }
 0x1f3   : > { %v10281_v55 = vsel %vm2951_vm13, %v3033_v19, %v10206_v11  ;;  %v4670_v56 = vmul.u32 %v4663_v24, %v4654_v26  ;;  %v2860_v12 = vsub.s32 32, %v2859_v36  ;;  %v1152_v42 = vshll.u32 %v1151_v18, 23 }
 0x1f4   : > { %v10284_v10 = vor.u32 %v1148_v58, %v1147_v50  ;;  %v4255_v47 = vadd.s32 %v10023_v17, %v10029_v4  ;;  %v2852_v6 = vand.u32 8388607, %v12744_v60  ;;  %v4275_v45 = vsub.s32 4294967266, %v10274_v48  ;;  %v5923_v4 = vpop.permute.xlu0 %5922 }
 0x1f5   : > { %vm4672_vm8 = vc.u32 %v10259_v8, %v10248_v3  ;;  %v2863_v11 = vshrl.u32 %v12849_v51, %v2860_v12  ;;  %v2866_v33 = vshrl.u32 %v12850_v54, %v2860_v12  ;;  %v7980_v24 = vmin.u32 %v2807_v13, %v10252_v1 }
 0x1f6   : > { %v4674_v43 = vsel %vm4672_vm8, %v4673_v61, %v10249_v20  ;;  %v2862_v15 = vshll.u32 %v12857_v63, %v2859_v36  ;;  %v2865_v17 = vshll.u32 %v12849_v51, %v2859_v36  ;;  %v2858_v14 = vshrl.u32 %v2857_v30, 5 }
 0x1f7   : > { %v4675_v31 = vadd.s32 %v4674_v43, %v4670_v56  ;;  %v2868_v19 = vshll.u32 %v12850_v54, %v2859_v36  ;;  %v2869_v52 = vshrl.u32 %v12860_v57, %v2860_v12  ;;  %v2871_v18 = vshll.u32 %v12860_v57, %v2859_v36 }
 0x1f8   : > { %v2864_v28 = vor.u32 %v2863_v11, %v2862_v15  ;;  %v2867_v58 = vor.u32 %v2866_v33, %v2865_v17  ;;  %v2872_v22 = vshrl.u32 %v12862_v39, %v2860_v12  ;;  %v1153_v35 = vor.u32 4788187, %v1152_v42 }
 0x1f9   : > { %v4676_v26 = vadd.s32 536870912, %v4675_v31  ;;  %v2875_v20 = vshrl.u32 %v12864_v38, %v2860_v12  ;;  %v10305_v27 = vmul.f32 %v9987_v46, %v5923_v4  ;;  %vm1076_vm13 = vcmp.lt.s32.totalorder %v9756_v0, 0 }
 0x1fa   : > { %v4271_v30 = vsub.s32 32, %v10274_v48  ;;  %v2870_v50 = vor.u32 %v2869_v52, %v2868_v19  ;;  %v2873_v13 = vor.u32 %v2872_v22, %v2871_v18  ;;  %v2874_v61 = vshll.u32 %v12862_v39, %v2859_v36 }
 0x1fb   : > { %12925 = vst [vmem:[#allocation53_spill] sm:$0xff] %v10305_v27  ;;  %v10310_v56 = vpop.eup %8524  ;;  %v4276_v11 = vadd.s32 127, %v4275_v45  ;;  %v10312_v33 = vshrl.u32 %v4676_v26, 30  ;;  %v2853_v42 = vor.u32 8388608, %v2852_v6  ;;  %vm2877_vm14 = vcmp.lt.s32.totalorder %v2858_v14, 1 }
 0x1fc   : > { %12926 = vst [vmem:[#allocation54_spill] sm:$0xff] %v10310_v56  ;;  %v2809_v43 = vclz %v7980_v24  ;;  %v2876_v15 = vor.u32 %v2875_v20, %v2874_v61  ;;  %vm2880_vm15 = vcmp.lt.s32.totalorder %v2858_v14, 4  ;;  %v2885_v17 = vsel %vm2877_vm14, %v2864_v28, %v2867_v58 }
 0x1fd   : > { %v4678_v4 = vshll.u32 %v10312_v33, 30  ;;  %vm2879_vm0 = vcmp.lt.s32.totalorder %v2858_v14, 3  ;;  %v2886_v19 = vsel %vm2880_vm15, %v2873_v13, 920167782  ;;  %v5964_v52 = vand.u32 2139095040, %v10305_v27 }
 0x1fe   : > { %v2861_v36 = vshrl.u32 %v12857_v63, %v2860_v12  ;;  %vm2878_vm1 = vcmp.lt.s32.totalorder %v2858_v14, 2  ;;  %v2882_v45 = vsel %vm2880_vm15, %v2870_v50, 2102212464  ;;  %v2887_v6 = vsel %vm2879_vm0, %v2870_v50, %v2886_v19 }
 0x1ff   : > { %v1154_v18 = vand.u32 2147483647, %v1153_v35  ;;  %v2888_v24 = vsel %vm2878_vm1, %v2885_v17, %v2887_v6  ;;  %v2889_v22 = vsel %vm2877_vm14, %v2867_v58, %v2870_v50  ;;  %v2893_v26 = vshll.u32 %v2853_v42, 8 }
 0x200   : > { %v12927_v20 = vand.u32 2147483647, %v9756_v0  ;;  %v7981_v60 = vadd.s32 4294967294, %v2809_v43  ;;  %v10329_v9 = vsub.s32 %v4675_v31, %v4678_v4  ;;  %v2881_v12 = vsel %vm2877_vm14, %v2861_v36, %v2864_v28 }
 0x201   : > { %v2890_v49 = vsel %vm2880_vm15, %v2876_v15, 1326507024  ;;  %vm4201_vm5 = vcmp.lt.s32.totalorder %v9843_v7, 0  ;;  %v2883_v35 = vsel %vm2879_vm0, %v2867_v58, %v2882_v45  ;;  %v4273_v19 = vshrl.u32 %v4255_v47, %v4271_v30 }
 0x202   : > { %vm10325_vm3 = vcmp.le.f32.partialorder %v12927_v20, 0.7853982  ;;  %v2891_v50 = vsel %vm2879_vm0, %v2873_v13, %v2890_v49  ;;  %v10336_v42 = vmul.u32.u64.low %v2893_v26, %v2888_v24  ;;  %v10337_v17 = vmul.u32.u64.high %v2893_v26, %v2888_v24, %v10336_v42 }
 0x203   : > { %v4277_v6 = vshll.u32 %v4276_v11, 23  ;;  %v2892_v43 = vsel %vm2878_vm1, %v2889_v22, %v2891_v50  ;;  %v5965_v31 = vshrl.u32 %v5964_v52, 23  ;;  %v1156_v4 = vcvt.s32.f32 %v10284_v10  ;;  %v4057_v11 = vpop.permute.xlu1 %4056 }
 0x204   : > { %v12930_v28 = vsub.s32 4, %v10017_v32  ;;  %v10347_v58 = vmul.u32.u64.low %v2893_v26, %v2892_v43  ;;  %v10348_v36 = vmul.u32.u64.high %v2893_v26, %v2892_v43, %v10347_v58  ;;  %v4272_v49 = vshll.u32 %v10145_v2, %v10274_v48 }
 0x205   : > { %v4681_v47 = vsub.s32 0, %v10329_v9  ;;  %v2884_v30 = vsel %vm2878_vm1, %v2881_v12, %v2883_v35  ;;  %v8105_v13 = vadd.s32 4294967169, %v5965_v31  ;;  %v10358_v10 = vsel %vm10224_vm2, %v9693_v5, %v10281_v55 }
 0x206   : > { %v1161_v15 = vsel %vm1076_vm13, %v12930_v28, %v10017_v32  ;;  %v4285_v32 = vsub.s32 4, %v10098_v44  ;;  %vm7982_vm10 = vcmp.lt.s32.totalorder %v7981_v60, 0  ;;  %v2903_v52 = vadd.s32 1, %v10337_v17 }
 0x207   : > { %v1157_v45 = vmul.f32 %v1156_v4, %v1154_v18  ;;  %v4274_v24 = vor.u32 %v4273_v19, %v4272_v49  ;;  %v4278_v2 = vor.u32 4788187, %v4277_v6  ;;  %v5971_v48 = vadd.s32 1, %v8105_v13 }
 0x208   : > { %v2900_v22 = vmul.u32 %v2893_v26, %v2884_v30  ;;  %vm2902_vm12 = vc.u32 %v10348_v36, %v10336_v42  ;;  %v12746_v14 = vand.u32 2147483647, %v10305_v27  ;;  %v10366_v20 = vmul.f32 %v9987_v46, %v4057_v11 }
 0x209   : > { %v10368_v29 = vsel %vm7982_vm10, 0, %v7981_v60  ;;  %v8054_v55 = vmin.u32 %v4681_v47, %v10329_v9  ;;  %v2904_v12 = vsel %vm2902_vm12, %v2903_v52, %v10337_v17  ;;  %vm5972_vm2 = vcmp.gt.s32.totalorder %v5971_v48, 0 }
 0x20a   : > { %12931 = vst [vmem:[#allocation55_spill] sm:$0xff] %v10366_v20  ;;  %8526 = vcosq.f32 %v10358_v10  ;;  %v10375_v18 = vsel %vm10325_vm3, 0, %v1161_v15  ;;  %v10377_v26 = vadd.s32 %v2904_v12, %v2900_v22  ;;  %v5973_v35 = vsel %vm5972_vm2, %v5971_v48, 0 }
 0x20b   : > { %12932 = vst [vmem:[#allocation56_spill] sm:$0xff] %v10375_v18  ;;  %v1158_v50 = vxor.u32 2147483648, %v1157_v45  ;;  %v10382_v60 = vsel %vm4201_vm5, %v4285_v32, %v10098_v44  ;;  %v2797_v19 = vadd.s32 %v10155_v41, %v10160_v34  ;;  %v5975_v17 = vand.u32 31, %v5973_v35 }
 0x20c   : > { %v4279_v6 = vand.u32 2147483647, %v4278_v2  ;;  %v4281_v43 = vcvt.s32.f32 %v4274_v24  ;;  %v2817_v31 = vsub.s32 4294967266, %v10368_v29  ;;  %v5968_v4 = vand.u32 8388607, %v12746_v14 }
 0x20d   : > { %v2813_v28 = vsub.s32 32, %v10368_v29  ;;  %v4683_v15 = vclz %v8054_v55  ;;  %v5976_v58 = vsub.s32 32, %v5975_v17  ;;  %v4098_v49 = vand.u32 2139095040, %v10366_v20 }
 0x20e   : > { %v2906_v44 = vadd.s32 536870912, %v10377_v26  ;;  %v5978_v47 = vshll.u32 %v12857_v63, %v5975_v17  ;;  %v5981_v41 = vshll.u32 %v12849_v51, %v5975_v17  ;;  %v5984_v34 = vshll.u32 %v12850_v54, %v5975_v17 }
 0x20f   : > { %v5979_v30 = vshrl.u32 %v12849_v51, %v5976_v58  ;;  %v5982_v13 = vshrl.u32 %v12850_v54, %v5976_v58  ;;  %v5985_v11 = vshrl.u32 %v12860_v57, %v5976_v58  ;;  %v5987_v32 = vshll.u32 %v12860_v57, %v5975_v17 }
 0x210   : > { %v1159_v52 = vsel %vm1076_vm13, %v1158_v50, %v1157_v45  ;;  %v2818_v24 = vadd.s32 127, %v2817_v31  ;;  %v5969_v2 = vor.u32 8388608, %v5968_v4  ;;  %v5974_v48 = vshrl.u32 %v5973_v35, 5 }
 0x211   : > { %v10401_v22 = vmul.f32 %v4281_v43, %v4279_v6  ;;  %v2815_v55 = vshrl.u32 %v2797_v19, %v2813_v28  ;;  %v5988_v12 = vshrl.u32 %v12862_v39, %v5976_v58  ;;  %v4099_v14 = vshrl.u32 %v4098_v49, 23 }
 0x212   : > { %v8055_v5 = vadd.s32 4294967294, %v4683_v15  ;;  %v10404_v18 = vshrl.u32 %v2906_v44, 30  ;;  %v5980_v21 = vor.u32 %v5979_v30, %v5978_v47  ;;  %v5983_v56 = vor.u32 %v5982_v13, %v5981_v41 }
 0x213   : > { %v5986_v37 = vor.u32 %v5985_v11, %v5984_v34  ;;  %v5989_v23 = vor.u32 %v5988_v12, %v5987_v32  ;;  %v5990_v59 = vshll.u32 %v12862_v39, %v5975_v17  ;;  %v5991_v45 = vshrl.u32 %v12864_v38, %v5976_v58 }
 0x214   : > { %v10408_v50 = vpop.eup %8526  ;;  %v2819_v35 = vshll.u32 %v2818_v24, 23  ;;  %v5977_v6 = vshrl.u32 %v12857_v63, %v5976_v58  ;;  %vm5993_vm11 = vcmp.lt.s32.totalorder %v5974_v48, 1  ;;  %v6009_v19 = vshll.u32 %v5969_v2, 8 }
 0x215   : > { %12933 = vst [vmem:[#allocation57_spill] sm:$0xff] %v10408_v50  ;;  %v12934_v43 = vand.u32 2147483647, %v9843_v7  ;;  %v5992_v4 = vor.u32 %v5991_v45, %v5990_v59  ;;  %vm5995_vm13 = vcmp.lt.s32.totalorder %v5974_v48, 3  ;;  %vm5996_vm14 = vcmp.lt.s32.totalorder %v5974_v48, 4 }
 0x216   : > { %v8033_v28 = vadd.s32 4294967169, %v4099_v14  ;;  %v2908_v17 = vshll.u32 %v10404_v18, 30  ;;  %vm5994_vm15 = vcmp.lt.s32.totalorder %v5974_v48, 2  ;;  %v5998_v15 = vsel %vm5996_vm14, %v5986_v37, 2102212464 }
 0x217   : > { %vm10413_vm8 = vcmp.le.f32.partialorder %v12934_v43, 0.7853982  ;;  %v6001_v49 = vsel %vm5993_vm11, %v5980_v21, %v5983_v56  ;;  %vm8056_vm0 = vcmp.lt.s32.totalorder %v8055_v5, 0  ;;  %v6002_v58 = vsel %vm5996_vm14, %v5989_v23, 920167782 }
 0x218   : > { %v6005_v44 = vsel %vm5993_vm11, %v5983_v56, %v5986_v37  ;;  %v6006_v47 = vsel %vm5996_vm14, %v5992_v4, 1326507024  ;;  %v2814_v41 = vshll.u32 %v10252_v1, %v10368_v29  ;;  %v2820_v34 = vor.u32 4788187, %v2819_v35 }
 0x219   : > { %v5997_v59 = vsel %vm5993_vm11, %v5977_v6, %v5980_v21  ;;  %v6003_v30 = vsel %vm5995_vm13, %v5986_v37, %v6002_v58  ;;  %v5999_v14 = vsel %vm5995_vm13, %v5983_v56, %v5998_v15  ;;  %v6007_v11 = vsel %vm5995_vm13, %v5989_v23, %v6006_v47 }
 0x21a   : > { %v6004_v13 = vsel %vm5994_vm15, %v6001_v49, %v6003_v30  ;;  %v4105_v32 = vadd.s32 1, %v8033_v28  ;;  %v2816_v24 = vor.u32 %v2815_v55, %v2814_v41  ;;  %v10427_v2 = vsel %vm8056_vm0, 0, %v8055_v5 }
 0x21b   : > { %v10430_v12 = vsub.s32 %v10377_v26, %v2908_v17  ;;  %v6008_v1 = vsel %vm5994_vm15, %v6005_v44, %v6007_v11  ;;  %v4283_v29 = vxor.u32 2147483648, %v10401_v22  ;;  %v2821_v37 = vand.u32 2147483647, %v2820_v34 }
 0x21c   : > { %v10434_v21 = vmul.u32.u64.low %v6009_v19, %v6008_v1  ;;  %v10435_v45 = vmul.u32.u64.high %v6009_v19, %v6008_v1, %v10434_v21  ;;  %vm4106_vm1 = vcmp.gt.s32.totalorder %v4105_v32, 0  ;;  %v6000_v56 = vsel %vm5994_vm15, %v5997_v59, %v5999_v14  ;;  %v5935_v59 = vpop.permute.xlu0 %5934 }
 0x21d   : > { %v10438_v35 = vmul.u32.u64.low %v6009_v19, %v6004_v13  ;;  %v10439_v23 = vmul.u32.u64.high %v6009_v19, %v6004_v13, %v10438_v35  ;;  %8528 = vsinq.f32 %v10358_v10  ;;  %v4691_v5 = vsub.s32 4294967266, %v10427_v2 }
 0x21e   : > { %v12754_v26 = vand.u32 2147483647, %v10366_v20  ;;  %v4107_v55 = vsel %vm4106_vm1, %v4105_v32, 0  ;;  %v10448_v6 = vsel %vm10325_vm3, %v9756_v0, %v1159_v52  ;;  %v10453_v48 = vsel %vm10413_vm8, 0, %v10382_v60 }
 0x21f   : > { %12937 = vst [vmem:[#allocation58_spill] sm:$0xff] %v10453_v48  ;;  %v2823_v43 = vcvt.s32.f32 %v2816_v24  ;;  %v2911_v4 = vsub.s32 0, %v10430_v12  ;;  %v2827_v10 = vsub.s32 4, %v10217_v62  ;;  %v6016_v28 = vmul.u32 %v6009_v19, %v6000_v56 }
 0x220   : > { %vm6018_vm10 = vc.u32 %v10435_v45, %v10438_v35  ;;  %v4109_v17 = vand.u32 31, %v4107_v55  ;;  %v10462_v61 = vsel %vm4201_vm5, %v4283_v29, %v10401_v22  ;;  %v4671_v60 = vadd.s32 %v10248_v3, %v10259_v8 }
 0x221   : > { %v10464_v52 = vmul.f32 %v2823_v43, %v2821_v37  ;;  %v6019_v15 = vadd.s32 1, %v10439_v23  ;;  %v4687_v49 = vsub.s32 32, %v10427_v2  ;;  %v4692_v58 = vadd.s32 127, %v4691_v5 }
 0x222   : > { %v4102_v19 = vand.u32 8388607, %v12754_v26  ;;  %v4110_v44 = vsub.s32 32, %v4109_v17  ;;  %v7984_v47 = vmin.u32 %v2911_v4, %v10430_v12  ;;  %v10474_v22 = vshrl.u32 %v4107_v55, 5 }
 0x223   : > { %v6020_v41 = vsel %vm6018_vm10, %v6019_v15, %v10439_v23  ;;  %v4112_v34 = vshll.u32 %v12857_v63, %v4109_v17  ;;  %v4115_v8 = vshll.u32 %v12849_v51, %v4109_v17  ;;  %v4118_v13 = vshll.u32 %v12850_v54, %v4109_v17 }
 0x224   : > { %v6021_v30 = vadd.s32 %v6020_v41, %v6016_v28  ;;  %v4113_v3 = vshrl.u32 %v12849_v51, %v4110_v44  ;;  %v4116_v14 = vshrl.u32 %v12850_v54, %v4110_v44  ;;  %v4119_v11 = vshrl.u32 %v12860_v57, %v4110_v44 }
 0x225   : > { %v4121_v32 = vshll.u32 %v12860_v57, %v4109_v17  ;;  %v4122_v24 = vshrl.u32 %v12862_v39, %v4110_v44  ;;  %v10485_v37 = vmul.f32 %v9987_v46, %v5935_v59  ;;  %v4124_v5 = vshll.u32 %v12862_v39, %v4109_v17 }
 0x226   : > { %v6022_v1 = vadd.s32 536870912, %v6021_v30  ;;  %v4114_v29 = vor.u32 %v4113_v3, %v4112_v34  ;;  %v4117_v21 = vor.u32 %v4116_v14, %v4115_v8  ;;  %v4120_v56 = vor.u32 %v4119_v11, %v4118_v13 }
 0x227   : > { %v4123_v23 = vor.u32 %v4122_v24, %v4121_v32  ;;  %v4125_v55 = vshrl.u32 %v12864_v38, %v4110_v44  ;;  %v10489_v43 = vpop.eup %8528  ;;  %vm2743_vm3 = vcmp.lt.s32.totalorder %v9990_v25, 0  ;;  %v4688_v4 = vshll.u32 %v10329_v9, %v10427_v2 }
 0x228   : > { %12938 = vst [vmem:[#allocation59_spill] sm:$0xff] %v10489_v43  ;;  %v4689_v28 = vshrl.u32 %v4671_v60, %v4687_v49  ;;  %v10494_v15 = vshrl.u32 %v6022_v1, 30  ;;  %v4103_v41 = vor.u32 8388608, %v4102_v19  ;;  %v4693_v34 = vshll.u32 %v4692_v58, 23 }
 0x229   : > { %v2913_v46 = vclz %v7984_v47  ;;  %v4126_v59 = vor.u32 %v4125_v55, %v4124_v5  ;;  %vm4127_vm5 = vcmp.lt.s32.totalorder %v10474_v22, 1  ;;  %v4111_v3 = vshrl.u32 %v12857_v63, %v4110_v44 }
 0x22a   : > { %v6024_v17 = vshll.u32 %v10494_v15, 30  ;;  %vm4130_vm12 = vcmp.lt.s32.totalorder %v10474_v22, 4  ;;  %v4135_v8 = vsel %vm4127_vm5, %v4114_v29, %v4117_v21  ;;  %vm4128_vm2 = vcmp.lt.s32.totalorder %v10474_v22, 2 }
 0x22b   : > { %vm4129_vm11 = vcmp.lt.s32.totalorder %v10474_v22, 3  ;;  %v4136_v9 = vsel %vm4130_vm12, %v4123_v23, 920167782  ;;  %v4139_v2 = vsel %vm4127_vm5, %v4117_v21, %v4120_v56  ;;  %v12939_v60 = vand.u32 2147483647, %v9990_v25 }
 0x22c   : > { %v10512_v58 = vsub.s32 %v6021_v30, %v6024_v17  ;;  %v4132_v19 = vsel %vm4130_vm12, %v4120_v56, 2102212464  ;;  %v4137_v44 = vsel %vm4129_vm11, %v4120_v56, %v4136_v9  ;;  %v4140_v47 = vsel %vm4130_vm12, %v4126_v59, 1326507024 }
 0x22d   : > { %vm10508_vm13 = vcmp.le.f32.partialorder %v12939_v60, 0.7853982  ;;  %vm4617_vm14 = vcmp.lt.s32.totalorder %v10080_v40, 0  ;;  %v7985_v14 = vadd.s32 4294967294, %v2913_v46  ;;  %v4138_v13 = vsel %vm4128_vm2, %v4135_v8, %v4137_v44 }
 0x22e   : > { %v4141_v11 = vsel %vm4129_vm11, %v4123_v23, %v4140_v47  ;;  %v4143_v32 = vshll.u32 %v4103_v41, 8  ;;  %v4694_v24 = vor.u32 4788187, %v4693_v34  ;;  %v6027_v1 = vsub.s32 0, %v10512_v58 }
 0x22f   : > { %v4131_v30 = vsel %vm4127_vm5, %v4111_v3, %v4114_v29  ;;  %v4142_v56 = vsel %vm4128_vm2, %v4139_v2, %v4141_v11  ;;  %v4133_v5 = vsel %vm4129_vm11, %v4117_v21, %v4132_v19  ;;  %v6276_v59 = vand.u32 2139095040, %v10485_v37 }
 0x230   : > { %v10528_v55 = vmul.u32.u64.low %v4143_v32, %v4142_v56  ;;  %v10529_v46 = vmul.u32.u64.high %v4143_v32, %v4142_v56, %v10528_v55  ;;  %v12942_v23 = vand.u32 2147483647, %v10080_v40  ;;  %v4690_v34 = vor.u32 %v4689_v28, %v4688_v4  ;;  %v4065_v56 = vpop.permute.xlu1 %4064 }
 0x231   : > { %v8106_v29 = vmin.u32 %v6027_v1, %v10512_v58  ;;  %v10539_v17 = vmul.u32.u64.low %v4143_v32, %v4138_v13  ;;  %v10540_v3 = vmul.u32.u64.high %v4143_v32, %v4138_v13, %v10539_v17  ;;  %8530 = vcosq.f32 %v10448_v6 }
 0x232   : > { %vm10534_vm15 = vcmp.le.f32.partialorder %v12942_v23, 0.7853982  ;;  %v2828_v21 = vsel %vm2743_vm3, %v2827_v10, %v10217_v62  ;;  %vm7986_vm0 = vcmp.lt.s32.totalorder %v7985_v14, 0  ;;  %v6277_v8 = vshrl.u32 %v6276_v59, 23 }
 0x233   : > { %v2825_v9 = vxor.u32 2147483648, %v10464_v52  ;;  %v4695_v2 = vand.u32 2147483647, %v4694_v24  ;;  %v4701_v4 = vsub.s32 4, %v10312_v33  ;;  %v4134_v28 = vsel %vm4128_vm2, %v4131_v30, %v4133_v5 }
 0x234   : > { %v4287_v60 = vsel %vm10413_vm8, %v9843_v7, %v10462_v61  ;;  %vm4152_vm1 = vc.u32 %v10529_v46, %v10539_v17  ;;  %v12755_v62 = vand.u32 2147483647, %v10485_v37  ;;  %v8117_v10 = vadd.s32 4294967169, %v6277_v8 }
 0x235   : > { %v4697_v19 = vcvt.s32.f32 %v4690_v34  ;;  %v10560_v44 = vsel %vm7986_vm0, 0, %v7985_v14  ;;  %v6029_v47 = vclz %v8106_v29  ;;  %v4153_v13 = vadd.s32 1, %v10540_v3 }
 0x236   : > { %8532 = vsinq.f32 %v10448_v6  ;;  %v10566_v22 = vsel %vm10508_vm13, 0, %v2828_v21  ;;  %v4150_v31 = vmul.u32 %v4143_v32, %v4134_v28  ;;  %v6283_v61 = vadd.s32 1, %v8117_v10  ;;  %v10596_v21 = vld [vmem:[%s12657_s1] ss:$0 sm:$0xff] }
 0x237   : > { %12945 = vst [vmem:[#allocation60_spill] sm:$0xff] %v10566_v22  ;;  %v2826_v11 = vsel %vm2743_vm3, %v2825_v9, %v10464_v52  ;;  %v10571_v24 = vmul.f32 %v4697_v19, %v4695_v2  ;;  %v4702_v14 = vsel %vm4617_vm14, %v4701_v4, %v10312_v33  ;;  %v4154_v1 = vsel %vm4152_vm1, %v4153_v13, %v10540_v3 }
 0x238   : > { %8534 = vcosq.f32 %v4287_v60  ;;  %v2921_v6 = vsub.s32 4294967266, %v10560_v44  ;;  %v4155_v30 = vadd.s32 %v4154_v1, %v4150_v31  ;;  %vm6284_vm8 = vcmp.gt.s32.totalorder %v6283_v61, 0 }
 0x239   : > { %8536 = vsinq.f32 %v4287_v60  ;;  %v8107_v32 = vadd.s32 4294967294, %v6029_v47  ;;  %v6280_v5 = vand.u32 8388607, %v12755_v62  ;;  %v6285_v52 = vsel %vm6284_vm8, %v6283_v61, 0 }
 0x23a   : > { %v10583_v55 = vsel %vm10508_vm13, %v9990_v25, %v2826_v11  ;;  %v10587_v33 = vsel %vm10534_vm15, 0, %v4702_v14  ;;  %v4156_v59 = vadd.s32 536870912, %v4155_v30  ;;  %v6287_v23 = vand.u32 31, %v6285_v52 }
 0x23b   : > { %12946 = vst [vmem:[#allocation61_spill] sm:$0xff] %v10587_v33  ;;  %v2901_v29 = vadd.s32 %v10336_v42, %v10348_v36  ;;  %v2917_v3 = vsub.s32 32, %v10560_v44  ;;  %v10599_v49 = vmul.f32 %v10596_v21, %v4065_v56  ;;  %v10601_v8 = vpop.eup %8530  ;;  %v2918_v9 = vshll.u32 %v10430_v12, %v10560_v44 }
 0x23c   : > { %v2922_v2 = vadd.s32 127, %v2921_v6  ;;  %v10605_v4 = vshrl.u32 %v4156_v59, 30  ;;  %v6288_v28 = vsub.s32 32, %v6287_v23  ;;  %vm8108_vm10 = vcmp.lt.s32.totalorder %v8107_v32, 0 }
 0x23d   : > { %v6281_v42 = vor.u32 8388608, %v6280_v5  ;;  %v6290_v36 = vshll.u32 %v12857_v63, %v6287_v23  ;;  %v6293_v60 = vshll.u32 %v12849_v51, %v6287_v23  ;;  %v6296_v47 = vshll.u32 %v12850_v54, %v6287_v23 }
 0x23e   : > { %v4158_v10 = vshll.u32 %v10605_v4, 30  ;;  %v6291_v19 = vshrl.u32 %v12849_v51, %v6288_v28  ;;  %v6299_v13 = vshll.u32 %v12860_v57, %v6287_v23  ;;  %v6286_v31 = vshrl.u32 %v6285_v52, 5 }
 0x23f   : > { %v6294_v12 = vshrl.u32 %v12850_v54, %v6288_v28  ;;  %v6297_v44 = vshrl.u32 %v12860_v57, %v6288_v28  ;;  %v4306_v61 = vand.u32 2139095040, %v10599_v49  ;;  %v2919_v14 = vshrl.u32 %v2901_v29, %v2917_v3 }
 0x240   : > { %v10616_v11 = vpop.eup %8532  ;;  %v2923_v1 = vshll.u32 %v2922_v2, 23  ;;  %v10618_v6 = vsub.s32 %v4155_v30, %v4158_v10  ;;  %v6300_v56 = vshrl.u32 %v12862_v39, %v6288_v28  ;;  %v10622_v5 = vsel %vm8108_vm10, 0, %v8107_v32 }
 0x241   : > { %v6289_v59 = vshrl.u32 %v12857_v63, %v6288_v28  ;;  %v6292_v52 = vor.u32 %v6291_v19, %v6290_v36  ;;  %v6295_v26 = vor.u32 %v6294_v12, %v6293_v60  ;;  %v6298_v34 = vor.u32 %v6297_v44, %v6296_v47 }
 0x242   : > { %v10625_v62 = vpop.eup %8534  ;;  %v6301_v33 = vor.u32 %v6300_v56, %v6299_v13  ;;  %v6302_v7 = vshll.u32 %v12862_v39, %v6287_v23  ;;  %v6303_v29 = vshrl.u32 %v12864_v38, %v6288_v28  ;;  %vm6305_vm3 = vcmp.lt.s32.totalorder %v6286_v31, 1 }
 0x243   : > { %12947 = vst [vmem:[#allocation62_spill] sm:$0xff] %v10625_v62  ;;  %v10629_v3 = vpop.eup %8536  ;;  %vm6307_vm5 = vcmp.lt.s32.totalorder %v6286_v31, 3  ;;  %v6321_v30 = vshll.u32 %v6281_v42, 8  ;;  %v4307_v2 = vshrl.u32 %v4306_v61, 23  ;;  %v4161_v32 = vsub.s32 0, %v10618_v6 }
 0x244   : > { %12948 = vst [vmem:[#allocation63_spill] sm:$0xff] %v10629_v3  ;;  %v6304_v10 = vor.u32 %v6303_v29, %v6302_v7  ;;  %vm6306_vm12 = vcmp.lt.s32.totalorder %v6286_v31, 2  ;;  %vm6308_vm2 = vcmp.lt.s32.totalorder %v6286_v31, 4  ;;  %vm2847_vm11 = vcmp.lt.s32.totalorder %v10117_v53, 0 }
 0x245   : > { %v6037_v36 = vsub.s32 4294967266, %v10622_v5  ;;  %v6310_v60 = vsel %vm6308_vm2, %v6298_v34, 2102212464  ;;  %v6313_v23 = vsel %vm6305_vm3, %v6292_v52, %v6295_v26  ;;  %v6314_v19 = vsel %vm6308_vm2, %v6301_v33, 920167782 }
 0x246   : > { %v6309_v28 = vsel %vm6305_vm3, %v6289_v59, %v6292_v52  ;;  %v6311_v47 = vsel %vm6307_vm5, %v6295_v26, %v6310_v60  ;;  %v6315_v42 = vsel %vm6307_vm5, %v6298_v34, %v6314_v19  ;;  %v6317_v13 = vsel %vm6305_vm3, %v6295_v26, %v6298_v34 }
 0x247   : > { %v2924_v12 = vor.u32 4788187, %v2923_v1  ;;  %v6316_v7 = vsel %vm6306_vm12, %v6313_v23, %v6315_v42  ;;  %v6318_v44 = vsel %vm6308_vm2, %v6304_v10, 1326507024  ;;  %v8041_v61 = vadd.s32 4294967169, %v4307_v2 }
 0x248   : > { %v2920_v56 = vor.u32 %v2919_v14, %v2918_v9  ;;  %v6033_v29 = vsub.s32 32, %v10622_v5  ;;  %v8034_v48 = vmin.u32 %v4161_v32, %v10618_v6  ;;  %v6319_v62 = vsel %vm6307_vm5, %v6301_v33, %v6318_v44 }
 0x249   : > { %v12949_v59 = vand.u32 2147483647, %v10117_v53  ;;  %v6312_v26 = vsel %vm6306_vm12, %v6309_v28, %v6311_v47  ;;  %v6320_v34 = vsel %vm6306_vm12, %v6317_v13, %v6319_v62  ;;  %v2931_v9 = vsub.s32 4, %v10404_v18 }
 0x24a   : > { %v10651_v1 = vmul.u32.u64.low %v6321_v30, %v6316_v7  ;;  %v10652_v10 = vmul.u32.u64.high %v6321_v30, %v6316_v7, %v10651_v1  ;;  %v6038_v14 = vadd.s32 127, %v6037_v36  ;;  %v12952_v33 = vxor.u32 2147483648, %v10571_v24 }
 0x24b   : > { %vm10645_vm13 = vcmp.le.f32.partialorder %v12949_v59, 0.7853982  ;;  %v10656_v2 = vmul.u32.u64.low %v6321_v30, %v6320_v34  ;;  %v10657_v32 = vmul.u32.u64.high %v6321_v30, %v6320_v34, %v10656_v2  ;;  %v2925_v23 = vand.u32 2147483647, %v2924_v12 }
 0x24c   : > { %v4700_v60 = vsel %vm4617_vm14, %v12952_v33, %v10571_v24  ;;  %v6017_v62 = vadd.s32 %v10438_v35, %v10435_v45  ;;  %v4313_v31 = vadd.s32 1, %v8041_v61  ;;  %8538 = vcosq.f32 %v10583_v55 }
 0x24d   : > { %v4163_v19 = vclz %v8034_v48  ;;  %v6328_v28 = vmul.u32 %v6321_v30, %v6312_v26  ;;  %v12761_v36 = vand.u32 2147483647, %v10599_v49  ;;  %v2927_v47 = vcvt.s32.f32 %v2920_v56  ;;  %v5939_v48 = vpop.permute.xlu0 %5938  ;;  %v4069_v56 = vpop.permute.xlu1 %4068 }
 0x24e   : > { %v6035_v42 = vshrl.u32 %v6017_v62, %v6033_v29  ;;  %v6331_v13 = vadd.s32 1, %v10652_v10  ;;  %vm4314_vm0 = vcmp.gt.s32.totalorder %v4313_v31, 0  ;;  %v4703_v24 = vsel %vm10534_vm15, %v10080_v40, %v4700_v60 }
 0x24f   : > { %v2932_v45 = vsel %vm2847_vm11, %v2931_v9, %v10404_v18  ;;  %v6039_v35 = vshll.u32 %v6038_v14, 23  ;;  %vm6330_vm14 = vc.u32 %v10657_v32, %v10651_v1  ;;  %v10677_v30 = vmul.f32 %v2927_v47, %v2925_v23 }
 0x250   : > { %v6034_v12 = vshll.u32 %v10512_v58, %v10622_v5  ;;  %v6332_v7 = vsel %vm6330_vm14, %v6331_v13, %v10652_v10  ;;  %v4315_v44 = vsel %vm4314_vm0, %v4313_v31, 0  ;;  %8540 = vsinq.f32 %v10583_v55 }
 0x251   : > { %v8035_v41 = vadd.s32 4294967294, %v4163_v19  ;;  %v6333_v61 = vadd.s32 %v6332_v7, %v6328_v28  ;;  %v4310_v18 = vand.u32 8388607, %v12761_v36  ;;  %8542 = vcosq.f32 %v4703_v24 }
 0x252   : > { %v6036_v29 = vor.u32 %v6035_v42, %v6034_v12  ;;  %v4317_v59 = vand.u32 31, %v4315_v44  ;;  %v10686_v26 = vmul.f32 %v10596_v21, %v5939_v48  ;;  %8544 = vsinq.f32 %v4703_v24 }
 0x253   : > { %v10690_v58 = vsel %vm10645_vm13, 0, %v2932_v45  ;;  %v6040_v5 = vor.u32 4788187, %v6039_v35  ;;  %v6334_v34 = vadd.s32 536870912, %v6333_v61  ;;  %v10695_v14 = vmul.f32 %v10596_v21, %v4069_v56 }
 0x254   : > { %12953 = vst [vmem:[#allocation64_spill] sm:$0xff] %v10686_v26  ;;  %12954 = vst [vmem:[#allocation65_spill] sm:$0xff] %v10690_v58  ;;  %v4318_v9 = vsub.s32 32, %v4317_v59  ;;  %v10699_v2 = vadd.s32 %v10539_v17, %v10529_v46  ;;  %vm8036_vm15 = vcmp.lt.s32.totalorder %v8035_v41, 0  ;;  %v4311_v60 = vor.u32 8388608, %v4310_v18 }
 0x255   : > { %v10701_v33 = vshrl.u32 %v6334_v34, 30  ;;  %v6043_v23 = vcvt.s32.f32 %v6036_v29  ;;  %v6380_v19 = vand.u32 2139095040, %v10686_v26  ;;  %v6041_v47 = vand.u32 2147483647, %v6040_v5 }
 0x256   : > { %v4327_v62 = vshrl.u32 %v12860_v57, %v4318_v9  ;;  %v10706_v28 = vpop.eup %8538  ;;  %v4321_v13 = vshrl.u32 %v12849_v51, %v4318_v9  ;;  %v4324_v46 = vshrl.u32 %v12850_v54, %v4318_v9  ;;  %v10711_v17 = vsel %vm8036_vm15, 0, %v8035_v41 }
 0x257   : > { %12955 = vst [vmem:[#allocation66_spill] sm:$0xff] %v10706_v28  ;;  %v6336_v42 = vshll.u32 %v10701_v33, 30  ;;  %v4326_v24 = vshll.u32 %v12850_v54, %v4317_v59  ;;  %v4330_v45 = vshrl.u32 %v12862_v39, %v4318_v9  ;;  %v4333_v35 = vshrl.u32 %v12864_v38, %v4318_v9 }
 0x258   : > { %v4316_v12 = vshrl.u32 %v4315_v44, 5  ;;  %v4320_v7 = vshll.u32 %v12857_v63, %v4317_v59  ;;  %v4323_v18 = vshll.u32 %v12849_v51, %v4317_v59  ;;  %v4329_v29 = vshll.u32 %v12860_v57, %v4317_v59 }
 0x259   : > { %v10716_v48 = vsub.s32 %v6333_v61, %v6336_v42  ;;  %v4328_v56 = vor.u32 %v4327_v62, %v4326_v24  ;;  %v4332_v5 = vshll.u32 %v12862_v39, %v4317_v59  ;;  %v6381_v41 = vshrl.u32 %v6380_v19, 23 }
 0x25a   : > { %v10722_v34 = vpop.eup %8540  ;;  %v10724_v36 = vmul.f32 %v6043_v23, %v6041_v47  ;;  %v4322_v55 = vor.u32 %v4321_v13, %v4320_v7  ;;  %v4325_v61 = vor.u32 %v4324_v46, %v4323_v18  ;;  %v4167_v44 = vsub.s32 32, %v10711_v17 }
 0x25b   : > { %v6339_v10 = vsub.s32 0, %v10716_v48  ;;  %v10727_v42 = vpop.eup %8542  ;;  %v4331_v31 = vor.u32 %v4330_v45, %v4329_v29  ;;  %v4334_v40 = vor.u32 %v4333_v35, %v4332_v5  ;;  %v4351_v62 = vshll.u32 %v4311_v60, 8 }
 0x25c   : > { %12956 = vst [vmem:[#allocation67_spill] sm:$0xff] %v10727_v42  ;;  %v10730_v24 = vpop.eup %8544  ;;  %v4319_v23 = vshrl.u32 %v12857_v63, %v4318_v9  ;;  %vm4338_vm1 = vcmp.lt.s32.totalorder %v4316_v12, 4  ;;  %v4171_v47 = vsub.s32 4294967266, %v10711_v17  ;;  %vm4335_vm8 = vcmp.lt.s32.totalorder %v4316_v12, 1 }
 0x25d   : > { %12957 = vst [vmem:[#allocation68_spill] sm:$0xff] %v10730_v24  ;;  %v8118_v19 = vmin.u32 %v6339_v10, %v10716_v48  ;;  %v4340_v13 = vsel %vm4338_vm1, %v4328_v56, 2102212464  ;;  %v8121_v46 = vadd.s32 4294967169, %v6381_v41  ;;  %vm4337_vm10 = vcmp.lt.s32.totalorder %v4316_v12, 3 }
 0x25e   : > { %v4339_v45 = vsel %vm4335_vm8, %v4319_v23, %v4322_v55  ;;  %v4343_v35 = vsel %vm4335_vm8, %v4322_v55, %v4325_v61  ;;  %v4341_v60 = vsel %vm4337_vm10, %v4325_v61, %v4340_v13  ;;  %v4344_v18 = vsel %vm4338_vm1, %v4331_v31, 920167782 }
 0x25f   : > { %v6341_v7 = vclz %v8118_v19  ;;  %v4347_v29 = vsel %vm4335_vm8, %v4325_v61, %v4328_v56  ;;  %v4348_v5 = vsel %vm4338_vm1, %v4334_v40, 1326507024  ;;  %vm4336_vm3 = vcmp.lt.s32.totalorder %v4316_v12, 2 }
 0x260   : > { %v4345_v59 = vsel %vm4337_vm10, %v4328_v56, %v4344_v18  ;;  %v4349_v10 = vsel %vm4337_vm10, %v4331_v31, %v4348_v5  ;;  %v12958_v3 = vand.u32 2147483647, %v10686_v26  ;;  %v6387_v50 = vadd.s32 1, %v8121_v46 }
 0x261   : > { %v8119_v42 = vadd.s32 4294967294, %v6341_v7  ;;  %v4346_v24 = vsel %vm4336_vm3, %v4343_v35, %v4345_v59  ;;  %v4350_v9 = vsel %vm4336_vm3, %v4347_v29, %v4349_v10  ;;  %v4342_v41 = vsel %vm4336_vm3, %v4339_v45, %v4341_v60 }
 0x262   : > { %v10739_v58 = vand.u32 8388607, %v12958_v3  ;;  %v10741_v19 = vmul.u32.u64.low %v4351_v62, %v4350_v9  ;;  %v10742_v23 = vmul.u32.u64.high %v4351_v62, %v4350_v9, %v10741_v19  ;;  %vm6388_vm12 = vcmp.gt.s32.totalorder %v6387_v50, 0 }
 0x263   : > { %vm8120_vm5 = vcmp.lt.s32.totalorder %v8119_v42, 0  ;;  %v10744_v13 = vmul.u32.u64.low %v4351_v62, %v4346_v24  ;;  %v10745_v61 = vmul.u32.u64.high %v4351_v62, %v4346_v24, %v10744_v13  ;;  %v6329_v40 = vadd.s32 %v10651_v1, %v10657_v32 }
 0x264   : > { %v6344_v55 = vsel %vm8120_vm5, 0, %v8119_v42  ;;  %v6389_v56 = vsel %vm6388_vm12, %v6387_v50, 0  ;;  %v4169_v3 = vshrl.u32 %v10699_v2, %v4167_v44  ;;  %v4172_v59 = vadd.s32 127, %v4171_v47 }
 0x265   : > { %v6345_v31 = vsub.s32 32, %v6344_v55  ;;  %v6349_v12 = vsub.s32 4294967266, %v6344_v55  ;;  %v4358_v46 = vmul.u32 %v4351_v62, %v4342_v41  ;;  %v6391_v7 = vand.u32 31, %v6389_v56 }
 0x266   : > { %v6346_v45 = vshll.u32 %v10716_v48, %v6344_v55  ;;  %vm4360_vm2 = vc.u32 %v10742_v23, %v10744_v13  ;;  %v4361_v24 = vadd.s32 1, %v10745_v61  ;;  %v6390_v2 = vshrl.u32 %v6389_v56, 5 }
 0x267   : > { %v6347_v35 = vshrl.u32 %v6329_v40, %v6345_v31  ;;  %v6350_v42 = vadd.s32 127, %v6349_v12  ;;  %v6392_v60 = vsub.s32 32, %v6391_v7  ;;  %v6394_v1 = vshll.u32 %v12857_v63, %v6391_v7 }
 0x268   : > { %v6397_v32 = vshll.u32 %v12849_v51, %v6391_v7  ;;  %v6400_v44 = vshll.u32 %v12850_v54, %v6391_v7  ;;  %v4362_v62 = vsel %vm4360_vm2, %v4361_v24, %v10745_v61  ;;  %v6403_v29 = vshll.u32 %v12860_v57, %v6391_v7 }
 0x269   : > { %v6348_v50 = vor.u32 %v6347_v35, %v6346_v45  ;;  %v6351_v18 = vshll.u32 %v6350_v42, 23  ;;  %v6395_v48 = vshrl.u32 %v12849_v51, %v6392_v60  ;;  %v6398_v47 = vshrl.u32 %v12850_v54, %v6392_v60 }
 0x26a   : > { %v4363_v10 = vadd.s32 %v4362_v62, %v4358_v46  ;;  %v6385_v9 = vor.u32 8388608, %v10739_v58  ;;  %v6401_v41 = vshrl.u32 %v12860_v57, %v6392_v60  ;;  %v6404_v40 = vshrl.u32 %v12862_v39, %v6392_v60 }
 0x26b   : > { %v6352_v5 = vor.u32 4788187, %v6351_v18  ;;  %v6396_v19 = vor.u32 %v6395_v48, %v6394_v1  ;;  %v6399_v55 = vor.u32 %v6398_v47, %v6397_v32  ;;  %v6406_v31 = vshll.u32 %v12862_v39, %v6391_v7 }
 0x26c   : > { %v4173_v12 = vshll.u32 %v4172_v59, 23  ;;  %v4364_v56 = vadd.s32 536870912, %v4363_v10  ;;  %v6407_v45 = vshrl.u32 %v12864_v38, %v6392_v60  ;;  %vm5963_vm0 = vcmp.lt.s32.totalorder %v10305_v27, 0 }
 0x26d   : > { %v6353_v61 = vand.u32 2147483647, %v6352_v5  ;;  %v6355_v35 = vcvt.s32.f32 %v6348_v50  ;;  %v6402_v42 = vor.u32 %v6401_v41, %v6400_v44  ;;  %v6405_v46 = vor.u32 %v6404_v40, %v6403_v29 }
 0x26e   : > { %vm6409_vm14 = vcmp.lt.s32.totalorder %v6390_v2, 1  ;;  %v10768_v58 = vshrl.u32 %v4364_v56, 30  ;;  %v6408_v24 = vor.u32 %v6407_v45, %v6406_v31  ;;  %vm6411_vm15 = vcmp.lt.s32.totalorder %v6390_v2, 3 }
 0x26f   : > { %vm6412_vm1 = vcmp.lt.s32.totalorder %v6390_v2, 4  ;;  %v6393_v1 = vshrl.u32 %v12857_v63, %v6392_v60  ;;  %vm6410_vm8 = vcmp.lt.s32.totalorder %v6390_v2, 2  ;;  %v6417_v59 = vsel %vm6409_vm14, %v6396_v19, %v6399_v55 }
 0x270   : > { %v6418_v7 = vsel %vm6412_vm1, %v6405_v46, 920167782  ;;  %v4174_v32 = vor.u32 4788187, %v4173_v12  ;;  %v6356_v18 = vmul.f32 %v6355_v35, %v6353_v61  ;;  %v4366_v62 = vshll.u32 %v10768_v58, 30 }
 0x271   : > { %v6414_v48 = vsel %vm6412_vm1, %v6402_v42, 2102212464  ;;  %v12959_v50 = vxor.u32 2147483648, %v10677_v30  ;;  %v6419_v47 = vsel %vm6411_vm15, %v6402_v42, %v6418_v7  ;;  %v6422_v29 = vsel %vm6412_vm1, %v6408_v24, 1326507024 }
 0x272   : > { %v6425_v5 = vshll.u32 %v6385_v9, 8  ;;  %v12960_v60 = vand.u32 2147483647, %v10305_v27  ;;  %v12963_v40 = vshll.u32 %v10618_v6, %v10711_v17  ;;  %v12964_v12 = vand.u32 2147483647, %v10485_v37 }
 0x273   : > { %v2930_v44 = vsel %vm2847_vm11, %v12959_v50, %v10677_v30  ;;  %v10794_v30 = vsub.s32 %v4363_v10, %v4366_v62  ;;  %v6420_v9 = vsel %vm6410_vm8, %v6417_v59, %v6419_v47  ;;  %v6421_v56 = vsel %vm6409_vm14, %v6399_v55, %v6402_v42 }
 0x274   : > { %vm10781_vm10 = vcmp.le.f32.partialorder %v12960_v60, 0.7853982  ;;  %v4170_v31 = vor.u32 %v4169_v3, %v12963_v40  ;;  %vm10790_vm3 = vcmp.le.f32.partialorder %v12964_v12, 0.7853982  ;;  %v6413_v45 = vsel %vm6409_vm14, %v6393_v1, %v6396_v19  ;;  %v5951_v60 = vpop.permute.xlu0 %5950 }
 0x275   : > { %v6415_v35 = vsel %vm6411_vm15, %v6399_v55, %v6414_v48  ;;  %v6423_v24 = vsel %vm6411_vm15, %v6405_v46, %v6422_v29  ;;  %v4410_v6 = vand.u32 2139095040, %v10695_v14  ;;  %v6045_v17 = vxor.u32 2147483648, %v10724_v36 }
 0x276   : > { %v4175_v3 = vand.u32 2147483647, %v4174_v32  ;;  %v6357_v7 = vxor.u32 2147483648, %v6356_v18  ;;  %v4369_v50 = vsub.s32 0, %v10794_v30  ;;  %vm6275_vm11 = vcmp.lt.s32.totalorder %v10485_v37, 0 }
 0x277   : > { %v6424_v10 = vsel %vm6410_vm8, %v6421_v56, %v6423_v24  ;;  %v10806_v59 = vmul.u32.u64.low %v6425_v5, %v6420_v9  ;;  %v10807_v42 = vmul.u32.u64.high %v6425_v5, %v6420_v9, %v10806_v59  ;;  %v12967_v19 = vsub.s32 4, %v10494_v15 }
 0x278   : > { %vm4097_vm5 = vcmp.lt.s32.totalorder %v10366_v20, 0  ;;  %v4177_v46 = vcvt.s32.f32 %v4170_v31  ;;  %v8042_v1 = vmin.u32 %v4369_v50, %v10794_v30  ;;  %v6416_v32 = vsel %vm6410_vm8, %v6413_v45, %v6415_v35 }
 0x279   : > { %v6048_v55 = vsel %vm5963_vm0, %v12967_v19, %v10494_v15  ;;  %v2933_v62 = vsel %vm10645_vm13, %v10117_v53, %v2930_v44  ;;  %v10821_v48 = vmul.u32.u64.low %v6425_v5, %v6424_v10  ;;  %v10822_v47 = vmul.u32.u64.high %v6425_v5, %v6424_v10, %v10821_v48 }
 0x27a   : > { %v4411_v29 = vshrl.u32 %v4410_v6, 23  ;;  %v6046_v15 = vsel %vm5963_vm0, %v6045_v17, %v10724_v36  ;;  %v4178_v40 = vmul.f32 %v4177_v46, %v4175_v3  ;;  %v6358_v31 = vsel %vm6275_vm11, %v6357_v7, %v6356_v18 }
 0x27b   : > { %v4371_v12 = vclz %v8042_v1  ;;  %v12968_v2 = vand.u32 2147483647, %v10366_v20  ;;  %v6359_v52 = vsub.s32 4, %v10701_v33  ;;  %v6432_v44 = vmul.u32 %v6425_v5, %v6416_v32 }
 0x27c   : > { %v6435_v56 = vadd.s32 1, %v10807_v42  ;;  %v8045_v45 = vadd.s32 4294967169, %v4411_v29  ;;  %8546 = vcosq.f32 %v2933_v62  ;;  %v4181_v36 = vsub.s32 4, %v10605_v4 }
 0x27d   : > { %vm10831_vm12 = vcmp.le.f32.partialorder %v12968_v2, 0.7853982  ;;  %v8043_v35 = vadd.s32 4294967294, %v4371_v12  ;;  %v10839_v24 = vmul.f32 %v10596_v21, %v5951_v60  ;;  %v6049_v18 = vsel %vm10781_vm10, %v10305_v27, %v6046_v15 }
 0x27e   : > { %v6361_v6 = vsel %vm10790_vm3, %v10485_v37, %v6358_v31  ;;  %vm6434_vm13 = vc.u32 %v10822_v47, %v10806_v59  ;;  %v4417_v5 = vadd.s32 1, %v8045_v45  ;;  %v4179_v17 = vxor.u32 2147483648, %v4178_v40 }
 0x27f   : > { %12971 = vst [vmem:[#allocation69_spill] sm:$0xff] %v10839_v24  ;;  %vm8044_vm2 = vcmp.lt.s32.totalorder %v8043_v35, 0  ;;  %v6436_v3 = vsel %vm6434_vm13, %v6435_v56, %v10807_v42  ;;  %v12769_v7 = vand.u32 2147483647, %v10695_v14  ;;  %v6360_v50 = vsel %vm6275_vm11, %v6359_v52, %v10701_v33 }
 0x280   : > { %v4374_v10 = vsel %vm8044_vm2, 0, %v8043_v35  ;;  %v6437_v19 = vadd.s32 %v6436_v3, %v6432_v44  ;;  %vm4418_vm0 = vcmp.gt.s32.totalorder %v4417_v5, 0  ;;  %v10856_v46 = vsel %vm10781_vm10, 0, %v6048_v55 }
 0x281   : > { %12972 = vst [vmem:[#allocation70_spill] sm:$0xff] %v10856_v46  ;;  %8548 = vcosq.f32 %v6361_v6  ;;  %v4379_v1 = vsub.s32 4294967266, %v4374_v10  ;;  %v4419_v32 = vsel %vm4418_vm0, %v4417_v5, 0  ;;  %v4182_v42 = vsel %vm4097_vm5, %v4181_v36, %v10605_v4 }
 0x282   : > { %8550 = vsinq.f32 %v2933_v62  ;;  %v6438_v48 = vadd.s32 536870912, %v6437_v19  ;;  %v4421_v29 = vand.u32 31, %v4419_v32  ;;  %v4180_v33 = vsel %vm4097_vm5, %v4179_v17, %v4178_v40 }
 0x283   : > { %8552 = vcosq.f32 %v6049_v18  ;;  %v6362_v60 = vsel %vm10790_vm3, 0, %v6360_v50  ;;  %v4380_v41 = vadd.s32 127, %v4379_v1  ;;  %v4375_v55 = vsub.s32 32, %v4374_v10 }
 0x284   : > { %v10865_v15 = vshrl.u32 %v6438_v48, 30  ;;  %v4414_v62 = vand.u32 8388607, %v12769_v7  ;;  %v6692_v31 = vand.u32 2139095040, %v10839_v24  ;;  %8554 = vsinq.f32 %v6049_v18 }
 0x285   : > { %v10872_v4 = vsel %vm10831_vm12, 0, %v4182_v42  ;;  %vm4305_vm14 = vcmp.lt.s32.totalorder %v10599_v49, 0  ;;  %v4422_v40 = vsub.s32 32, %v4421_v29  ;;  %v6366_v12 = vadd.s32 3, %v6362_v60 }
 0x286   : > { %12973 = vst [vmem:[#allocation71_spill] sm:$0xff] %v10872_v4  ;;  %v10875_v61 = vand.u32 3, %v6362_v60  ;;  %v4359_v2 = vadd.s32 %v10744_v13, %v10742_v23  ;;  %v6440_v52 = vshll.u32 %v10865_v15, 30  ;;  %v10880_v44 = vpop.eup %8546  ;;  %v10885_v56 = vsel %vm10831_vm12, %v10366_v20, %v4180_v33 }
 0x287   : > { %12974 = vst [vmem:[#allocation72_spill] sm:$0xff] %v10880_v44  ;;  %8556 = vsinq.f32 %v6361_v6  ;;  %v4381_v45 = vshll.u32 %v4380_v41, 23  ;;  %v4389_v36 = vsub.s32 4, %v10768_v58  ;;  %v4415_v5 = vor.u32 8388608, %v4414_v62 }
 0x288   : > { %v4377_v35 = vshrl.u32 %v4359_v2, %v4375_v55  ;;  %v10888_v18 = vsub.s32 %v6437_v19, %v6440_v52  ;;  %v6693_v17 = vshrl.u32 %v6692_v31, 23  ;;  %v4376_v23 = vshll.u32 %v10794_v30, %v4374_v10 }
 0x289   : > { %v10891_v13 = vshrl.u32 %v4419_v32, 5  ;;  %v4424_v3 = vshll.u32 %v12857_v63, %v4421_v29  ;;  %v4425_v50 = vshrl.u32 %v12849_v51, %v4422_v40  ;;  %v4427_v6 = vshll.u32 %v12849_v51, %v4421_v29 }
 0x28a   : > { %v6443_v9 = vsub.s32 0, %v10888_v18  ;;  %v4428_v1 = vshrl.u32 %v12850_v54, %v4422_v40  ;;  %v4431_v42 = vshrl.u32 %v12860_v57, %v4422_v40  ;;  %v4382_v48 = vor.u32 4788187, %v4381_v45 }
 0x28b   : > { %v10899_v19 = vpop.eup %8548  ;;  %v4430_v33 = vshll.u32 %v12850_v54, %v4421_v29  ;;  %v4433_v30 = vshll.u32 %v12860_v57, %v4421_v29  ;;  %v4434_v10 = vshrl.u32 %v12862_v39, %v4422_v40  ;;  %v4378_v60 = vor.u32 %v4377_v35, %v4376_v23 }
 0x28c   : > { %v10904_v32 = vpop.eup %8550  ;;  %v8122_v41 = vmin.u32 %v6443_v9, %v10888_v18  ;;  %v4426_v55 = vor.u32 %v4425_v50, %v4424_v3  ;;  %v4429_v62 = vor.u32 %v4428_v1, %v4427_v6  ;;  %v4436_v7 = vshll.u32 %v12862_v39, %v4421_v29 }
 0x28d   : > { %12975 = vst [vmem:[#allocation73_spill] sm:$0xff] %v10904_v32  ;;  %v10907_v31 = vpop.eup %8552  ;;  %v4432_v2 = vor.u32 %v4431_v42, %v4430_v33  ;;  %v4435_v52 = vor.u32 %v4434_v10, %v4433_v30  ;;  %v4437_v45 = vshrl.u32 %v12864_v38, %v4422_v40  ;;  %v10911_v46 = vand.u32 3, %v6366_v12 }
 0x28e   : > { %12976 = vst [vmem:[#allocation74_spill] sm:$0xff] %v10907_v31  ;;  %v6373_v27 = vxor.u32 2147483648, %v10899_v19  ;;  %v12977_v4 = vand.u32 2147483647, %v10599_v49  ;;  %v4390_v23 = vsel %vm4305_vm14, %v4389_v36, %v10768_v58  ;;  %v10923_v3 = vshll.u32 %v4415_v5, 8  ;;  %v10925_v50 = vpop.eup %8554 }
 0x28f   : > { %12980 = vst [vmem:[#allocation75_spill] sm:$0xff] %v10925_v50  ;;  %v4383_v29 = vand.u32 2147483647, %v4382_v48  ;;  %v6445_v9 = vclz %v8122_v41  ;;  %v4438_v12 = vor.u32 %v4437_v45, %v4436_v7  ;;  %vm4439_vm1 = vcmp.lt.s32.totalorder %v10891_v13, 1 }
 0x290   : > { %vm10916_vm15 = vcmp.le.f32.partialorder %v12977_v4, 0.7853982  ;;  %v4385_v6 = vcvt.s32.f32 %v4378_v60  ;;  %vm4442_vm8 = vcmp.lt.s32.totalorder %v10891_v13, 4  ;;  %v4447_v4 = vsel %vm4439_vm1, %v4426_v55, %v4429_v62 }
 0x291   : > { %v8133_v1 = vadd.s32 4294967169, %v6693_v17  ;;  %v8557_v42 = vpop.eup %8556  ;;  %vm7201_vm10 = vcmp.eq.s32.totalorder %v10875_v61, 0  ;;  %vm4441_vm3 = vcmp.lt.s32.totalorder %v10891_v13, 3  ;;  %v4444_v58 = vsel %vm4442_vm8, %v4432_v2, 2102212464 }
 0x292   : > { %v4448_v36 = vsel %vm4442_vm8, %v4435_v52, 920167782  ;;  %v4451_v5 = vsel %vm4439_vm1, %v4429_v62, %v4432_v2  ;;  %v4423_v7 = vshrl.u32 %v12857_v63, %v4422_v40  ;;  %vm4440_vm11 = vcmp.lt.s32.totalorder %v10891_v13, 2 }
 0x293   : > { %v4449_v48 = vsel %vm4441_vm3, %v4432_v2, %v4448_v36  ;;  %v4452_v33 = vsel %vm4442_vm8, %v4438_v12, 1326507024  ;;  %v4386_v30 = vmul.f32 %v4385_v6, %v4383_v29  ;;  %v8123_v10 = vadd.s32 4294967294, %v6445_v9 }
 0x294   : > { %v4450_v17 = vsel %vm4440_vm11, %v4447_v4, %v4449_v48  ;;  %v4453_v60 = vsel %vm4441_vm3, %v4435_v52, %v4452_v33  ;;  %v6370_v41 = vxor.u32 2147483648, %v8557_v42  ;;  %vm6379_vm5 = vcmp.lt.s32.totalorder %v10686_v26, 0 }
 0x295   : > { %v4443_v45 = vsel %vm4439_vm1, %v4423_v7, %v4426_v55  ;;  %v4445_v31 = vsel %vm4441_vm3, %v4429_v62, %v4444_v58  ;;  %v4454_v40 = vsel %vm4440_vm11, %v4451_v5, %v4453_v60  ;;  %vm6365_vm12 = vweird.f32 %v10485_v37 }
 0x296   : > { %v10945_v50 = vmul.u32.u64.low %v10923_v3, %v4454_v40  ;;  %v10946_v2 = vmul.u32.u64.high %v10923_v3, %v4454_v40, %v10945_v50  ;;  %v10949_v29 = vmul.u32.u64.low %v10923_v3, %v4450_v17  ;;  %v10950_v9 = vmul.u32.u64.high %v10923_v3, %v4450_v17, %v10949_v29 }
 0x297   : > { %vm6369_vm13 = vcmp.eq.s32.totalorder %v10911_v46, 0  ;;  %vm6372_vm2 = vcmp.eq.s32.totalorder %v10911_v46, 2  ;;  %vm7204_vm0 = vcmp.eq.s32.totalorder %v10875_v61, 2  ;;  %v6699_v55 = vadd.s32 1, %v8133_v1 }
 0x298   : > { %v4387_v62 = vxor.u32 2147483648, %v4386_v30  ;;  %v4392_v52 = vsel %vm10916_vm15, 0, %v4390_v23  ;;  %v12981_v50 = vand.u32 2147483647, %v10686_v26  ;;  %vm8124_vm8 = vcmp.lt.s32.totalorder %v8123_v10, 0 }
 0x299   : > { %v4446_v6 = vsel %vm4440_vm11, %v4443_v45, %v4445_v31  ;;  %v6371_v4 = vsel %vm6369_vm13, %v10899_v19, %v6370_v41  ;;  %v6374_v58 = vsel %vm6372_vm2, %v6373_v27, %v8557_v42  ;;  %v7206_v36 = vsel %vm7204_vm0, %v6373_v27, %v8557_v42 }
 0x29a   : > { %vm10961_vm1 = vcmp.le.f32.partialorder %v12981_v50, 0.7853982  ;;  %vm6700_vm3 = vcmp.gt.s32.totalorder %v6699_v55, 0  ;;  %v6463_v1 = vsub.s32 4, %v10865_v15  ;;  %vm4464_vm9 = vc.u32 %v10946_v2, %v10949_v29 }
 0x29b   : > { %v4465_v23 = vadd.s32 1, %v10950_v9  ;;  %v6701_v5 = vsel %vm6700_vm3, %v6699_v55, 0  ;;  %v7203_v7 = vsel %vm7201_vm10, %v10899_v19, %v6370_v41  ;;  %v6448_v48 = vsel %vm8124_vm8, 0, %v8123_v10  ;;  %v5927_v10 = vpop.permute.xlu1 %5926 }
 0x29c   : > { %v4462_v13 = vmul.u32 %v10923_v3, %v4446_v6  ;;  %v6703_v31 = vand.u32 31, %v6701_v5  ;;  %vm6368_vm11 = vcmp.lt.s32.totalorder %v10911_v46, 2  ;;  %v4388_v27 = vsel %vm4305_vm14, %v4387_v62, %v4386_v30 }
 0x29d   : > { %v4396_v42 = vadd.s32 3, %v4392_v52  ;;  %v4466_v33 = vsel %vm4464_vm9, %v4465_v23, %v10950_v9  ;;  %8558 = vcosq.f32 %v10885_v56  ;;  %v6375_v17 = vsel %vm6368_vm11, %v6371_v4, %v6374_v58 }
 0x29e   : > { %vm7200_vm13 = vcmp.lt.s32.totalorder %v10875_v61, 2  ;;  %v4467_v60 = vadd.s32 %v4466_v33, %v4462_v13  ;;  %v6453_v19 = vsub.s32 4294967266, %v6448_v48  ;;  %v6464_v3 = vsel %vm6379_vm5, %v6463_v1, %v10865_v15 }
 0x29f   : > { %v7207_v45 = vsel %vm7200_vm13, %v7203_v7, %v7206_v36  ;;  %v12777_v46 = vand.u32 2147483647, %v10839_v24  ;;  %8560 = vsinq.f32 %v10885_v56  ;;  %v4391_v30 = vsel %vm10916_vm15, %v10599_v49, %v4388_v27  ;;  %v5931_v13 = vpop.permute.xlu1 %5930 }
 0x2a0   : > { %v4468_v41 = vadd.s32 536870912, %v4467_v60  ;;  %v6704_v40 = vsub.s32 32, %v6703_v31  ;;  %v10992_v61 = vsel %vm6365_vm12, nan, %v6375_v17  ;;  %v10994_v9 = vand.u32 3, %v4396_v42 }
 0x2a1   : > { %12984 = vst [vmem:[#allocation76_spill] sm:$0xff] %v10992_v61  ;;  %v10996_v55 = vand.u32 3, %v4392_v52  ;;  %v6433_v15 = vadd.s32 %v10806_v59, %v10822_v47  ;;  %v11002_v56 = vsel %vm6365_vm12, nan, %v7207_v45  ;;  %v6449_v62 = vsub.s32 32, %v6448_v48 }
 0x2a2   : > { %12985 = vst [vmem:[#allocation77_spill] sm:$0xff] %v11002_v56  ;;  %v11006_v35 = vsel %vm10961_vm1, 0, %v6464_v3  ;;  %v11008_v50 = vshrl.u32 %v4468_v41, 30  ;;  %8562 = vcosq.f32 %v4391_v30  ;;  %v6454_v6 = vadd.s32 127, %v6453_v19 }
 0x2a3   : > { %12986 = vst [vmem:[#allocation78_spill] sm:$0xff] %v11006_v35  ;;  %v6696_v52 = vand.u32 8388607, %v12777_v46  ;;  %v6706_v4 = vshll.u32 %v12857_v63, %v6703_v31  ;;  %v6707_v37 = vshrl.u32 %v12849_v51, %v6704_v40  ;;  %v6709_v47 = vshll.u32 %v12849_v51, %v6703_v31 }
 0x2a4   : > { %v4470_v59 = vshll.u32 %v11008_v50, 30  ;;  %v6712_v58 = vshll.u32 %v12850_v54, %v6703_v31  ;;  %v6710_v36 = vshrl.u32 %v12850_v54, %v6704_v40  ;;  %v6713_v1 = vshrl.u32 %v12860_v57, %v6704_v40 }
 0x2a5   : > { %v6715_v23 = vshll.u32 %v12860_v57, %v6703_v31  ;;  %v6716_v7 = vshrl.u32 %v12862_v39, %v6704_v40  ;;  %8564 = vsinq.f32 %v4391_v30  ;;  %v6451_v27 = vshrl.u32 %v6433_v15, %v6449_v62 }
 0x2a6   : > { %v11021_v42 = vsub.s32 %v4467_v60, %v4470_v59  ;;  %v6702_v33 = vshrl.u32 %v6701_v5, 5  ;;  %v6450_v17 = vshll.u32 %v10888_v18, %v6448_v48  ;;  %v6455_v45 = vshll.u32 %v6454_v6, 23 }
 0x2a7   : > { %v6718_v19 = vshll.u32 %v12862_v39, %v6703_v31  ;;  %v11026_v3 = vmul.f32 %v10596_v21, %v5927_v10  ;;  %v11028_v41 = vpop.eup %8558  ;;  %v6697_v35 = vor.u32 8388608, %v6696_v52  ;;  %v6719_v20 = vshrl.u32 %v12864_v38, %v6704_v40 }
 0x2a8   : > { %12987 = vst [vmem:[#allocation79_spill] sm:$0xff] %v11028_v41  ;;  %v4473_v46 = vsub.s32 0, %v11021_v42  ;;  %v11033_v30 = vmul.f32 %v10596_v21, %v5931_v13  ;;  %v6708_v60 = vor.u32 %v6707_v37, %v6706_v4  ;;  %v6711_v5 = vor.u32 %v6710_v36, %v6709_v47 }
 0x2a9   : > { %v6714_v15 = vor.u32 %v6713_v1, %v6712_v58  ;;  %v6717_v18 = vor.u32 %v6716_v7, %v6715_v23  ;;  %v11035_v48 = vpop.eup %8560  ;;  %v11037_v31 = vor.u32 %v6451_v27, %v6450_v17  ;;  %vm4409_vm9 = vcmp.lt.s32.totalorder %v10695_v14, 0 }
 0x2aa   : > { %12988 = vst [vmem:[#allocation80_spill] sm:$0xff] %v11035_v48  ;;  %v8046_v10 = vmin.u32 %v4473_v46, %v11021_v42  ;;  %vm6721_vm14 = vcmp.lt.s32.totalorder %v6702_v33, 1  ;;  %vm6724_vm15 = vcmp.lt.s32.totalorder %v6702_v33, 4  ;;  %v6456_v62 = vor.u32 4788187, %v6455_v45 }
 0x2ab   : > { %v6705_v6 = vshrl.u32 %v12857_v63, %v6704_v40  ;;  %v6720_v52 = vor.u32 %v6719_v20, %v6718_v19  ;;  %vm6723_vm10 = vcmp.lt.s32.totalorder %v6702_v33, 3  ;;  %vm6722_vm12 = vcmp.lt.s32.totalorder %v6702_v33, 2 }
 0x2ac   : > { %v4475_v21 = vclz %v8046_v10  ;;  %v6726_v4 = vsel %vm6724_vm15, %v6714_v15, 2102212464  ;;  %v6737_v59 = vshll.u32 %v6697_v35, 8  ;;  %v11043_v37 = vpop.eup %8562  ;;  %v6729_v47 = vsel %vm6721_vm14, %v6708_v60, %v6711_v5 }
 0x2ad   : > { %v6730_v58 = vsel %vm6724_vm15, %v6717_v18, 920167782  ;;  %v6733_v46 = vsel %vm6721_vm14, %v6711_v5, %v6714_v15  ;;  %v12781_v36 = vand.u32 2147483647, %v11026_v3  ;;  %v4493_v40 = vsub.s32 4, %v11008_v50 }
 0x2ae   : > { %v8047_v1 = vadd.s32 4294967294, %v4475_v21  ;;  %v6731_v20 = vsel %vm6723_vm10, %v6714_v15, %v6730_v58  ;;  %v6734_v23 = vsel %vm6724_vm15, %v6720_v52, 1326507024  ;;  %v12989_v7 = vand.u32 2147483647, %v10695_v14 }
 0x2af   : > { %v6725_v13 = vsel %vm6721_vm14, %v6705_v6, %v6708_v60  ;;  %v6727_v27 = vsel %vm6723_vm10, %v6711_v5, %v6726_v4  ;;  %v6732_v17 = vsel %vm6722_vm12, %v6729_v47, %v6731_v20  ;;  %v6735_v45 = vsel %vm6723_vm10, %v6717_v18, %v6734_v23  ;;  %v11062_v19 = vpop.eup %8564  ;;  %v4073_v47 = vpop.permute.xlu1 %4072 }
 0x2b0   : > { %vm11054_vm2 = vcmp.le.f32.partialorder %v12989_v7, 0.7853982  ;;  %vm8048_vm0 = vcmp.lt.s32.totalorder %v8047_v1, 0  ;;  %v6736_v15 = vsel %vm6722_vm12, %v6733_v46, %v6735_v45  ;;  %v6068_v60 = vand.u32 2139095040, %v11026_v3 }
 0x2b1   : > { %v11065_v10 = vmul.u32.u64.low %v6737_v59, %v6732_v17  ;;  %v11066_v52 = vmul.u32.u64.high %v6737_v59, %v6732_v17, %v11065_v10  ;;  %v4478_v21 = vsel %vm8048_vm0, 0, %v8047_v1  ;;  %v4463_v5 = vadd.s32 %v10949_v29, %v10946_v2 }
 0x2b2   : > { %v11069_v58 = vmul.u32.u64.low %v6737_v59, %v6736_v15  ;;  %v11070_v7 = vmul.u32.u64.high %v6737_v59, %v6736_v15, %v11069_v58  ;;  %v4479_v6 = vsub.s32 32, %v4478_v21  ;;  %v4483_v18 = vsub.s32 4294967266, %v4478_v21 }
 0x2b3   : > { %v6728_v4 = vsel %vm6722_vm12, %v6725_v13, %v6727_v27  ;;  %vm4399_vm8 = vcmp.eq.s32.totalorder %v10994_v9, 0  ;;  %vm4402_vm3 = vcmp.eq.s32.totalorder %v10994_v9, 2  ;;  %v6457_v46 = vand.u32 2147483647, %v6456_v62 }
 0x2b4   : > { %v4494_v1 = vsel %vm4409_vm9, %v4493_v40, %v11008_v50  ;;  %v6069_v20 = vshrl.u32 %v6068_v60, 23  ;;  %v6172_v23 = vand.u32 2139095040, %v11033_v30  ;;  %v4480_v17 = vshll.u32 %v11021_v42, %v4478_v21 }
 0x2b5   : > { %v4481_v2 = vshrl.u32 %v4463_v5, %v4479_v6  ;;  %v4484_v29 = vadd.s32 127, %v4483_v18  ;;  %v6747_v33 = vadd.s32 1, %v11066_v52  ;;  %v6744_v13 = vmul.u32 %v6737_v59, %v6728_v4  ;;  %v4081_v4 = vpop.permute.xlu1 %4080 }
 0x2b6   : > { %vm6746_vm11 = vc.u32 %v11070_v7, %v11065_v10  ;;  %v8109_v27 = vadd.s32 4294967169, %v6069_v20  ;;  %v6072_v62 = vand.u32 8388607, %v12781_v36  ;;  %v6459_v45 = vcvt.s32.f32 %v11037_v31 }
 0x2b7   : > { %v4482_v50 = vor.u32 %v4481_v2, %v4480_v17  ;;  %v4485_v40 = vshll.u32 %v4484_v29, 23  ;;  %v6748_v15 = vsel %vm6746_vm11, %v6747_v33, %v11066_v52  ;;  %v12782_v42 = vxor.u32 2147483648, %v11043_v37 }
 0x2b8   : > { %v6749_v21 = vadd.s32 %v6748_v15, %v6744_v13  ;;  %v6075_v58 = vadd.s32 1, %v8109_v27  ;;  %v6173_v60 = vshrl.u32 %v6172_v23, 23  ;;  %v12783_v59 = vxor.u32 2147483648, %v11062_v19 }
 0x2b9   : > { %v11092_v5 = vmul.f32 %v6459_v45, %v6457_v46  ;;  %v4486_v6 = vor.u32 4788187, %v4485_v40  ;;  %v11096_v18 = vsel %vm11054_vm2, 0, %v4494_v1  ;;  %v6073_v20 = vor.u32 8388608, %v6072_v62  ;;  %v11104_v46 = vld [vmem:[%s12657_s1] ss:$0 sm:$0xff] }
 0x2ba   : > { %v6750_v31 = vadd.s32 536870912, %v6749_v21  ;;  %vm6076_vm13 = vcmp.gt.s32.totalorder %v6075_v58, 0  ;;  %v12784_v52 = vand.u32 2147483647, %v11033_v30  ;;  %v4489_v2 = vcvt.s32.f32 %v4482_v50 }
 0x2bb   : > { %v4487_v17 = vand.u32 2147483647, %v4486_v6  ;;  %v6077_v29 = vsel %vm6076_vm13, %v6075_v58, 0  ;;  %v8113_v33 = vadd.s32 4294967169, %v6173_v60  ;;  %v11107_v1 = vmul.f32 %v11104_v46, %v4073_v47 }
 0x2bc   : > { %v11099_v23 = vshrl.u32 %v6750_v31, 30  ;;  %v6079_v13 = vand.u32 31, %v6077_v29  ;;  %v11110_v27 = vmul.f32 %v11104_v46, %v4081_v4  ;;  %v11117_v62 = vsel %vm4399_vm8, %v11043_v37, %v12783_v59 }
 0x2bd   : > { %v11124_v45 = vsel %vm4402_vm3, %v12782_v42, %v11062_v19  ;;  %v4490_v50 = vmul.f32 %v4489_v2, %v4487_v17  ;;  %v11128_v40 = vadd.s32 3, %v11096_v18  ;;  %v11131_v60 = vshll.u32 %v6073_v20, 8  ;;  %v8490_v20 = vld [vmem:[%s12659_s3] sm:$0xff]  }
 0x2be   : > { %v6752_v15 = vshll.u32 %v11099_v23, 30  ;;  %v6080_v58 = vsub.s32 32, %v6079_v13  ;;  %v11133_v4 = vshrl.u32 %v6077_v29, 5  ;;  %v11137_v31 = vand.u32 8388607, %v12784_v52  ;;  %8220 = vmatprep.subr.bf16.mxu0 %v8490_v20 }
 0x2bf   : > { %v4491_v6 = vxor.u32 2147483648, %v4490_v50  ;;  %v6179_v36 = vadd.s32 1, %v8113_v33  ;;  %v6082_v17 = vshll.u32 %v12857_v63, %v6079_v13  ;;  %v6085_v47 = vshll.u32 %v12849_v51, %v6079_v13  ;;  %8221 = vmatpush3.bf16.msra.mxu0 %v8490_v20 }
 0x2c0   : > { %v11139_v42 = vsub.s32 %v6749_v21, %v6752_v15  ;;  %v6083_v2 = vshrl.u32 %v12849_v51, %v6080_v58  ;;  %v6086_v59 = vshrl.u32 %v12850_v54, %v6080_v58  ;;  %v6088_v52 = vshll.u32 %v12850_v54, %v6079_v13 }
 0x2c1   : > { %v4492_v29 = vsel %vm4409_vm9, %v4491_v6, %v4490_v50  ;;  %v6089_v21 = vshrl.u32 %v12860_v57, %v6080_v58  ;;  %v6091_v41 = vshll.u32 %v12860_v57, %v6079_v13  ;;  %v6092_v48 = vshrl.u32 %v12862_v39, %v6080_v58 }
 0x2c2   : > { %v4495_v33 = vsel %vm11054_vm2, %v10695_v14, %v4492_v29  ;;  %v6755_v15 = vsub.s32 0, %v11139_v42  ;;  %vm4398_vm14 = vcmp.lt.s32.totalorder %v10994_v9, 2  ;;  %vm5232_vm9 = vcmp.eq.s32.totalorder %v10996_v55, 0 }
 0x2c3   : > { %vm5235_vm15 = vcmp.eq.s32.totalorder %v10996_v55, 2  ;;  %8566 = vcosq.f32 %v4495_v33  ;;  %v6084_v50 = vor.u32 %v6083_v2, %v6082_v17  ;;  %v6087_v6 = vor.u32 %v6086_v59, %v6085_v47 }
 0x2c4   : > { %v6090_v53 = vor.u32 %v6089_v21, %v6088_v52  ;;  %v8134_v35 = vmin.u32 %v6755_v15, %v11139_v42  ;;  %v6093_v29 = vor.u32 %v6092_v48, %v6091_v41  ;;  %v6094_v43 = vshll.u32 %v12862_v39, %v6079_v13 }
 0x2c5   : > { %v6095_v44 = vshrl.u32 %v12864_v38, %v6080_v58  ;;  %8568 = vsinq.f32 %v4495_v33  ;;  %v6081_v32 = vshrl.u32 %v12857_v63, %v6080_v58  ;;  %vm6097_vm10 = vcmp.lt.s32.totalorder %v11133_v4, 1 }
 0x2c6   : > { %vm6100_vm12 = vcmp.lt.s32.totalorder %v11133_v4, 4  ;;  %vm5231_vm2 = vcmp.lt.s32.totalorder %v10996_v55, 2  ;;  %v6757_v17 = vclz %v8134_v35  ;;  %vm6098_vm0 = vcmp.lt.s32.totalorder %v11133_v4, 2 }
 0x2c7   : > { %v6096_v59 = vor.u32 %v6095_v44, %v6094_v43  ;;  %v6102_v52 = vsel %vm6100_vm12, %v6090_v53, 2102212464  ;;  %vm4395_vm8 = vweird.f32 %v10599_v49  ;;  %vm6099_vm3 = vcmp.lt.s32.totalorder %v11133_v4, 3 }
 0x2c8   : > { %v6105_v41 = vsel %vm6097_vm10, %v6084_v50, %v6087_v6  ;;  %v6106_v48 = vsel %vm6100_vm12, %v6093_v29, 920167782  ;;  %v6109_v13 = vsel %vm6097_vm10, %v6087_v6, %v6090_v53  ;;  %v8135_v47 = vadd.s32 4294967294, %v6757_v17 }
 0x2c9   : > { %v6101_v58 = vsel %vm6097_vm10, %v6081_v32, %v6084_v50  ;;  %v6107_v2 = vsel %vm6099_vm3, %v6090_v53, %v6106_v48  ;;  %v6110_v20 = vsel %vm6100_vm12, %v6096_v59, 1326507024  ;;  %v6103_v21 = vsel %vm6099_vm3, %v6087_v6, %v6102_v52 }
 0x2ca   : > { %v6108_v33 = vsel %vm6098_vm0, %v6105_v41, %v6107_v2  ;;  %v6111_v15 = vsel %vm6099_vm3, %v6093_v29, %v6110_v20  ;;  %vm6180_vm11 = vcmp.gt.s32.totalorder %v6179_v36, 0  ;;  %vm8136_vm13 = vcmp.lt.s32.totalorder %v8135_v47, 0 }
 0x2cb   : > { %v6112_v43 = vsel %vm6098_vm0, %v6109_v13, %v6111_v15  ;;  %v11176_v44 = vmul.u32.u64.low %v11131_v60, %v6108_v33  ;;  %v11177_v35 = vmul.u32.u64.high %v11131_v60, %v6108_v33, %v11176_v44  ;;  %v6760_v22 = vsel %vm8136_vm13, 0, %v8135_v47 }
 0x2cc   : > { %v11181_v32 = vmul.u32.u64.low %v11131_v60, %v6112_v43  ;;  %v11182_v53 = vmul.u32.u64.high %v11131_v60, %v6112_v43, %v11181_v32  ;;  %v6181_v50 = vsel %vm6180_vm11, %v6179_v36, 0  ;;  %v4405_v6 = vsel %vm4398_vm14, %v11117_v62, %v11124_v45 }
 0x2cd   : > { %v12992_v29 = vxor.u32 2147483648, %v11062_v19  ;;  %v12993_v59 = vxor.u32 2147483648, %v11043_v37  ;;  %v6765_v41 = vsub.s32 4294967266, %v6760_v22  ;;  %v11198_v48 = vpop.eup %8566  ;;  %v12994_v36 = vxor.u32 2147483648, %v11092_v5 }
 0x2ce   : > { %v11206_v62 = vand.u32 3, %v11096_v18  ;;  %v6761_v45 = vsub.s32 32, %v6760_v22  ;;  %v6183_v13 = vand.u32 31, %v6181_v50  ;;  %v11209_v47 = vand.u32 3, %v11128_v40 }
 0x2cf   : > { %v5234_v17 = vsel %vm5232_vm9, %v11043_v37, %v12992_v29  ;;  %v5237_v52 = vsel %vm5235_vm15, %v12993_v59, %v11062_v19  ;;  %v6462_v9 = vsel %vm6379_vm5, %v12994_v36, %v11092_v5  ;;  %v6766_v37 = vadd.s32 127, %v6765_v41  ;;  %v11214_v20 = vpop.eup %8568 }
 0x2d0   : > { %v6104_v19 = vsel %vm6098_vm0, %v6101_v58, %v6103_v21  ;;  %v6123_v2 = vadd.s32 1, %v11177_v35  ;;  %v11218_v33 = vsel %vm5231_vm2, %v5234_v17, %v5237_v52  ;;  %v6745_v5 = vadd.s32 %v11065_v10, %v11070_v7 }
 0x2d1   : > { %vm6122_vm5 = vc.u32 %v11182_v53, %v11176_v44  ;;  %v6177_v18 = vor.u32 8388608, %v11137_v31  ;;  %v11227_v40 = vsel %vm4395_vm8, nan, %v4405_v6  ;;  %v11232_v4 = vsel %vm10961_vm1, %v10686_v26, %v6462_v9 }
 0x2d2   : > { %12995 = vst [vmem:[#allocation81_spill] sm:$0xff] %v11227_v40  ;;  %v6767_v55 = vshll.u32 %v6766_v37, 23  ;;  %v6184_v58 = vsub.s32 32, %v6183_v13  ;;  %vm5338_vm14 = vcmp.eq.s32.totalorder %v11206_v62, 2  ;;  %v6763_v21 = vshrl.u32 %v6745_v5, %v6761_v45 }
 0x2d3   : > { %v6120_v10 = vmul.u32 %v11131_v60, %v6104_v19  ;;  %v6124_v7 = vsel %vm6122_vm5, %v6123_v2, %v11177_v35  ;;  %vm4503_vm9 = vcmp.eq.s32.totalorder %v11209_v47, 0  ;;  %vm4506_vm15 = vcmp.eq.s32.totalorder %v11209_v47, 2 }
 0x2d4   : > { %v6768_v31 = vor.u32 4788187, %v6767_v55  ;;  %v6762_v12 = vshll.u32 %v11139_v42, %v6760_v22  ;;  %v11241_v32 = vshll.u32 %v6177_v18, 8  ;;  %v4514_v6 = vand.u32 2139095040, %v11107_v1 }
 0x2d5   : > { %v6125_v43 = vadd.s32 %v6124_v7, %v6120_v10  ;;  %v4504_v29 = vxor.u32 2147483648, %v11214_v20  ;;  %v4507_v60 = vxor.u32 2147483648, %v11198_v48  ;;  %v6182_v17 = vshrl.u32 %v6181_v50, 5 }
 0x2d6   : > { %v6187_v35 = vshrl.u32 %v12849_v51, %v6184_v58  ;;  %v6764_v59 = vor.u32 %v6763_v21, %v6762_v12  ;;  %v6186_v41 = vshll.u32 %v12857_v63, %v6183_v13  ;;  %v6190_v36 = vshrl.u32 %v12850_v54, %v6184_v58 }
 0x2d7   : > { %v6126_v52 = vadd.s32 536870912, %v6125_v43  ;;  %v6769_v9 = vand.u32 2147483647, %v6768_v31  ;;  %v6189_v22 = vshll.u32 %v12849_v51, %v6183_v13  ;;  %v6192_v42 = vshll.u32 %v12850_v54, %v6183_v13 }
 0x2d8   : > { %v6193_v45 = vshrl.u32 %v12860_v57, %v6184_v58  ;;  %v6188_v19 = vor.u32 %v6187_v35, %v6186_v41  ;;  %v6195_v50 = vshll.u32 %v12860_v57, %v6183_v13  ;;  %v6196_v2 = vshrl.u32 %v12862_v39, %v6184_v58 }
 0x2d9   : > { %v11252_v37 = vshrl.u32 %v6126_v52, 30  ;;  %vm5335_vm1 = vcmp.eq.s32.totalorder %v11206_v62, 0  ;;  %v6191_v5 = vor.u32 %v6190_v36, %v6189_v22  ;;  %v6198_v55 = vshll.u32 %v12862_v39, %v6183_v13 }
 0x2da   : > { %v6194_v18 = vor.u32 %v6193_v45, %v6192_v42  ;;  %v6199_v21 = vshrl.u32 %v12864_v38, %v6184_v58  ;;  %v6775_v10 = vsub.s32 4, %v11099_v23  ;;  %v6197_v31 = vor.u32 %v6196_v2, %v6195_v50 }
 0x2db   : > { %v6128_v7 = vshll.u32 %v11252_v37, 30  ;;  %v4515_v12 = vshrl.u32 %v4514_v6, 23  ;;  %v4508_v35 = vsel %vm4506_vm15, %v4507_v60, %v11214_v20  ;;  %v5340_v52 = vsel %vm5338_vm14, %v4507_v60, %v11214_v20 }
 0x2dc   : > { %vm6691_vm10 = vcmp.lt.s32.totalorder %v10839_v24, 0  ;;  %v6771_v41 = vcvt.s32.f32 %v6764_v59  ;;  %v6200_v13 = vor.u32 %v6199_v21, %v6198_v55  ;;  %v4505_v36 = vsel %vm4503_vm9, %v11198_v48, %v4504_v29 }
 0x2dd   : > { %v11271_v22 = vsub.s32 %v6125_v43, %v6128_v7  ;;  %vm6201_vm12 = vcmp.lt.s32.totalorder %v6182_v17, 1  ;;  %vm6204_vm2 = vcmp.lt.s32.totalorder %v6182_v17, 4  ;;  %v6185_v42 = vshrl.u32 %v12857_v63, %v6184_v58 }
 0x2de   : > { %v6772_v6 = vmul.f32 %v6771_v41, %v6769_v9  ;;  %v6206_v45 = vsel %vm6204_vm2, %v6194_v18, 2102212464  ;;  %v6209_v50 = vsel %vm6201_vm12, %v6188_v19, %v6191_v5  ;;  %vm6202_vm0 = vcmp.lt.s32.totalorder %v6182_v17, 2 }
 0x2df   : > { %v6131_v2 = vsub.s32 0, %v11271_v22  ;;  %vm6203_vm3 = vcmp.lt.s32.totalorder %v6182_v17, 3  ;;  %v6210_v20 = vsel %vm6204_vm2, %v6197_v31, 920167782  ;;  %vm4499_vm11 = vweird.f32 %v10695_v14 }
 0x2e0   : > { %v6205_v60 = vsel %vm6201_vm12, %v6185_v42, %v6188_v19  ;;  %v6211_v59 = vsel %vm6203_vm3, %v6194_v18, %v6210_v20  ;;  %v6213_v55 = vsel %vm6201_vm12, %v6191_v5, %v6194_v18  ;;  %v6214_v21 = vsel %vm6204_vm2, %v6200_v13, 1326507024 }
 0x2e1   : > { %v12996_v43 = vand.u32 2147483647, %v10839_v24  ;;  %v8110_v58 = vmin.u32 %v6131_v2, %v11271_v22  ;;  %v6207_v9 = vsel %vm6203_vm3, %v6191_v5, %v6206_v45  ;;  %v6212_v41 = vsel %vm6202_vm0, %v6209_v50, %v6211_v59 }
 0x2e2   : > { %v6215_v15 = vsel %vm6203_vm3, %v6197_v31, %v6214_v21  ;;  %v11286_v28 = vmul.u32.u64.low %v11241_v32, %v6212_v41  ;;  %v11287_v19 = vmul.u32.u64.high %v11241_v32, %v6212_v41, %v11286_v28  ;;  %v8049_v18 = vadd.s32 4294967169, %v4515_v12 }
 0x2e3   : > { %vm11278_vm13 = vcmp.le.f32.partialorder %v12996_v43, 0.7853982  ;;  %v6216_v26 = vsel %vm6202_vm0, %v6213_v55, %v6215_v15  ;;  %v5337_v13 = vsel %vm5335_vm1, %v11198_v48, %v4504_v29  ;;  %v6133_v42 = vclz %v8110_v58 }
 0x2e4   : > { %v11294_v20 = vmul.u32.u64.low %v11241_v32, %v6216_v26  ;;  %v11295_v2 = vmul.u32.u64.high %v11241_v32, %v6216_v26, %v11294_v20  ;;  %vm4502_vm5 = vcmp.lt.s32.totalorder %v11209_v47, 2  ;;  %vm5334_vm14 = vcmp.lt.s32.totalorder %v11206_v62, 2 }
 0x2e5   : > { %v6208_v15 = vsel %vm6202_vm0, %v6205_v60, %v6207_v9  ;;  %v4521_v5 = vadd.s32 1, %v8049_v18  ;;  %v4509_v31 = vsel %vm4502_vm5, %v4505_v36, %v4508_v35  ;;  %v6776_v12 = vsel %vm6691_vm10, %v6775_v10, %v11099_v23 }
 0x2e6   : > { %v8111_v45 = vadd.s32 4294967294, %v6133_v42  ;;  %v12999_v48 = vand.u32 2147483647, %v11107_v1  ;;  %v5341_v50 = vsel %vm5334_vm14, %v5337_v13, %v5340_v52  ;;  %v6773_v59 = vxor.u32 2147483648, %v6772_v6 }
 0x2e7   : > { %v6227_v26 = vadd.s32 1, %v11287_v19  ;;  %vm4522_vm9 = vcmp.gt.s32.totalorder %v4521_v5, 0  ;;  %v6224_v62 = vmul.u32 %v11241_v32, %v6208_v15  ;;  %vm6226_vm1 = vc.u32 %v11295_v2, %v11286_v28 }
 0x2e8   : > { %v4518_v29 = vand.u32 8388607, %v12999_v48  ;;  %vm8112_vm15 = vcmp.lt.s32.totalorder %v8111_v45, 0  ;;  %v4523_v47 = vsel %vm4522_vm9, %v4521_v5, 0  ;;  %8570 = vcosq.f32 %v11232_v4 }
 0x2e9   : > { %v11310_v17 = vsel %vm8112_vm15, 0, %v8111_v45  ;;  %v6228_v23 = vsel %vm6226_vm1, %v6227_v26, %v11287_v19  ;;  %v4525_v10 = vand.u32 31, %v4523_v47  ;;  %v11315_v35 = vsel %vm4499_vm11, nan, %v4509_v31 }
 0x2ea   : > { %13000 = vst [vmem:[#allocation82_spill] sm:$0xff] %v11315_v35  ;;  %v11319_v52 = vsel %vm4499_vm11, nan, %v5341_v50  ;;  %v6141_v32 = vsub.s32 4294967266, %v11310_v17  ;;  %v6229_v36 = vadd.s32 %v6228_v23, %v6224_v62  ;;  %v11325_v60 = vsel %vm4395_vm8, nan, %v11218_v33  ;;  %v4085_v50 = vpop.permute.xlu1 %4084 }
 0x2eb   : > { %8572 = vsinq.f32 %v11232_v4  ;;  %v11330_v55 = vsel %vm11278_vm13, 0, %v6776_v12  ;;  %v4526_v21 = vsub.s32 32, %v4525_v10  ;;  %v6774_v14 = vsel %vm6691_vm10, %v6773_v59, %v6772_v6 }
 0x2ec   : > { %13001 = vst [vmem:[#allocation83_spill] sm:$0xff] %v11330_v55  ;;  %v6230_v43 = vadd.s32 536870912, %v6229_v36  ;;  %v4519_v58 = vor.u32 8388608, %v4518_v29  ;;  %v12796_v9 = vand.u32 2147483647, %v11110_v27  ;;  %v6121_v33 = vadd.s32 %v11176_v44, %v11182_v53 }
 0x2ed   : > { %v6142_v4 = vadd.s32 127, %v6141_v32  ;;  %v4529_v18 = vshrl.u32 %v12849_v51, %v4526_v21  ;;  %v4532_v6 = vshrl.u32 %v12850_v54, %v4526_v21  ;;  %v4538_v13 = vshrl.u32 %v12862_v39, %v4526_v21 }
 0x2ee   : > { %v11341_v19 = vshrl.u32 %v6230_v43, 30  ;;  %v11349_v42 = vsel %vm11278_vm13, %v10839_v24, %v6774_v14  ;;  %v6151_v20 = vsub.s32 4, %v11252_v37  ;;  %v4535_v15 = vshrl.u32 %v12860_v57, %v4526_v21 }
 0x2ef   : > { %v4537_v44 = vshll.u32 %v12860_v57, %v4525_v10  ;;  %v11355_v5 = vshrl.u32 %v4523_v47, 5  ;;  %v4528_v31 = vshll.u32 %v12857_v63, %v4525_v10  ;;  %v4531_v12 = vshll.u32 %v12849_v51, %v4525_v10 }
 0x2f0   : > { %v6232_v53 = vshll.u32 %v11341_v19, 30  ;;  %v6137_v45 = vsub.s32 32, %v11310_v17  ;;  %v6143_v48 = vshll.u32 %v6142_v4, 23  ;;  %v4534_v7 = vshll.u32 %v12850_v54, %v4525_v10 }
 0x2f1   : > { %v4539_v29 = vor.u32 %v4538_v13, %v4537_v44  ;;  %v4530_v26 = vor.u32 %v4529_v18, %v4528_v31  ;;  %v4533_v62 = vor.u32 %v4532_v6, %v4531_v12  ;;  %v4541_v23 = vshrl.u32 %v12864_v38, %v4526_v21 }
 0x2f2   : > { %v11361_v59 = vsub.s32 %v6229_v36, %v6232_v53  ;;  %v11364_v32 = vpop.eup %8570  ;;  %vm6171_vm8 = vcmp.lt.s32.totalorder %v11033_v30, 0  ;;  %v4536_v47 = vor.u32 %v4535_v15, %v4534_v7  ;;  %v11367_v14 = vshll.u32 %v4519_v58, 8 }
 0x2f3   : > { %13002 = vst [vmem:[#allocation84_spill] sm:$0xff] %v11364_v32  ;;  %v4722_v43 = vand.u32 2139095040, %v11110_v27  ;;  %v11372_v4 = vand.u32 8388607, %v12796_v9  ;;  %v4540_v18 = vshll.u32 %v12862_v39, %v4525_v10  ;;  %vm4546_vm10 = vcmp.lt.s32.totalorder %v11355_v5, 4 }
 0x2f4   : > { %v6235_v36 = vsub.s32 0, %v11361_v59  ;;  %v11378_v6 = vmul.f32 %v11104_v46, %v4085_v50  ;;  %v6139_v15 = vshrl.u32 %v6121_v33, %v6137_v45  ;;  %v6144_v58 = vor.u32 4788187, %v6143_v48 }
 0x2f5   : > { %v11380_v13 = vpop.eup %8572  ;;  %vm4543_vm12 = vcmp.lt.s32.totalorder %v11355_v5, 1  ;;  %v4552_v44 = vsel %vm4546_vm10, %v4539_v29, 920167782  ;;  %v13005_v53 = vand.u32 2147483647, %v11033_v30  ;;  %v4542_v12 = vor.u32 %v4541_v23, %v4540_v18 }
 0x2f6   : > { %13003 = vst [vmem:[#allocation85_spill] sm:$0xff] %v11378_v6  ;;  %13004 = vst [vmem:[#allocation86_spill] sm:$0xff] %v11380_v13  ;;  %v8114_v10 = vmin.u32 %v6235_v36, %v11361_v59  ;;  %vm4545_vm0 = vcmp.lt.s32.totalorder %v11355_v5, 3  ;;  %v4551_v33 = vsel %vm4543_vm12, %v4530_v26, %v4533_v62  ;;  %v6138_v45 = vshll.u32 %v11271_v22, %v11310_v17 }
 0x2f7   : > { %vm11387_vm2 = vcmp.le.f32.partialorder %v13005_v53, 0.7853982  ;;  %v4527_v48 = vshrl.u32 %v12857_v63, %v4526_v21  ;;  %v4553_v7 = vsel %vm4545_vm0, %v4536_v47, %v4552_v44  ;;  %v4723_v50 = vshrl.u32 %v4722_v43, 23 }
 0x2f8   : > { %vm6067_vm3 = vcmp.lt.s32.totalorder %v11026_v3, 0  ;;  %v6237_v53 = vclz %v8114_v10  ;;  %v6255_v36 = vsub.s32 4, %v11341_v19  ;;  %vm4544_vm11 = vcmp.lt.s32.totalorder %v11355_v5, 2 }
 0x2f9   : > { %v4548_v23 = vsel %vm4546_vm10, %v4536_v47, 2102212464  ;;  %v6140_v18 = vor.u32 %v6139_v15, %v6138_v45  ;;  %v6225_v22 = vadd.s32 %v11286_v28, %v11295_v2  ;;  %v4554_v17 = vsel %vm4544_vm11, %v4551_v33, %v4553_v7 }
 0x2fa   : > { %v4555_v21 = vsel %vm4543_vm12, %v4533_v62, %v4536_v47  ;;  %v6145_v43 = vand.u32 2147483647, %v6144_v58  ;;  %v8115_v44 = vadd.s32 4294967294, %v6237_v53  ;;  %v4547_v10 = vsel %vm4543_vm12, %v4527_v48, %v4530_v26 }
 0x2fb   : > { %v4556_v41 = vsel %vm4546_vm10, %v4542_v12, 1326507024  ;;  %v4549_v15 = vsel %vm4545_vm0, %v4533_v62, %v4548_v23  ;;  %v11420_v2 = vmul.u32.u64.low %v11367_v14, %v4554_v17  ;;  %v11421_v33 = vmul.u32.u64.high %v11367_v14, %v4554_v17, %v11420_v2 }
 0x2fc   : > { %v4557_v28 = vsel %vm4545_vm0, %v4539_v29, %v4556_v41  ;;  %vm8116_vm13 = vcmp.lt.s32.totalorder %v8115_v44, 0  ;;  %v6256_v47 = vsel %vm6171_vm8, %v6255_v36, %v11341_v19  ;;  %v8057_v58 = vadd.s32 4294967169, %v4723_v50 }
 0x2fd   : > { %v4558_v26 = vsel %vm4544_vm11, %v4555_v21, %v4557_v28  ;;  %v6147_v12 = vcvt.s32.f32 %v6140_v18  ;;  %v6240_v45 = vsel %vm8116_vm13, 0, %v8115_v44  ;;  %v4550_v7 = vsel %vm4544_vm11, %v4547_v10, %v4549_v15  ;;  %v8491_v18 = vld [vmem:[%s12661_s5] sm:$0xff]  }
 0x2fe   : > { %v11430_v62 = vmul.u32.u64.low %v11367_v14, %v4558_v26  ;;  %v11431_v48 = vmul.u32.u64.high %v11367_v14, %v4558_v26, %v11430_v62  ;;  %v6241_v41 = vsub.s32 32, %v6240_v45  ;;  %v6245_v29 = vsub.s32 4294967266, %v6240_v45  ;;  %8240 = vmatprep.subr.bf16.mxu1 %v8491_v18 }
 0x2ff   : > { %v4729_v53 = vadd.s32 1, %v8057_v58  ;;  %v11435_v23 = vmul.f32 %v6147_v12, %v6145_v43  ;;  %v11439_v19 = vsel %vm11387_vm2, 0, %v6256_v47  ;;  %v4569_v50 = vadd.s32 1, %v11421_v33  ;;  %8241 = vmatpush3.bf16.msra.mxu1 %v8491_v18 }
 0x300   : > { %v4727_v36 = vor.u32 8388608, %v11372_v4  ;;  %v6242_v17 = vshll.u32 %v11361_v59, %v6240_v45  ;;  %v6243_v21 = vshrl.u32 %v6225_v22, %v6241_v41  ;;  %v6246_v5 = vadd.s32 127, %v6245_v29 }
 0x301   : > { %vm4730_vm5 = vcmp.gt.s32.totalorder %v4729_v53, 0  ;;  %v11452_v43 = vsel %vm6067_vm3, %v6151_v20, %v11252_v37  ;;  %v4566_v44 = vmul.u32 %v11367_v14, %v4550_v7  ;;  %vm4568_vm14 = vc.u32 %v11431_v48, %v11420_v2 }
 0x302   : > { %v4731_v4 = vsel %vm4730_vm5, %v4729_v53, 0  ;;  %8574 = vcosq.f32 %v11349_v42  ;;  %v6244_v59 = vor.u32 %v6243_v21, %v6242_v17  ;;  %v6247_v22 = vshll.u32 %v6246_v5, 23 }
 0x303   : > { %v4570_v10 = vsel %vm4568_vm14, %v4569_v50, %v11421_v33  ;;  %v11461_v28 = vadd.s32 3, %v11439_v19  ;;  %v4733_v20 = vand.u32 31, %v4731_v4  ;;  %v11463_v47 = vshll.u32 %v4727_v36, 8 }
 0x304   : > { %v4571_v37 = vadd.s32 %v4570_v10, %v4566_v44  ;;  %v6248_v14 = vor.u32 4788187, %v6247_v22  ;;  %v4826_v58 = vand.u32 2139095040, %v11378_v6  ;;  %v6251_v12 = vcvt.s32.f32 %v6244_v59 }
 0x305   : > { %v4732_v62 = vshrl.u32 %v4731_v4, 5  ;;  %v4734_v41 = vsub.s32 32, %v4733_v20  ;;  %v4736_v29 = vshll.u32 %v12857_v63, %v4733_v20  ;;  %v4739_v7 = vshll.u32 %v12849_v51, %v4733_v20 }
 0x306   : > { %v4572_v45 = vadd.s32 536870912, %v4571_v37  ;;  %v6249_v33 = vand.u32 2147483647, %v6248_v14  ;;  %v4742_v53 = vshll.u32 %v12850_v54, %v4733_v20  ;;  %v4745_v17 = vshll.u32 %v12860_v57, %v4733_v20 }
 0x307   : > { %v4737_v36 = vshrl.u32 %v12849_v51, %v4734_v41  ;;  %v4740_v18 = vshrl.u32 %v12850_v54, %v4734_v41  ;;  %v4743_v5 = vshrl.u32 %v12860_v57, %v4734_v41  ;;  %v4746_v44 = vshrl.u32 %v12862_v39, %v4734_v41 }
 0x308   : > { %v11470_v50 = vshrl.u32 %v4572_v45, 30  ;;  %v6252_v21 = vmul.f32 %v6251_v12, %v6249_v33  ;;  %v4749_v4 = vshrl.u32 %v12864_v38, %v4734_v41  ;;  %v13008_v59 = vand.u32 2147483647, %v11026_v3 }
 0x309   : > { %v4738_v14 = vor.u32 %v4737_v36, %v4736_v29  ;;  %v4741_v45 = vor.u32 %v4740_v18, %v4739_v7  ;;  %v4748_v49 = vshll.u32 %v12862_v39, %v4733_v20  ;;  %v4744_v12 = vor.u32 %v4743_v5, %v4742_v53  ;;  %v5943_v36 = vpop.permute.xlu1 %5942 }
 0x30a   : > { %vm11480_vm9 = vcmp.le.f32.partialorder %v13008_v59, 0.7853982  ;;  %v4574_v10 = vshll.u32 %v11470_v50, 30  ;;  %v6253_v9 = vxor.u32 2147483648, %v6252_v21  ;;  %v4747_v33 = vor.u32 %v4746_v44, %v4745_v17 }
 0x30b   : > { %v4827_v26 = vshrl.u32 %v4826_v58, 23  ;;  %v4750_v55 = vor.u32 %v4749_v4, %v4748_v49  ;;  %vm4751_vm15 = vcmp.lt.s32.totalorder %v4732_v62, 1  ;;  %vm4754_vm1 = vcmp.lt.s32.totalorder %v4732_v62, 4 }
 0x30c   : > { %v11486_v15 = vsub.s32 %v4571_v37, %v4574_v10  ;;  %v11488_v24 = vpop.eup %8574  ;;  %v6254_v59 = vsel %vm6171_vm8, %v6253_v9, %v6252_v21  ;;  %v4735_v40 = vshrl.u32 %v12857_v63, %v4734_v41  ;;  %vm4752_vm10 = vcmp.lt.s32.totalorder %v4732_v62, 2 }
 0x30d   : > { %13011 = vst [vmem:[#allocation87_spill] sm:$0xff] %v11488_v24  ;;  %v4756_v29 = vsel %vm4754_vm1, %v4744_v12, 2102212464  ;;  %v6257_v20 = vsel %vm11387_vm2, %v11033_v30, %v6254_v59  ;;  %vm4753_vm12 = vcmp.lt.s32.totalorder %v4732_v62, 3  ;;  %v4759_v49 = vsel %vm4751_vm15, %v4738_v14, %v4741_v45 }
 0x30e   : > { %v4577_v37 = vsub.s32 0, %v11486_v15  ;;  %8576 = vcosq.f32 %v6257_v20  ;;  %v4755_v58 = vsel %vm4751_vm15, %v4735_v40, %v4738_v14  ;;  %v4760_v7 = vsel %vm4754_vm1, %v4747_v33, 920167782 }
 0x30f   : > { %v4763_v53 = vsel %vm4751_vm15, %v4741_v45, %v4744_v12  ;;  %v4757_v41 = vsel %vm4753_vm12, %v4741_v45, %v4756_v29  ;;  %v4761_v18 = vsel %vm4753_vm12, %v4744_v12, %v4760_v7  ;;  %v4764_v17 = vsel %vm4754_vm1, %v4750_v55, 1326507024 }
 0x310   : > { %v8050_v9 = vmin.u32 %v4577_v37, %v11486_v15  ;;  %8578 = vsinq.f32 %v6257_v20  ;;  %v4762_v31 = vsel %vm4752_vm10, %v4759_v49, %v4761_v18  ;;  %v4765_v21 = vsel %vm4753_vm12, %v4747_v33, %v4764_v17 }
 0x311   : > { %v8061_v5 = vadd.s32 4294967169, %v4827_v26  ;;  %v4766_v4 = vsel %vm4752_vm10, %v4763_v53, %v4765_v21  ;;  %v11504_v40 = vmul.u32.u64.low %v11463_v47, %v4762_v31  ;;  %v11505_v10 = vmul.u32.u64.high %v11463_v47, %v4762_v31, %v11504_v40 }
 0x312   : > { %v4579_v44 = vclz %v8050_v9  ;;  %v11511_v14 = vsel %vm11480_vm9, 0, %v11452_v43  ;;  %vm4513_vm8 = vcmp.lt.s32.totalorder %v11107_v1, 0  ;;  %8580 = vsinq.f32 %v11349_v42  ;;  %v5947_v42 = vpop.permute.xlu1 %5946 }
 0x313   : > { %v11515_v55 = vmul.u32.u64.low %v11463_v47, %v4766_v4  ;;  %v11516_v45 = vmul.u32.u64.high %v11463_v47, %v4766_v4, %v11515_v55  ;;  %v4833_v26 = vadd.s32 1, %v8061_v5  ;;  %v13012_v12 = vxor.u32 2147483648, %v11435_v23 }
 0x314   : > { %v8051_v59 = vadd.s32 4294967294, %v4579_v44  ;;  %v4758_v29 = vsel %vm4752_vm10, %v4755_v58, %v4757_v41  ;;  %v11526_v43 = vand.u32 3, %v11439_v19  ;;  %v13013_v20 = vand.u32 2147483647, %v11378_v6 }
 0x315   : > { %v6150_v33 = vsel %vm6067_vm3, %v13012_v12, %v11435_v23  ;;  %vm4834_vm2 = vcmp.gt.s32.totalorder %v4833_v26, 0  ;;  %v11531_v49 = vmul.f32 %v11104_v46, %v5943_v36  ;;  %v11534_v7 = vand.u32 3, %v11461_v28 }
 0x316   : > { %v4830_v37 = vand.u32 8388607, %v13013_v20  ;;  %vm8052_vm0 = vcmp.lt.s32.totalorder %v8051_v59, 0  ;;  %v4777_v23 = vadd.s32 1, %v11505_v10  ;;  %v4835_v53 = vsel %vm4834_vm2, %v4833_v26, 0 }
 0x317   : > { %13014 = vst [vmem:[#allocation88_spill] sm:$0xff] %v11531_v49  ;;  %v6153_v19 = vsel %vm11480_vm9, %v11026_v3, %v6150_v33  ;;  %v4582_v62 = vsel %vm8052_vm0, 0, %v8051_v59  ;;  %v4774_v58 = vmul.u32 %v11463_v47, %v4758_v29  ;;  %vm4776_vm3 = vc.u32 %v11516_v45, %v11504_v40 }
 0x318   : > { %v4583_v36 = vsub.s32 32, %v4582_v62  ;;  %v4597_v9 = vsub.s32 4, %v11470_v50  ;;  %v4778_v28 = vsel %vm4776_vm3, %v4777_v23, %v11505_v10  ;;  %v11546_v41 = vmul.f32 %v11104_v46, %v5947_v42  ;;  %v8577_v18 = vpop.eup %8576 }
 0x319   : > { %vm7098_vm11 = vcmp.eq.s32.totalorder %v11526_v43, 0  ;;  %v4587_v17 = vsub.s32 4294967266, %v4582_v62  ;;  %v4779_v22 = vadd.s32 %v4778_v28, %v4774_v58  ;;  %v4831_v31 = vor.u32 8388608, %v4830_v37 }
 0x31a   : > { %13015 = vst [vmem:[#allocation89_spill] sm:$0xff] %v11546_v41  ;;  %v4837_v21 = vand.u32 31, %v4835_v53  ;;  %8582 = vcosq.f32 %v6153_v19  ;;  %vm6265_vm13 = vcmp.eq.s32.totalorder %v11534_v7, 0  ;;  %vm7101_vm5 = vcmp.eq.s32.totalorder %v11526_v43, 2  ;;  %v8579_v5 = vpop.eup %8578 }
 0x31b   : > { %v4567_v47 = vadd.s32 %v11420_v2, %v11431_v48  ;;  %8584 = vsinq.f32 %v6153_v19  ;;  %vm6268_vm14 = vcmp.eq.s32.totalorder %v11534_v7, 2  ;;  %v4780_v46 = vadd.s32 536870912, %v4779_v22 }
 0x31c   : > { %v11554_v44 = vshrl.u32 %v4835_v53, 5  ;;  %vm6264_vm9 = vcmp.lt.s32.totalorder %v11534_v7, 2  ;;  %v6269_v4 = vxor.u32 2147483648, %v8577_v18  ;;  %v11560_v55 = vsel %vm4513_vm8, %v4597_v9, %v11470_v50  ;;  %v11568_v59 = vpop.eup %8580 }
 0x31d   : > { %v4585_v10 = vshrl.u32 %v4567_v47, %v4583_v36  ;;  %v4838_v26 = vsub.s32 32, %v4837_v21  ;;  %vm7097_vm15 = vcmp.lt.s32.totalorder %v11526_v43, 2  ;;  %v4588_v2 = vadd.s32 127, %v4587_v17  ;;  %13016 = vst [vmem:[#allocation90_spill] sm:$0xff] %v11568_v59 }
 0x31e   : > { %v11563_v48 = vshrl.u32 %v4780_v46, 30  ;;  %v11565_v12 = vshll.u32 %v4831_v31, 8  ;;  %v6266_v29 = vxor.u32 2147483648, %v8579_v5  ;;  %v4584_v20 = vshll.u32 %v11486_v15, %v4582_v62 }
 0x31f   : > { %v6484_v37 = vand.u32 2139095040, %v11531_v49  ;;  %v4840_v23 = vshll.u32 %v12857_v63, %v4837_v21  ;;  %vm4855_vm1 = vcmp.lt.s32.totalorder %v11554_v44, 1  ;;  %vm4857_vm10 = vcmp.lt.s32.totalorder %v11554_v44, 3 }
 0x320   : > { %v4782_v42 = vshll.u32 %v11563_v48, 30  ;;  %v6270_v53 = vsel %vm6268_vm14, %v6269_v4, %v8579_v5  ;;  %v7103_v19 = vsel %vm7101_vm5, %v6269_v4, %v8579_v5  ;;  %v11581_v58 = vor.u32 %v4585_v10, %v4584_v20 }
 0x321   : > { %v4841_v15 = vshrl.u32 %v12849_v51, %v4838_v26  ;;  %v4589_v62 = vshll.u32 %v4588_v2, 23  ;;  %v4843_v9 = vshll.u32 %v12849_v51, %v4837_v21  ;;  %v4844_v28 = vshrl.u32 %v12850_v54, %v4838_v26  ;;  %v11600_v2 = vld [vmem:[%s12658_s2] sm:$0xff]  }
 0x322   : > { %v11584_v36 = vsub.s32 %v4779_v22, %v4782_v42  ;;  %vm4856_vm12 = vcmp.lt.s32.totalorder %v11554_v44, 2  ;;  %v6267_v17 = vsel %vm6265_vm13, %v8577_v18, %v6266_v29  ;;  %v7100_v31 = vsel %vm7098_vm11, %v8577_v18, %v6266_v29  ;;  %8230 = vmatprep.subr.bf16.mxu0 %v11600_v2 }
 0x323   : > { %v4839_v47 = vshrl.u32 %v12857_v63, %v4838_v26  ;;  %v4842_v5 = vor.u32 %v4841_v15, %v4840_v23  ;;  %v4845_v4 = vor.u32 %v4844_v28, %v4843_v9  ;;  %v4846_v22 = vshll.u32 %v12850_v54, %v4837_v21 }
 0x324   : > { %v4785_v46 = vsub.s32 0, %v11584_v36  ;;  %v4847_v10 = vshrl.u32 %v12860_v57, %v4838_v26  ;;  %v11602_v20 = vpop.eup %8582  ;;  %v13017_v42 = vand.u32 2147483647, %v11107_v1  ;;  %v4849_v29 = vshll.u32 %v12860_v57, %v4837_v21 }
 0x325   : > { %v4850_v23 = vshrl.u32 %v12862_v39, %v4838_v26  ;;  %v4852_v15 = vshll.u32 %v12862_v39, %v4837_v21  ;;  %v4853_v9 = vshrl.u32 %v12864_v38, %v4838_v26  ;;  %v11614_v28 = vpop.eup %8584  ;;  %vm6261_vm0 = vweird.f32 %v11033_v30 }
 0x326   : > { %vm11606_vm2 = vcmp.le.f32.partialorder %v13017_v42, 0.7853982  ;;  %v6271_v50 = vsel %vm6264_vm9, %v6267_v17, %v6270_v53  ;;  %v4590_v33 = vor.u32 4788187, %v4589_v62  ;;  %v8058_v42 = vmin.u32 %v4785_v46, %v11584_v36 }
 0x327   : > { %v4848_v24 = vor.u32 %v4847_v10, %v4846_v22  ;;  %v7104_v59 = vsel %vm7097_vm15, %v7100_v31, %v7103_v19  ;;  %v4851_v35 = vor.u32 %v4850_v23, %v4849_v29  ;;  %v4854_v21 = vor.u32 %v4853_v9, %v4852_v15 }
 0x328   : > { %vm4858_vm3 = vcmp.lt.s32.totalorder %v11554_v44, 4  ;;  %v4787_v26 = vclz %v8058_v42  ;;  %v4859_v32 = vsel %vm4855_vm1, %v4839_v47, %v4842_v5  ;;  %v4863_v7 = vsel %vm4855_vm1, %v4842_v5, %v4845_v4 }
 0x329   : > { %v4860_v13 = vsel %vm4858_vm3, %v4848_v24, 2102212464  ;;  %v4864_v62 = vsel %vm4858_vm3, %v4851_v35, 920167782  ;;  %v4867_v43 = vsel %vm4855_vm1, %v4845_v4, %v4848_v24  ;;  %v4868_v19 = vsel %vm4858_vm3, %v4854_v21, 1326507024 }
 0x32a   : > { %v4861_v53 = vsel %vm4857_vm10, %v4845_v4, %v4860_v13  ;;  %v4591_v17 = vand.u32 2147483647, %v4590_v33  ;;  %v4593_v31 = vcvt.s32.f32 %v11581_v58  ;;  %v8059_v46 = vadd.s32 4294967294, %v4787_v26 }
 0x32b   : > { %v4865_v22 = vsel %vm4857_vm10, %v4848_v24, %v4864_v62  ;;  %v4862_v47 = vsel %vm4856_vm12, %v4859_v32, %v4861_v53  ;;  %v4869_v13 = vsel %vm4857_vm10, %v4851_v35, %v4868_v19  ;;  %v6485_v10 = vshrl.u32 %v6484_v37, 23 }
 0x32c   : > { %v4866_v5 = vsel %vm4856_vm12, %v4863_v7, %v4865_v22  ;;  %vm8060_vm11 = vcmp.lt.s32.totalorder %v8059_v46, 0  ;;  %v4870_v33 = vsel %vm4856_vm12, %v4867_v43, %v4869_v13  ;;  %v11655_v35 = vsel %vm11606_vm2, 0, %v11560_v55 }
 0x32d   : > { %v11644_v58 = vmul.u32.u64.low %v11565_v12, %v4866_v5  ;;  %v11645_v4 = vmul.u32.u64.high %v11565_v12, %v4866_v5, %v11644_v58  ;;  %v4790_v24 = vsel %vm8060_vm11, 0, %v8059_v46  ;;  %v8125_v23 = vadd.s32 4294967169, %v6485_v10 }
 0x32e   : > { %v11649_v29 = vmul.u32.u64.low %v11565_v12, %v4870_v33  ;;  %v11650_v32 = vmul.u32.u64.high %v11565_v12, %v4870_v33, %v11649_v29  ;;  %v4775_v44 = vadd.s32 %v11504_v40, %v11516_v45  ;;  %v4791_v37 = vsub.s32 32, %v4790_v24  ;;  %v11687_v33 = vld [vmem:[%s12660_s4] sm:$0xff]  }
 0x32f   : > { %v4795_v15 = vsub.s32 4294967266, %v4790_v24  ;;  %v11661_v9 = vsel %vm6261_vm0, nan, %v6271_v50  ;;  %v11665_v42 = vsel %vm6261_vm0, nan, %v7104_v59  ;;  %v4594_v21 = vmul.f32 %v4593_v31, %v4591_v17  ;;  %8250 = vmatprep.subr.bf16.mxu1 %v11687_v33 }
 0x330   : > { %13020 = vst [vmem:[#allocation91_spill] sm:$0xff] %v11661_v9  ;;  %13021 = vst [vmem:[#allocation92_spill] sm:$0xff] %v11665_v42  ;;  %v6491_v26 = vadd.s32 1, %v8125_v23  ;;  %vm4721_vm13 = vcmp.lt.s32.totalorder %v11110_v27, 0  ;;  %v4878_v55 = vmul.u32 %v11565_v12, %v4862_v47  ;;  %v4881_v53 = vadd.s32 1, %v11645_v4 }
 0x331   : > { %v4796_v7 = vadd.s32 127, %v4795_v15  ;;  %v13022_v40 = vand.u32 2147483647, %v11531_v49  ;;  %v4793_v62 = vshrl.u32 %v4775_v44, %v4791_v37  ;;  %vm4880_vm5 = vc.u32 %v11650_v32, %v11644_v58 }
 0x332   : > { %vm6492_vm14 = vcmp.gt.s32.totalorder %v6491_v26, 0  ;;  %v13023_v30 = vand.u32 2139095040, %v11546_v41  ;;  %v4882_v43 = vsel %vm4880_vm5, %v4881_v53, %v11645_v4  ;;  %v4792_v12 = vshll.u32 %v11584_v36, %v4790_v24 }
 0x333   : > { %v6488_v45 = vand.u32 8388607, %v13022_v40  ;;  %v4797_v50 = vshll.u32 %v4796_v7, 23  ;;  %v6493_v19 = vsel %vm6492_vm14, %v6491_v26, 0  ;;  %v4805_v31 = vsub.s32 4, %v11563_v48 }
 0x334   : > { %v6589_v59 = vshrl.u32 %v13023_v30, 23  ;;  %v4883_v46 = vadd.s32 %v4882_v43, %v4878_v55  ;;  %v6495_v22 = vand.u32 31, %v6493_v19  ;;  %v4595_v13 = vxor.u32 2147483648, %v4594_v21 }
 0x335   : > { %v6489_v10 = vor.u32 8388608, %v6488_v45  ;;  %v4794_v4 = vor.u32 %v4793_v62, %v4792_v12  ;;  %v4798_v23 = vor.u32 4788187, %v4797_v50  ;;  %v6494_v44 = vshrl.u32 %v6493_v19, 5 }
 0x336   : > { %v4884_v29 = vadd.s32 536870912, %v4883_v46  ;;  %v6496_v36 = vsub.s32 32, %v6495_v22  ;;  %v8129_v24 = vadd.s32 4294967169, %v6589_v59  ;;  %v6498_v37 = vshll.u32 %v12857_v63, %v6495_v22 }
 0x337   : > { %v6501_v15 = vshll.u32 %v12849_v51, %v6495_v22  ;;  %v6504_v53 = vshll.u32 %v12850_v54, %v6495_v22  ;;  %v6507_v45 = vshll.u32 %v12860_v57, %v6495_v22  ;;  %v4596_v59 = vsel %vm4513_vm8, %v4595_v13, %v4594_v21 }
 0x338   : > { %v11692_v26 = vshrl.u32 %v4884_v29, 30  ;;  %v6499_v7 = vshrl.u32 %v12849_v51, %v6496_v36  ;;  %v6502_v55 = vshrl.u32 %v12850_v54, %v6496_v36  ;;  %v6505_v40 = vshrl.u32 %v12860_v57, %v6496_v36 }
 0x339   : > { %v6508_v62 = vshrl.u32 %v12862_v39, %v6496_v36  ;;  %v6511_v30 = vshrl.u32 %v12864_v38, %v6496_v36  ;;  %v11706_v50 = vsel %vm4721_vm13, %v4805_v31, %v11563_v48  ;;  %v6510_v19 = vshll.u32 %v12862_v39, %v6495_v22 }
 0x33a   : > { %v4886_v43 = vshll.u32 %v11692_v26, 30  ;;  %v6500_v12 = vor.u32 %v6499_v7, %v6498_v37  ;;  %v6503_v29 = vor.u32 %v6502_v55, %v6501_v15  ;;  %v6506_v47 = vor.u32 %v6505_v40, %v6504_v53 }
 0x33b   : > { %v6509_v5 = vor.u32 %v6508_v62, %v6507_v45  ;;  %v4801_v17 = vcvt.s32.f32 %v4794_v4  ;;  %v6529_v61 = vshll.u32 %v6489_v10, 8  ;;  %v13024_v42 = vand.u32 2147483647, %v11546_v41 }
 0x33c   : > { %v11710_v9 = vsub.s32 %v4883_v46, %v4886_v43  ;;  %v4799_v13 = vand.u32 2147483647, %v4798_v23  ;;  %v6512_v56 = vor.u32 %v6511_v30, %v6510_v19  ;;  %vm6516_vm8 = vcmp.lt.s32.totalorder %v6494_v44, 4 }
 0x33d   : > { %v11714_v21 = vand.u32 8388607, %v13024_v42  ;;  %v6595_v48 = vadd.s32 1, %v8129_v24  ;;  %v6497_v22 = vshrl.u32 %v12857_v63, %v6496_v36  ;;  %vm6513_vm9 = vcmp.lt.s32.totalorder %v6494_v44, 1 }
 0x33e   : > { %v4889_v31 = vsub.s32 0, %v11710_v9  ;;  %v6518_v37 = vsel %vm6516_vm8, %v6506_v47, 2102212464  ;;  %vm6514_vm15 = vcmp.lt.s32.totalorder %v6494_v44, 2  ;;  %vm6515_vm1 = vcmp.lt.s32.totalorder %v6494_v44, 3 }
 0x33f   : > { %v6521_v46 = vsel %vm6513_vm9, %v6500_v12, %v6503_v29  ;;  %v6522_v10 = vsel %vm6516_vm8, %v6509_v5, 920167782  ;;  %v6517_v42 = vsel %vm6513_vm9, %v6497_v22, %v6500_v12  ;;  %v6519_v15 = vsel %vm6515_vm1, %v6503_v29, %v6518_v37 }
 0x340   : > { %v8062_v4 = vmin.u32 %v4889_v31, %v11710_v9  ;;  %v6523_v23 = vsel %vm6515_vm1, %v6506_v47, %v6522_v10  ;;  %v4802_v7 = vmul.f32 %v4801_v17, %v4799_v13  ;;  %v6525_v55 = vsel %vm6513_vm9, %v6503_v29, %v6506_v47 }
 0x341   : > { %v6524_v24 = vsel %vm6514_vm15, %v6521_v46, %v6523_v23  ;;  %v6526_v53 = vsel %vm6516_vm8, %v6512_v56, 1326507024  ;;  %v11730_v30 = vsel %vm11606_vm2, %v11107_v1, %v4596_v59  ;;  %v6520_v43 = vsel %vm6514_vm15, %v6517_v42, %v6519_v15 }
 0x342   : > { %v4891_v36 = vclz %v8062_v4  ;;  %v6527_v40 = vsel %vm6515_vm1, %v6509_v5, %v6526_v53  ;;  %v11723_v45 = vmul.u32.u64.low %v6529_v61, %v6524_v24  ;;  %v11724_v62 = vmul.u32.u64.high %v6529_v61, %v6524_v24, %v11723_v45  ;;  %v13028_v4 = vld [vmem:[#allocation19_spill] sm:$0xff] }
 0x343   : > { %v6528_v17 = vsel %vm6514_vm15, %v6525_v55, %v6527_v40  ;;  %vm6596_vm10 = vcmp.gt.s32.totalorder %v6595_v48, 0  ;;  %v4879_v5 = vadd.s32 %v11644_v58, %v11650_v32  ;;  %v4909_v29 = vsub.s32 4, %v11692_v26 }
 0x344   : > { %v8063_v19 = vadd.s32 4294967294, %v4891_v36  ;;  %v11734_v47 = vmul.u32.u64.low %v6529_v61, %v6528_v17  ;;  %v11735_v12 = vmul.u32.u64.high %v6529_v61, %v6528_v17, %v11734_v47  ;;  %v6597_v56 = vsel %vm6596_vm10, %v6595_v48, 0 }
 0x345   : > { %v6593_v13 = vor.u32 8388608, %v11714_v21  ;;  %v6599_v18 = vand.u32 31, %v6597_v56  ;;  %v4803_v59 = vxor.u32 2147483648, %v4802_v7  ;;  %v6536_v31 = vmul.u32 %v6529_v61, %v6520_v43 }
 0x346   : > { %vm8064_vm12 = vcmp.lt.s32.totalorder %v8063_v19, 0  ;;  %v6539_v44 = vadd.s32 1, %v11724_v62  ;;  %v11742_v37 = vshrl.u32 %v6597_v56, 5  ;;  %v13025_v10 = vand.u32 2147483647, %v8711_v16 }
 0x347   : > { %v4894_v22 = vsel %vm8064_vm12, 0, %v8063_v19  ;;  %v6600_v46 = vsub.s32 32, %v6599_v18  ;;  %v6602_v21 = vshll.u32 %v12857_v63, %v6599_v18  ;;  %vm6538_vm0 = vc.u32 %v11735_v12, %v11723_v45 }
 0x348   : > { %vm11746_vm2 = vcmp.le.f32.partialorder %v13025_v10, 0.7853982  ;;  %v4895_v58 = vsub.s32 32, %v4894_v22  ;;  %v4899_v32 = vsub.s32 4294967266, %v4894_v22  ;;  %v6605_v15 = vshll.u32 %v12849_v51, %v6599_v18 }
 0x349   : > { %v434_v61 = vsel %vm11746_vm2, %v8711_v16, %v13028_v4  ;;  %v6603_v42 = vshrl.u32 %v12849_v51, %v6600_v46  ;;  %v6606_v23 = vshrl.u32 %v12850_v54, %v6600_v46  ;;  %v4896_v24 = vshll.u32 %v11710_v9, %v4894_v22 }
 0x34a   : > { %v4897_v55 = vshrl.u32 %v4879_v5, %v4895_v58  ;;  %v4900_v53 = vadd.s32 127, %v4899_v32  ;;  %v6540_v36 = vsel %vm6538_vm0, %v6539_v44, %v11724_v62  ;;  %v6608_v17 = vshll.u32 %v12850_v54, %v6599_v18 }
 0x34b   : > { %v6541_v40 = vadd.s32 %v6540_v36, %v6536_v31  ;;  %v6604_v43 = vor.u32 %v6603_v42, %v6602_v21  ;;  %v6609_v19 = vshrl.u32 %v12860_v57, %v6600_v46  ;;  %v6607_v56 = vor.u32 %v6606_v23, %v6605_v15  ;;  %v13032_v21 = vld [vmem:[#allocation5_spill] sm:$0xff] }
 0x34c   : > { %v4901_v47 = vshll.u32 %v4900_v53, 23  ;;  %v6611_v10 = vshll.u32 %v12860_v57, %v6599_v18  ;;  %v6612_v51 = vshrl.u32 %v12862_v39, %v6600_v46  ;;  %v13029_v4 = vand.u32 2147483647, %v11110_v27 }
 0x34d   : > { %v4804_v62 = vsel %vm4721_vm13, %v4803_v59, %v4802_v7  ;;  %v6542_v5 = vadd.s32 536870912, %v6541_v40  ;;  %v6610_v31 = vor.u32 %v6609_v19, %v6608_v17  ;;  %v6615_v54 = vshrl.u32 %v12864_v38, %v6600_v46 }
 0x34e   : > { %vm11768_vm3 = vcmp.le.f32.partialorder %v13029_v4, 0.7853982  ;;  %v4898_v44 = vor.u32 %v4897_v55, %v4896_v24  ;;  %v4902_v22 = vor.u32 4788187, %v4901_v47  ;;  %v6613_v58 = vor.u32 %v6612_v51, %v6611_v10 }
 0x34f   : > { %v6614_v57 = vshll.u32 %v12862_v39, %v6599_v18  ;;  %vm4825_vm11 = vcmp.lt.s32.totalorder %v11378_v6, 0  ;;  %v11777_v32 = vshrl.u32 %v6542_v5, 30  ;;  %vm6617_vm5 = vcmp.lt.s32.totalorder %v11742_v37, 1 }
 0x350   : > { %v432_v42 = vsub.s32 4, %v13032_v21  ;;  %8586 = vcosq.f32 %v434_v61  ;;  %v4903_v15 = vand.u32 2147483647, %v4902_v22  ;;  %vm6620_vm13 = vcmp.lt.s32.totalorder %v11742_v37, 4 }
 0x351   : > { %v6616_v7 = vor.u32 %v6615_v54, %v6614_v57  ;;  %v6625_v38 = vsel %vm6617_vm5, %v6604_v43, %v6607_v56  ;;  %v6544_v59 = vshll.u32 %v11777_v32, 30  ;;  %vm6619_vm14 = vcmp.lt.s32.totalorder %v11742_v37, 3 }
 0x352   : > { %v6622_v39 = vsel %vm6620_vm13, %v6610_v31, 2102212464  ;;  %v6626_v18 = vsel %vm6620_vm13, %v6613_v58, 920167782  ;;  %v4905_v23 = vcvt.s32.f32 %v4898_v44  ;;  %v6601_v24 = vshrl.u32 %v12857_v63, %v6600_v46 }
 0x353   : > { %vm6618_vm8 = vcmp.lt.s32.totalorder %v11742_v37, 2  ;;  %v6627_v55 = vsel %vm6619_vm14, %v6610_v31, %v6626_v18  ;;  %v13033_v53 = vand.u32 2147483647, %v11378_v6  ;;  %v11800_v17 = vsub.s32 %v6541_v40, %v6544_v59 }
 0x354   : > { %v6628_v19 = vsel %vm6618_vm8, %v6625_v38, %v6627_v55  ;;  %v6629_v47 = vsel %vm6617_vm5, %v6607_v56, %v6610_v31  ;;  %v6633_v63 = vshll.u32 %v6593_v13, 8  ;;  %v4906_v46 = vmul.f32 %v4905_v23, %v4903_v15 }
 0x355   : > { %vm11796_vm9 = vcmp.le.f32.partialorder %v13033_v53, 0.7853982  ;;  %v6621_v10 = vsel %vm6617_vm5, %v6601_v24, %v6604_v43  ;;  %v6623_v51 = vsel %vm6619_vm14, %v6607_v56, %v6622_v39  ;;  %v6630_v4 = vsel %vm6620_vm13, %v6616_v7, 1326507024  ;;  %v13041_v39 = vld [vmem:[#allocation25_spill] sm:$0xff] }
 0x356   : > { %v6547_v40 = vsub.s32 0, %v11800_v17  ;;  %v6631_v5 = vsel %vm6619_vm14, %v6613_v58, %v6630_v4  ;;  %v11815_v54 = vmul.u32.u64.low %v6633_v63, %v6628_v19  ;;  %v11816_v44 = vmul.u32.u64.high %v6633_v63, %v6628_v19, %v11815_v54 }
 0x357   : > { %v11822_v13 = vsel %vm11768_vm3, 0, %v11706_v50  ;;  %v6632_v43 = vsel %vm6618_vm8, %v6629_v47, %v6631_v5  ;;  %v433_v56 = vsel %vm348_vm7, %v432_v42, %v13032_v21  ;;  %8588 = vsinq.f32 %v434_v61 }
 0x358   : > { %8590 = vcosq.f32 %v11730_v30  ;;  %v8126_v31 = vmin.u32 %v6547_v40, %v11800_v17  ;;  %v11831_v22 = vmul.u32.u64.low %v6633_v63, %v6632_v43  ;;  %v11832_v58 = vmul.u32.u64.high %v6633_v63, %v6632_v43, %v11831_v22 }
 0x359   : > { %v11837_v50 = vsel %vm11768_vm3, %v11110_v27, %v4804_v62  ;;  %v4910_v57 = vsel %vm4825_vm11, %v4909_v29, %v11692_v26  ;;  %v6624_v61 = vsel %vm6618_vm8, %v6621_v10, %v6623_v51  ;;  %v435_v21 = vsel %vm11746_vm2, 0, %v433_v56  ;;  %v13036_v62 = vld [vmem:[#allocation4_spill] sm:$0xff]  ;;  %v13040_v29 = vld [vmem:[#allocation11_spill] sm:$0xff] }
 0x35a   : > { %v11848_v42 = vpop.eup %8586  ;;  %v4907_v15 = vxor.u32 2147483648, %v4906_v46  ;;  %v6549_v7 = vclz %v8126_v31  ;;  %v6643_v9 = vadd.s32 1, %v11816_v44  ;;  %v13037_v38 = vand.u32 2147483647, %v13036_v62 }
 0x35b   : > { %8592 = vsinq.f32 %v11730_v30  ;;  %v439_v26 = vadd.s32 3, %v435_v21  ;;  %v536_v37 = vsub.s32 4, %v13040_v29  ;;  %v6640_v23 = vmul.u32 %v6633_v63, %v6624_v61 }
 0x35c   : > { %vm11853_vm7 = vcmp.le.f32.partialorder %v13037_v38, 0.7853982  ;;  %8594 = vcosq.f32 %v11837_v50  ;;  %v8127_v18 = vadd.s32 4294967294, %v6549_v7  ;;  %vm6642_vm15 = vc.u32 %v11832_v58, %v11815_v54 }
 0x35d   : > { %v538_v48 = vsel %vm11853_vm7, %v13036_v62, %v13041_v39  ;;  %v11868_v24 = vsel %vm11796_vm9, 0, %v4910_v57  ;;  %v6644_v30 = vsel %vm6642_vm15, %v6643_v9, %v11816_v44  ;;  %v537_v55 = vsel %vm452_vm4, %v536_v37, %v13040_v29 }
 0x35e   : > { %8596 = vcosq.f32 %v538_v48  ;;  %v4908_v53 = vsel %vm4825_vm11, %v4907_v15, %v4906_v46  ;;  %v6537_v19 = vadd.s32 %v11723_v45, %v11735_v12  ;;  %vm8128_vm1 = vcmp.lt.s32.totalorder %v8127_v18, 0 }
 0x35f   : > { %v6645_v47 = vadd.s32 %v6644_v30, %v6640_v23  ;;  %v6552_v63 = vsel %vm8128_vm1, 0, %v8127_v18  ;;  %v440_v10 = vand.u32 3, %v439_v26  ;;  %v539_v51 = vsel %vm11853_vm7, 0, %v537_v55 }
 0x360   : > { %8598 = vsinq.f32 %v538_v48  ;;  %v6553_v4 = vsub.s32 32, %v6552_v63  ;;  %v6557_v40 = vsub.s32 4294967266, %v6552_v63  ;;  %v446_v44 = vxor.u32 2147483648, %v11848_v42 }
 0x361   : > { %v6646_v5 = vadd.s32 536870912, %v6645_v47  ;;  %v8589_v43 = vpop.eup %8588  ;;  %v6554_v56 = vshll.u32 %v11800_v17, %v6552_v63  ;;  %v6567_v46 = vsub.s32 4, %v11777_v32  ;;  %v543_v31 = vadd.s32 3, %v539_v51 }
 0x362   : > { %v1277_v45 = vand.u32 3, %v435_v21  ;;  %v11883_v12 = vpop.eup %8590  ;;  %v6555_v22 = vshrl.u32 %v6537_v19, %v6553_v4  ;;  %v6558_v57 = vadd.s32 127, %v6557_v40  ;;  %vm438_vm4 = vweird.f32 %v8711_v16 }
 0x363   : > { %v11885_v61 = vshrl.u32 %v6646_v5, 30  ;;  %v443_v15 = vxor.u32 2147483648, %v8589_v43  ;;  %v11891_v7 = vsel %vm11796_vm9, %v11378_v6, %v4908_v53  ;;  %vm442_vm10 = vcmp.eq.s32.totalorder %v440_v10, 0  ;;  %v13108_v6 = vld [vmem:[#allocation60_spill] sm:$0xff] }
 0x364   : > { %vm445_vm12 = vcmp.eq.s32.totalorder %v440_v10, 2  ;;  %v1380_v17 = vand.u32 3, %v539_v51  ;;  %v6556_v9 = vor.u32 %v6555_v22, %v6554_v56  ;;  %v6559_v38 = vshll.u32 %v6558_v57, 23 }
 0x365   : > { %v6648_v21 = vshll.u32 %v11885_v61, 30  ;;  %v447_v59 = vsel %vm445_vm12, %v446_v44, %v8589_v43  ;;  %v11894_v26 = vpop.eup %8592  ;;  %vm441_vm2 = vcmp.lt.s32.totalorder %v440_v10, 2  ;;  %v444_v29 = vsel %vm442_vm10, %v11848_v42, %v443_v15 }
 0x366   : > { %vm542_vm0 = vweird.f32 %v13036_v62  ;;  %v544_v37 = vand.u32 3, %v543_v31  ;;  %vm1282_vm3 = vcmp.eq.s32.totalorder %v1277_v45, 2  ;;  %v11898_v36 = vpop.eup %8594  ;;  %vm6483_vm11 = vcmp.lt.s32.totalorder %v11531_v49, 0 }
 0x367   : > { %v6560_v39 = vor.u32 4788187, %v6559_v38  ;;  %v11901_v48 = vsub.s32 %v6645_v47, %v6648_v21  ;;  %vm1279_vm5 = vcmp.eq.s32.totalorder %v1277_v45, 0  ;;  %v1284_v18 = vsel %vm1282_vm3, %v446_v44, %v8589_v43 }
 0x368   : > { %v8597_v23 = vpop.eup %8596  ;;  %v448_v30 = vsel %vm441_vm2, %v444_v29, %v447_v59  ;;  %vm1278_vm13 = vcmp.lt.s32.totalorder %v1277_v45, 2  ;;  %v1281_v55 = vsel %vm1279_vm5, %v11848_v42, %v443_v15  ;;  %vm1381_vm14 = vcmp.lt.s32.totalorder %v1380_v17, 2  ;;  %v13042_v29 = vld [vmem:[#allocation18_spill] sm:$0xff] }
 0x369   : > { %v6561_v53 = vand.u32 2147483647, %v6560_v39  ;;  %v6563_v19 = vcvt.s32.f32 %v6556_v9  ;;  %v6651_v63 = vsub.s32 0, %v11901_v48  ;;  %v550_v10 = vxor.u32 2147483648, %v8597_v23 }
 0x36a   : > { %v8599_v51 = vpop.eup %8598  ;;  %vm545_vm8 = vcmp.lt.s32.totalorder %v544_v37, 2  ;;  %vm549_vm9 = vcmp.eq.s32.totalorder %v544_v37, 2  ;;  %v1285_v4 = vsel %vm1278_vm13, %v1281_v55, %v1284_v18  ;;  %vm1385_vm7 = vcmp.eq.s32.totalorder %v1380_v17, 2  ;;  %v13044_v55 = vld [vmem:[#allocation2_spill] sm:$0xff] }
 0x36b   : > { %v6564_v47 = vmul.f32 %v6563_v19, %v6561_v53  ;;  %v8130_v40 = vmin.u32 %v6651_v63, %v11901_v48  ;;  %v547_v5 = vxor.u32 2147483648, %v8599_v51  ;;  %v551_v44 = vsel %vm549_vm9, %v550_v10, %v8599_v51  ;;  %v13045_v53 = vld [vmem:[#allocation14_spill] sm:$0xff]  ;;  %v13046_v63 = vld [vmem:[#allocation3_spill] sm:$0xff] }
 0x36c   : > { %v11908_v43 = vsel %vm438_vm4, nan, %v448_v30  ;;  %vm546_vm15 = vcmp.eq.s32.totalorder %v544_v37, 0  ;;  %vm1382_vm1 = vcmp.eq.s32.totalorder %v1380_v17, 0  ;;  %v1387_v42 = vsel %vm1385_vm7, %v550_v10, %v8599_v51  ;;  %v13047_v10 = vld [vmem:[#allocation20_spill] sm:$0xff]  ;;  %v13048_v51 = vld [vmem:[#allocation22_spill] sm:$0xff] }
 0x36d   : > { %v6653_v56 = vclz %v8130_v40  ;;  %v548_v31 = vsel %vm546_vm15, %v8597_v23, %v547_v5  ;;  %v1384_v45 = vsel %vm1382_vm1, %v8597_v23, %v547_v5  ;;  %vm12810_vm10 = vcmask 130048  }
 0x36e   : > { %v6565_v22 = vxor.u32 2147483648, %v6564_v47  ;;  %v552_v57 = vsel %vm545_vm8, %v548_v31, %v551_v44  ;;  %v1286_v15 = vsel %vm438_vm4, nan, %v1285_v4  ;;  %v1388_v9 = vsel %vm1381_vm14, %v1384_v45, %v1387_v42  ;;  %v13050_v42 = vld [vmem:[#allocation8_spill] sm:$0xff]  ;;  %v13051_v45 = vld [vmem:[#allocation13_spill] sm:$0xff] }
 0x36f   : > { %v8131_v38 = vadd.s32 4294967294, %v6653_v56  ;;  %v11916_v21 = vsel %vm542_vm0, nan, %v552_v57  ;;  %v1389_v59 = vsel %vm542_vm0, nan, %v1388_v9  ;;  %v651_v39 = vxor.u32 2147483648, %v13042_v29 }
 0x370   : > { %8600 = vsinq.f32 %v11837_v50  ;;  %v11927_v16 = vsel %vm6483_vm11, %v6567_v46, %v11777_v32  ;;  %v2008_v37 = vpack.c.bf16 %v1389_v59, %v1286_v15  ;;  %v6641_v62 = vadd.s32 %v11815_v54, %v11832_v58  ;;  %v13043_v32 = vld [vmem:[#allocation10_spill] sm:$0xff] }
 0x371   : > { %8602 = vcosq.f32 %v11891_v7  ;;  %vm8132_vm4 = vcmp.lt.s32.totalorder %v8131_v38, 0  ;;  %v6671_v18 = vsub.s32 4, %v11885_v61  ;;  %v11937_v50 = vsel %vm6483_vm11, %v6565_v22, %v6564_v47  ;;  %v13049_v47 = vld [vmem:[#allocation21_spill] sm:$0xff] }
 0x372   : > { %v6656_v23 = vsel %vm8132_vm4, 0, %v8131_v38  ;;  %8222 = vmatprep.mubr.msk.bf16.mxu0 %vm12810_vm10, %v2008_v37  ;;  %vm650_vm12 = vcmp.eq.s32.totalorder %v13043_v32, 0  ;;  %vm653_vm2 = vcmp.eq.s32.totalorder %v13043_v32, 2  ;;  %vm646_vm0 = vweird.f32 %v13044_v55  ;;  %v13055_v37 = vld [vmem:[#allocation12_spill] sm:$0xff]  ;;  %v13075_v55 = vld [vmem:[#allocation9_spill] sm:$0xff] }
 0x373   : > { %v6657_v46 = vsub.s32 32, %v6656_v23  ;;  %v6661_v30 = vsub.s32 4294967266, %v6656_v23  ;;  %v652_v54 = vsel %vm650_vm12, %v13045_v53, %v651_v39  ;;  %v654_v58 = vxor.u32 2147483648, %v13045_v53 }
 0x374   : > { %v6658_v19 = vshll.u32 %v11901_v48, %v6656_v23  ;;  %vm750_vm3 = vweird.f32 %v13046_v63  ;;  %vm754_vm11 = vcmp.eq.s32.totalorder %v13047_v10, 0  ;;  %v755_v4 = vxor.u32 2147483648, %v13048_v51 }
 0x375   : > { %v758_v40 = vxor.u32 2147483648, %v13049_v47  ;;  %vm6587_vm5 = vcmp.lt.s32.totalorder %v11546_v41, 0  ;;  %v6659_v5 = vshrl.u32 %v6641_v62, %v6657_v46  ;;  %v6662_v44 = vadd.s32 127, %v6661_v30 }
 0x376   : > { %vm757_vm13 = vcmp.eq.s32.totalorder %v13047_v10, 2  ;;  %v1483_v56 = vand.u32 3, %v13050_v42  ;;  %vm753_vm14 = vcmp.lt.s32.totalorder %v13047_v10, 2  ;;  %v756_v48 = vsel %vm754_vm11, %v13049_v47, %v755_v4  ;;  %v13074_v10 = vld [vmem:[#allocation36_spill] sm:$0xff] }
 0x377   : > { %v759_v31 = vsel %vm757_vm13, %v758_v40, %v13048_v51  ;;  %v1586_v22 = vand.u32 3, %v13051_v45  ;;  %v13052_v57 = vand.u32 2147483647, %v11531_v49  ;;  %v6660_v9 = vor.u32 %v6659_v5, %v6658_v19 }
 0x378   : > { %v6663_v38 = vshll.u32 %v6662_v44, 23  ;;  %v655_v59 = vsel %vm653_vm2, %v654_v58, %v13042_v29  ;;  %v13056_v62 = vand.u32 2147483647, %v13055_v37  ;;  %v760_v46 = vsel %vm753_vm14, %v756_v48, %v759_v31  ;;  %v13062_v48 = vld [vmem:[#allocation23_spill] sm:$0xff] }
 0x379   : > { %vm11959_vm8 = vcmp.le.f32.partialorder %v13052_v57, 0.7853982  ;;  %vm1484_vm7 = vcmp.lt.s32.totalorder %v1483_v56, 2  ;;  %vm1485_vm15 = vcmp.eq.s32.totalorder %v1483_v56, 0  ;;  %vm1488_vm1 = vcmp.eq.s32.totalorder %v1483_v56, 2 }
 0x37a   : > { %vm11968_vm9 = vcmp.le.f32.partialorder %v13056_v62, 0.7853982  ;;  %v13059_v30 = vand.u32 2147483647, %v11546_v41  ;;  %v6664_v19 = vor.u32 4788187, %v6663_v38  ;;  %v6667_v5 = vcvt.s32.f32 %v6660_v9  ;;  %v11979_v42 = vpop.eup %8600 }
 0x37b   : > { %v1487_v44 = vsel %vm1485_vm15, %v13045_v53, %v651_v39  ;;  %vm1587_vm12 = vcmp.lt.s32.totalorder %v1586_v22, 2  ;;  %v1490_v45 = vsel %vm1488_vm1, %v654_v58, %v13042_v29  ;;  %vm1588_vm2 = vcmp.eq.s32.totalorder %v1586_v22, 0  ;;  %v11983_v56 = vpop.eup %8602  ;;  %v13063_v58 = vld [vmem:[#allocation38_spill] sm:$0xff] }
 0x37c   : > { %vm11974_vm4 = vcmp.le.f32.partialorder %v13059_v30, 0.7853982  ;;  %vm1591_vm11 = vcmp.eq.s32.totalorder %v1586_v22, 2  ;;  %v2307_v31 = vsub.s32 4, %v13062_v48  ;;  %v6665_v57 = vand.u32 2147483647, %v6664_v19 }
 0x37d   : > { %v1491_v62 = vsel %vm1484_vm7, %v1487_v44, %v1490_v45  ;;  %v1590_v30 = vsel %vm1588_vm2, %v13049_v47, %v755_v4  ;;  %v1593_v38 = vsel %vm1591_vm11, %v758_v40, %v13048_v51  ;;  %v2309_v22 = vsel %vm11968_vm9, %v13055_v37, %v13063_v58  ;;  %v13064_v45 = vld [vmem:[#allocation7_spill] sm:$0xff] }
 0x37e   : > { %v1492_v39 = vsel %vm646_vm0, nan, %v1491_v62  ;;  %v1594_v53 = vsel %vm1587_vm12, %v1590_v30, %v1593_v38  ;;  %v2308_v29 = vsel %vm2223_vm6, %v2307_v31, %v13062_v48  ;;  %v6668_v9 = vmul.f32 %v6667_v5, %v6665_v57  ;;  %v13068_v31 = vld [vmem:[#allocation15_spill] sm:$0xff] }
 0x37f   : > { %v1595_v19 = vsel %vm750_vm3, nan, %v1594_v53  ;;  %v2310_v51 = vsel %vm11968_vm9, 0, %v2308_v29  ;;  %8604 = vcosq.f32 %v2309_v22  ;;  %v6672_v4 = vsel %vm6587_vm5, %v6671_v18, %v11885_v61  ;;  %v13073_v53 = vld [vmem:[#allocation30_spill] sm:$0xff]  ;;  %v13077_v5 = vld [vmem:[#allocation43_spill] sm:$0xff] }
 0x380   : > { %v2009_v47 = vpack.c.bf16 %v1595_v19, %v1492_v39  ;;  %8606 = vsinq.f32 %v2309_v22  ;;  %v2314_v40 = vadd.s32 3, %v2310_v51  ;;  %v6669_v44 = vxor.u32 2147483648, %v6668_v9 }
 0x381   : > { %vm649_vm6 = vcmp.lt.s32.totalorder %v13043_v32, 2  ;;  %v13065_v48 = vand.u32 2147483647, %v13064_v45  ;;  %v2411_v23 = vsub.s32 4, %v13068_v31  ;;  %v6569_v57 = vsel %vm11959_vm8, %v11531_v49, %v11937_v50  ;;  %v13069_v32 = vld [vmem:[#allocation33_spill] sm:$0xff] }
 0x382   : > { %v656_v61 = vsel %vm649_vm6, %v652_v54, %v655_v59  ;;  %v12017_v18 = vsel %vm750_vm3, nan, %v760_v46  ;;  %8223 = vmatmul.mubr.msk.bf16.vlgmr.msra.gmra.mrb[0].mxu0 %vm12810_vm10, %v2009_v47  ;;  %v6670_v30 = vsel %vm6587_vm5, %v6669_v44, %v6668_v9  ;;  %v2315_v38 = vand.u32 3, %v2314_v40  ;;  %v12043_v46 = vld [vmem:[%s12661_s5] sm:$0xff]  }
 0x383   : > { %vm12006_vm13 = vcmp.le.f32.partialorder %v13065_v48, 0.7853982  ;;  %vm13070_vm14 = vcmp.lt.s32.totalorder %v13064_v45, 0  ;;  %8231 = vmatpush3.bf16.msra.mxu0 %v11600_v2  ;;  %v12034_v54 = vsel %vm11959_vm8, 0, %v11927_v16  ;;  %v12038_v63 = vsel %vm11974_vm4, 0, %v6672_v4  ;;  %v13076_v9 = vld [vmem:[#allocation34_spill] sm:$0xff] }
 0x384   : > { %v2413_v62 = vsel %vm12006_vm13, %v13064_v45, %v13069_v32  ;;  %v2412_v50 = vsel %vm13070_vm14, %v2411_v23, %v13068_v31  ;;  %13071 = vst [vmem:[#allocation19_spill] sm:$0xff] %v12034_v54  ;;  %13072 = vst [vmem:[#allocation5_spill] sm:$0xff] %v12038_v63  ;;  %v3152_v59 = vand.u32 3, %v2310_v51  ;;  %8260 = vmatprep.subr.bf16.mxu0 %v12043_v46  ;;  %vm2524_vm3 = vcmp.lt.s32.totalorder %v13073_v53, 2  ;;  %v13079_v32 = vld [vmem:[#allocation39_spill] sm:$0xff] }
 0x385   : > { %8608 = vcosq.f32 %v2413_v62  ;;  %v12049_v2 = vsel %vm11974_vm4, %v11546_v41, %v6670_v30  ;;  %v2414_v16 = vsel %vm12006_vm13, 0, %v2412_v50  ;;  %vm2316_vm5 = vcmp.lt.s32.totalorder %v2315_v38, 2 }
 0x386   : > { %8610 = vsinq.f32 %v11891_v7  ;;  %v12053_v7 = vsel %vm646_vm0, nan, %v656_v61  ;;  %v2418_v39 = vadd.s32 3, %v2414_v16  ;;  %v12060_v29 = vand.u32 3, %v2414_v16  ;;  %v13078_v61 = vld [vmem:[#allocation16_spill] sm:$0xff] }
 0x387   : > { %8612 = vcosq.f32 %v6569_v57  ;;  %v2526_v58 = vxor.u32 2147483648, %v13074_v10  ;;  %vm2313_vm0 = vweird.f32 %v13055_v37  ;;  %vm2317_vm8 = vcmp.eq.s32.totalorder %v2315_v38, 0  ;;  %v13086_v37 = vld [vmem:[#allocation46_spill] sm:$0xff] }
 0x388   : > { %8614 = vsinq.f32 %v6569_v57  ;;  %vm2320_vm9 = vcmp.eq.s32.totalorder %v2315_v38, 2  ;;  %vm3153_vm7 = vcmp.lt.s32.totalorder %v3152_v59, 2  ;;  %vm2521_vm15 = vweird.f32 %v13075_v55 }
 0x389   : > { %8616 = vsinq.f32 %v2413_v62  ;;  %v8605_v22 = vpop.eup %8604  ;;  %vm3154_vm1 = vcmp.eq.s32.totalorder %v3152_v59, 0  ;;  %vm3157_vm4 = vcmp.eq.s32.totalorder %v3152_v59, 2  ;;  %vm2525_vm12 = vcmp.eq.s32.totalorder %v13073_v53, 0 }
 0x38a   : > { %8618 = vcosq.f32 %v12049_v2  ;;  %v2529_v19 = vxor.u32 2147483648, %v13076_v9  ;;  %v8607_v51 = vpop.eup %8606  ;;  %v2321_v4 = vxor.u32 2147483648, %v8605_v22  ;;  %v2419_v47 = vand.u32 3, %v2418_v39  ;;  %v13080_v39 = vld [vmem:[#allocation42_spill] sm:$0xff] }
 0x38b   : > { %v2527_v40 = vsel %vm2525_vm12, %v13076_v9, %v2526_v58  ;;  %vm2528_vm2 = vcmp.eq.s32.totalorder %v13073_v53, 2  ;;  %v2318_v44 = vxor.u32 2147483648, %v8607_v51  ;;  %vm3257_vm11 = vcmp.eq.s32.totalorder %v12060_v29, 0  ;;  %v13082_v53 = vld [vmem:[#allocation28_spill] sm:$0xff] }
 0x38c   : > { %vm3260_vm6 = vcmp.eq.s32.totalorder %v12060_v29, 2  ;;  %v2530_v48 = vsel %vm2528_vm2, %v2529_v19, %v13074_v10  ;;  %v2630_v31 = vxor.u32 2147483648, %v13077_v5  ;;  %v2322_v23 = vsel %vm2320_vm9, %v2321_v4, %v8607_v51 }
 0x38d   : > { %v3159_v57 = vsel %vm3157_vm4, %v2321_v4, %v8607_v51  ;;  %vm3256_vm13 = vcmp.lt.s32.totalorder %v12060_v29, 2  ;;  %vm2625_vm14 = vweird.f32 %v13078_v61  ;;  %vm2629_vm12 = vcmp.eq.s32.totalorder %v13079_v32, 0 }
 0x38e   : > { %v2319_v30 = vsel %vm2317_vm8, %v8605_v22, %v2318_v44  ;;  %vm2417_vm10 = vweird.f32 %v13064_v45  ;;  %v3156_v50 = vsel %vm3154_vm1, %v8605_v22, %v2318_v44  ;;  %v2531_v16 = vsel %vm2524_vm3, %v2527_v40, %v2530_v48  ;;  %v13084_v44 = vld [vmem:[#allocation37_spill] sm:$0xff] }
 0x38f   : > { %v8609_v62 = vpop.eup %8608  ;;  %v2631_v15 = vsel %vm2629_vm12, %v13080_v39, %v2630_v31  ;;  %v2323_v51 = vsel %vm2316_vm5, %v2319_v30, %v2322_v23  ;;  %v3160_v63 = vsel %vm3153_vm7, %v3156_v50, %v3159_v57  ;;  %v2633_v41 = vxor.u32 2147483648, %v13080_v39 }
 0x390   : > { %v12084_v17 = vpop.eup %8610  ;;  %v2425_v4 = vxor.u32 2147483648, %v8609_v62  ;;  %vm2420_vm8 = vcmp.lt.s32.totalorder %v2419_v47, 2  ;;  %vm2628_vm9 = vcmp.lt.s32.totalorder %v13079_v32, 2  ;;  %vm2632_vm1 = vcmp.eq.s32.totalorder %v13079_v32, 2 }
 0x391   : > { %v12089_v49 = vpop.eup %8612  ;;  %v3358_v22 = vand.u32 3, %v13082_v53  ;;  %vm2421_vm3 = vcmp.eq.s32.totalorder %v2419_v47, 0  ;;  %vm2424_vm4 = vcmp.eq.s32.totalorder %v2419_v47, 2  ;;  %v2634_v38 = vsel %vm2632_vm1, %v2633_v41, %v13077_v5 }
 0x392   : > { %13081 = vst [vmem:[#allocation4_spill] sm:$0xff] %v12089_v49  ;;  %v12094_v40 = vpop.eup %8614  ;;  %v3461_v59 = vand.u32 3, %v13084_v44  ;;  %v12100_v23 = vsel %vm2313_vm0, nan, %v2323_v51  ;;  %v3161_v57 = vsel %vm2313_vm0, nan, %v3160_v63  ;;  %v12106_v32 = vsel %vm2521_vm15, nan, %v2531_v16 }
 0x393   : > { %13083 = vst [vmem:[#allocation11_spill] sm:$0xff] %v12094_v40  ;;  %v8617_v48 = vpop.eup %8616  ;;  %v2635_v30 = vsel %vm2628_vm9, %v2631_v15, %v2634_v38  ;;  %vm3360_vm5 = vcmp.eq.s32.totalorder %v3358_v22, 0  ;;  %vm3363_vm7 = vcmp.eq.s32.totalorder %v3358_v22, 2  ;;  %v12822_v63 = vxor.u32 2147483648, %v13086_v37  ;;  %v13087_v38 = vld [vmem:[#allocation17_spill] sm:$0xff] }
 0x394   : > { %v12108_v50 = vpop.eup %8618  ;;  %v2422_v53 = vxor.u32 2147483648, %v8617_v48  ;;  %v3262_v54 = vsel %vm3260_vm6, %v2425_v4, %v8617_v48  ;;  %v2426_v44 = vsel %vm2424_vm4, %v2425_v4, %v8617_v48  ;;  %v3362_v51 = vsel %vm3360_vm5, %v13076_v9, %v2526_v58  ;;  %v13088_v58 = vld [vmem:[#allocation45_spill] sm:$0xff]  ;;  %v13091_v9 = vld [vmem:[#allocation26_spill] sm:$0xff] }
 0x395   : > { %13085 = vst [vmem:[#allocation25_spill] sm:$0xff] %v12108_v50  ;;  %v3365_v49 = vsel %vm3363_vm7, %v2529_v19, %v13074_v10  ;;  %v12120_v16 = vsel %vm2625_vm14, nan, %v2635_v30  ;;  %vm3463_vm0 = vcmp.eq.s32.totalorder %v3461_v59, 0  ;;  %vm854_vm2 = vweird.f32 %v13087_v38 }
 0x396   : > { %v2423_v40 = vsel %vm2421_vm3, %v8609_v62, %v2422_v53  ;;  %v3259_v15 = vsel %vm3257_vm11, %v8609_v62, %v2422_v53  ;;  %vm3359_vm6 = vcmp.lt.s32.totalorder %v3358_v22, 2  ;;  %v3465_v10 = vsel %vm3463_vm0, %v13080_v39, %v2630_v31  ;;  %v13089_v22 = vld [vmem:[#allocation32_spill] sm:$0xff] }
 0x397   : > { %v3263_v4 = vsel %vm3256_vm13, %v3259_v15, %v3262_v54  ;;  %v2427_v19 = vsel %vm2420_vm8, %v2423_v40, %v2426_v44  ;;  %v3366_v48 = vsel %vm3359_vm6, %v3362_v51, %v3365_v49  ;;  %vm3466_vm11 = vcmp.eq.s32.totalorder %v3461_v59, 2  ;;  %v13090_v31 = vld [vmem:[#allocation40_spill] sm:$0xff]  ;;  %v13094_v44 = vld [vmem:[#allocation6_spill] sm:$0xff] }
 0x398   : > { %v3264_v62 = vsel %vm2417_vm10, nan, %v3263_v4  ;;  %vm3462_vm12 = vcmp.lt.s32.totalorder %v3461_v59, 2  ;;  %v3468_v29 = vsel %vm3466_vm11, %v2633_v41, %v13077_v5  ;;  %v12820_v15 = vxor.u32 2147483648, %v13089_v22  ;;  %v13093_v41 = vld [vmem:[#allocation29_spill] sm:$0xff] }
 0x399   : > { %v3883_v30 = vpack.c.bf16 %v3264_v62, %v3161_v57  ;;  %v3469_v54 = vsel %vm3462_vm12, %v3465_v10, %v3468_v29  ;;  %v1689_v39 = vand.u32 3, %v13090_v31  ;;  %v1792_v47 = vand.u32 3, %v13091_v9  ;;  %v13097_v10 = vld [vmem:[#allocation27_spill] sm:$0xff]  ;;  %v13099_v29 = vld [vmem:[#allocation50_spill] sm:$0xff] }
 0x39a   : > { %v12138_v40 = vsel %vm2417_vm10, nan, %v2427_v19  ;;  %vm13092_vm13 = vcmask 130048   ;;  %v3367_v49 = vsel %vm2521_vm15, nan, %v3366_v48  ;;  %v3470_v59 = vsel %vm2625_vm14, nan, %v3469_v54  ;;  %v13098_v19 = vld [vmem:[#allocation54_spill] sm:$0xff] }
 0x39b   : > { %8242 = vmatprep.mubr.msk.bf16.mxu1 %vm13092_vm13, %v3883_v30  ;;  %v12819_v5 = vxor.u32 2147483648, %v13093_v41  ;;  %v3884_v57 = vpack.c.bf16 %v3470_v59, %v3367_v49  ;;  %vm958_vm8 = vweird.f32 %v13094_v44  ;;  %vm1691_vm9 = vcmp.eq.s32.totalorder %v1689_v39, 0  ;;  %vm13096_vm15 = vmmov %vm13092_vm13  ;;  %v13100_v59 = vld [vmem:[#allocation51_spill] sm:$0xff]  ;;  %v13128_v44 = vld [vmem:[#allocation44_spill] sm:$0xff] }
 0x39c   : > { %vm1694_vm1 = vcmp.eq.s32.totalorder %v1689_v39, 2  ;;  %vm1690_vm3 = vcmp.lt.s32.totalorder %v1689_v39, 2  ;;  %v1693_v45 = vsel %vm1691_vm9, %v13088_v58, %v12822_v63  ;;  %v13095_v51 = vxor.u32 2147483648, %v13088_v58  ;;  %v13106_v63 = vld [vmem:[#allocation66_spill] sm:$0xff] }
 0x39d   : > { %vm1794_vm10 = vcmp.eq.s32.totalorder %v1792_v47, 0  ;;  %8243 = vmatmul.mubr.msk.bf16.vlgmr.msra.gmra.mrb[0].mxu1 %vm13096_vm15, %v3884_v57  ;;  %vm1797_vm14 = vcmp.eq.s32.totalorder %v1792_v47, 2  ;;  %vm1062_vm4 = vweird.f32 %v13097_v10  ;;  %v12821_v62 = vxor.u32 2147483648, %v13098_v19 }
 0x39e   : > { %v1696_v55 = vsel %vm1694_vm1, %v13095_v51, %v13086_v37  ;;  %v1796_v4 = vsel %vm1794_vm10, %v13093_v41, %v12820_v15  ;;  %vm1793_vm5 = vcmp.lt.s32.totalorder %v1792_v47, 2  ;;  %v1799_v30 = vsel %vm1797_vm14, %v12819_v5, %v13089_v22  ;;  %8251 = vmatpush3.bf16.msra.mxu1 %v11687_v33  ;;  %v13103_v33 = vld [vmem:[#allocation24_spill] sm:$0xff]  ;;  %vm13105_vm1 = vmmov %vm13096_vm15 }
 0x39f   : > { %v1697_v61 = vsel %vm1690_vm3, %v1693_v45, %v1696_v55  ;;  %v12823_v54 = vxor.u32 2147483648, %v13099_v29  ;;  %v1800_v39 = vsel %vm1793_vm5, %v1796_v4, %v1799_v30  ;;  %v12827_v49 = vxor.u32 2147483648, %v10616_v11  ;;  %v13101_v45 = vld [vmem:[#allocation56_spill] sm:$0xff]  ;;  %8280 = vmatprep.subr.bf16.mxu1 %v12043_v46  ;;  %v13107_v30 = vld [vmem:[#allocation47_spill] sm:$0xff] }
 0x3a0   : > { %v1698_v48 = vsel %vm854_vm2, nan, %v1697_v61  ;;  %v1895_v57 = vand.u32 3, %v13100_v59  ;;  %v1998_v51 = vand.u32 3, %v13101_v45  ;;  %v1801_v47 = vsel %vm958_vm8, nan, %v1800_v39  ;;  %v13102_v61 = vld [vmem:[#allocation49_spill] sm:$0xff]  ;;  %v13104_v4 = vld [vmem:[#allocation48_spill] sm:$0xff] }
 0x3a1   : > { %vm1166_vm7 = vweird.f32 %v9756_v0  ;;  %v12828_v55 = vxor.u32 2147483648, %v10601_v8  ;;  %v2010_v5 = vpack.c.bf16 %v1801_v47, %v1698_v48  ;;  %vm2729_vm11 = vweird.f32 %v13103_v33 }
 0x3a2   : > { %vm1897_vm0 = vcmp.eq.s32.totalorder %v1895_v57, 0  ;;  %vm1900_vm6 = vcmp.eq.s32.totalorder %v1895_v57, 2  ;;  %vm1896_vm12 = vcmp.lt.s32.totalorder %v1895_v57, 2  ;;  %vm2000_vm13 = vcmp.eq.s32.totalorder %v1998_v51, 0 }
 0x3a3   : > { %v1899_v15 = vsel %vm1897_vm0, %v13099_v29, %v12821_v62  ;;  %v1902_v39 = vsel %vm1900_vm6, %v12823_v54, %v13098_v19  ;;  %vm2833_vm9 = vweird.f32 %v9990_v25  ;;  %8226 = vmatprep.mubr.msk.bf16.mxu0 %vm13105_vm1, %v2010_v5  ;;  %vm1999_vm3 = vcmp.lt.s32.totalorder %v1998_v51, 2 }
 0x3a4   : > { %v1903_v48 = vsel %vm1896_vm12, %v1899_v15, %v1902_v39  ;;  %v2002_v47 = vsel %vm2000_vm13, %v10601_v8, %v12827_v49  ;;  %vm2003_vm10 = vcmp.eq.s32.totalorder %v1998_v51, 2  ;;  %v3564_v53 = vand.u32 3, %v13107_v30  ;;  %vm13111_vm12 = vmmov %vm13105_vm1 }
 0x3a5   : > { %v2005_v57 = vsel %vm2003_vm10, %v12828_v55, %v10616_v11  ;;  %v3667_v5 = vand.u32 3, %v13108_v6  ;;  %v855_v15 = vadd.s32 3, %v13090_v31  ;;  %v959_v39 = vadd.s32 3, %v13091_v9 }
 0x3a6   : > { %v2006_v50 = vsel %vm1999_vm3, %v2002_v47, %v2005_v57  ;;  %v1904_v51 = vsel %vm1062_vm4, nan, %v1903_v48  ;;  %vm3566_vm15 = vcmp.eq.s32.totalorder %v3564_v53, 0  ;;  %vm3569_vm14 = vcmp.eq.s32.totalorder %v3564_v53, 2 }
 0x3a7   : > { %v2007_v49 = vsel %vm1166_vm7, nan, %v2006_v50  ;;  %vm3565_vm5 = vcmp.lt.s32.totalorder %v3564_v53, 2  ;;  %v13109_v54 = vxor.u32 2147483648, %v13102_v61  ;;  %v13110_v57 = vxor.u32 2147483648, %v13104_v4 }
 0x3a8   : > { %v2011_v55 = vpack.c.bf16 %v2007_v49, %v1904_v51  ;;  %vm3669_vm0 = vcmp.eq.s32.totalorder %v3667_v5, 0  ;;  %vm3672_vm6 = vcmp.eq.s32.totalorder %v3667_v5, 2  ;;  %v856_v9 = vand.u32 3, %v855_v15 }
 0x3a9   : > { %v3568_v47 = vsel %vm3566_vm15, %v13104_v4, %v13109_v54  ;;  %v3571_v31 = vsel %vm3569_vm14, %v13110_v57, %v13102_v61  ;;  %vm3668_vm13 = vcmp.lt.s32.totalorder %v3667_v5, 2  ;;  %v13112_v50 = vxor.u32 2147483648, %v10722_v34 }
 0x3aa   : > { %v3572_v62 = vsel %vm3565_vm5, %v3568_v47, %v3571_v31  ;;  %8227 = vmatmul.mubr.msk.bf16.gmra.mrb[4].mxu0 %vm13111_vm12, %v2011_v55  ;;  %v13113_v53 = vxor.u32 2147483648, %v13106_v63  ;;  %v960_v54 = vand.u32 3, %v959_v39  ;;  %v13114_v51 = vpack.c.bf16 %v11916_v21, %v11908_v43 }
 0x3ab   : > { %v3671_v49 = vsel %vm3669_vm0, %v13106_v63, %v13112_v50  ;;  %v3573_v15 = vsel %vm2729_vm11, nan, %v3572_v62  ;;  %vm858_vm3 = vcmp.eq.s32.totalorder %v856_v9, 0  ;;  %vm861_vm10 = vcmp.eq.s32.totalorder %v856_v9, 2 }
 0x3ac   : > { %v3674_v48 = vsel %vm3672_vm6, %v13113_v53, %v10722_v34  ;;  %8232 = vmatprep.mubr.msk.bf16.mxu0 %vm13105_vm1, %v13114_v51  ;;  %vm857_vm15 = vcmp.lt.s32.totalorder %v856_v9, 2  ;;  %v13115_v5 = vxor.u32 2147483648, %v13086_v37  ;;  %v13116_v39 = vxor.u32 2147483648, %v13088_v58  ;;  %vm13119_vm6 = vmmov %vm13105_vm1 }
 0x3ad   : > { %v3675_v47 = vsel %vm3668_vm13, %v3671_v49, %v3674_v48  ;;  %vm962_vm14 = vcmp.eq.s32.totalorder %v960_v54, 0  ;;  %vm965_vm5 = vcmp.eq.s32.totalorder %v960_v54, 2  ;;  %vm961_vm0 = vcmp.lt.s32.totalorder %v960_v54, 2  ;;  %v13120_v48 = vld [vmem:[#allocation73_spill] sm:$0xff] }
 0x3ae   : > { %v3676_v55 = vsel %vm2833_vm9, nan, %v3675_v47  ;;  %v860_v57 = vsel %vm858_vm3, %v13088_v58, %v13115_v5  ;;  %v863_v43 = vsel %vm861_vm10, %v13116_v39, %v13086_v37  ;;  %v13117_v50 = vxor.u32 2147483648, %v13089_v22  ;;  %v13122_v47 = vld [vmem:[#allocation59_spill] sm:$0xff]  ;;  %v13123_v5 = vld [vmem:[#allocation57_spill] sm:$0xff] }
 0x3af   : > { %v3885_v21 = vpack.c.bf16 %v3676_v55, %v3573_v15  ;;  %v864_v31 = vsel %vm857_vm15, %v860_v57, %v863_v43  ;;  %v13118_v49 = vxor.u32 2147483648, %v13093_v41  ;;  %v3053_v58 = vpack.c.bf16 %v12138_v40, %v12100_v23  ;;  %v13121_v15 = vld [vmem:[#allocation72_spill] sm:$0xff]  ;;  %v13124_v39 = vld [vmem:[#allocation65_spill] sm:$0xff] }
 0x3b0   : > { %v865_v62 = vsel %vm854_vm2, nan, %v864_v31  ;;  %v964_v9 = vsel %vm962_vm14, %v13093_v41, %v13117_v50  ;;  %v2942_v51 = vxor.u32 2147483648, %v13120_v48  ;;  %v2945_v38 = vxor.u32 2147483648, %v13121_v15  ;;  %v13125_v43 = vld [vmem:[#allocation52_spill] sm:$0xff]  ;;  %vm13127_vm2 = vmmov %vm13105_vm1  ;;  %v13129_v50 = vld [vmem:[#allocation31_spill] sm:$0xff] }
 0x3b1   : > { %v967_v53 = vsel %vm965_vm5, %v13118_v49, %v13089_v22  ;;  %8246 = vmatprep.mubr.msk.bf16.mxu1 %vm13119_vm6, %v3885_v21  ;;  %v12830_v55 = vxor.u32 2147483648, %v13122_v47  ;;  %v12829_v57 = vxor.u32 2147483648, %v13123_v5  ;;  %v3770_v41 = vand.u32 3, %v13124_v39  ;;  %vm13130_vm3 = vmmov %vm13127_vm2 }
 0x3b2   : > { %v968_v37 = vsel %vm961_vm0, %v964_v9, %v967_v53  ;;  %v3873_v31 = vand.u32 3, %v13125_v43  ;;  %v1063_v23 = vadd.s32 3, %v13100_v59  ;;  %v1167_v40 = vadd.s32 3, %v13101_v45  ;;  %v12269_v9 = vld [vmem:[%s12660_s4] sm:$0xff]  }
 0x3b3   : > { %v969_v54 = vsel %vm958_vm8, nan, %v968_v37  ;;  %v13126_v21 = vpack.c.bf16 %v12017_v18, %v12053_v7  ;;  %vm2937_vm8 = vweird.f32 %v13128_v44  ;;  %vm3041_vm12 = vweird.f32 %v13129_v50 }
 0x3b4   : > { %v1180_v22 = vpack.c.bf16 %v969_v54, %v865_v62  ;;  %vm3772_vm13 = vcmp.eq.s32.totalorder %v3770_v41, 0  ;;  %vm3775_vm1 = vcmp.eq.s32.totalorder %v3770_v41, 2  ;;  %vm3771_vm10 = vcmp.lt.s32.totalorder %v3770_v41, 2  ;;  %v13131_v41 = vld [vmem:[#allocation80_spill] sm:$0xff] }
 0x3b5   : > { %8233 = vmatmul.mubr.msk.bf16.vlgmr.msra.gmra.mrb[0].mxu0 %vm13127_vm2, %v13126_v21  ;;  %v3774_v59 = vsel %vm3772_vm13, %v13121_v15, %v2942_v51  ;;  %v3777_v45 = vsel %vm3775_vm1, %v2945_v38, %v13120_v48  ;;  %vm3875_vm15 = vcmp.eq.s32.totalorder %v3873_v31, 0  ;;  %vm3878_vm14 = vcmp.eq.s32.totalorder %v3873_v31, 2 }
 0x3b6   : > { %8236 = vmatprep.mubr.msk.bf16.mxu0 %vm13130_vm3, %v1180_v22  ;;  %8261 = vmatpush3.bf16.msra.mxu0 %v12043_v46  ;;  %v3778_v18 = vsel %vm3771_vm10, %v3774_v59, %v3777_v45  ;;  %v3877_v7 = vsel %vm3875_vm15, %v13123_v5, %v12830_v55  ;;  %v1064_v62 = vand.u32 3, %v1063_v23  ;;  %vm3874_vm5 = vcmp.lt.s32.totalorder %v3873_v31, 2 }
 0x3b7   : > { %8270 = vmatprep.subr.bf16.mxu0 %v12269_v9  ;;  %v3779_v49 = vsel %vm2937_vm8, nan, %v3778_v18  ;;  %v3880_v53 = vsel %vm3878_vm14, %v12829_v57, %v13122_v47  ;;  %v1168_v37 = vand.u32 3, %v1167_v40  ;;  %v4192_v22 = vxor.u32 2147483648, %v13131_v41  ;;  %v13134_v18 = vld [vmem:[#allocation55_spill] sm:$0xff] }
 0x3b8   : > { %v3881_v54 = vsel %vm3874_vm5, %v3877_v7, %v3880_v53  ;;  %vm1066_vm0 = vcmp.eq.s32.totalorder %v1064_v62, 0  ;;  %vm1069_vm6 = vcmp.eq.s32.totalorder %v1064_v62, 2  ;;  %vm1065_vm2 = vcmp.lt.s32.totalorder %v1064_v62, 2 }
 0x3b9   : > { %v3882_v23 = vsel %vm3041_vm12, nan, %v3881_v54  ;;  %v13132_v21 = vxor.u32 2147483648, %v13098_v19  ;;  %v13133_v31 = vxor.u32 2147483648, %v13099_v29  ;;  %vm4187_vm13 = vweird.f32 %v13134_v18 }
 0x3ba   : > { %v3886_v40 = vpack.c.bf16 %v3882_v23, %v3779_v49  ;;  %vm1170_vm1 = vcmp.eq.s32.totalorder %v1168_v37, 0  ;;  %vm1173_vm3 = vcmp.eq.s32.totalorder %v1168_v37, 2  ;;  %vm1169_vm10 = vcmp.lt.s32.totalorder %v1168_v37, 2  ;;  %v13139_v23 = vld [vmem:[#allocation63_spill] sm:$0xff] }
 0x3bb   : > { %v1068_v59 = vsel %vm1066_vm0, %v13099_v29, %v13132_v21  ;;  %v1071_v45 = vsel %vm1069_vm6, %v13133_v31, %v13098_v19  ;;  %v13135_v62 = vxor.u32 2147483648, %v10616_v11  ;;  %v13136_v21 = vxor.u32 2147483648, %v10601_v8  ;;  %v13138_v29 = vld [vmem:[#allocation79_spill] sm:$0xff]  ;;  %v13140_v31 = vld [vmem:[#allocation62_spill] sm:$0xff] }
 0x3bc   : > { %v1072_v7 = vsel %vm1065_vm2, %v1068_v59, %v1071_v45  ;;  %vm13137_vm15 = vcmask 130048   ;;  %v4195_v49 = vxor.u32 2147483648, %v13138_v29  ;;  %v4296_v59 = vxor.u32 2147483648, %v13139_v23  ;;  %v13142_v37 = vld [vmem:[#allocation71_spill] sm:$0xff] }
 0x3bd   : > { %v1073_v53 = vsel %vm1062_vm4, nan, %v1072_v7  ;;  %v1172_v54 = vsel %vm1170_vm1, %v10601_v8, %v13135_v62  ;;  %v1175_v57 = vsel %vm1173_vm3, %v13136_v21, %v10616_v11  ;;  %8247 = vmatmul.mubr.msk.bf16.gmra.mrb[4].mxu1 %vm13137_vm15, %v3886_v40  ;;  %v4299_v45 = vxor.u32 2147483648, %v13140_v31  ;;  %vm13141_vm14 = vmmov %vm13137_vm15  ;;  %v13143_v62 = vld [vmem:[#allocation58_spill] sm:$0xff]  ;;  %v13144_v40 = vld [vmem:[#allocation35_spill] sm:$0xff] }
 0x3be   : > { %v1176_v19 = vsel %vm1169_vm10, %v1172_v54, %v1175_v57  ;;  %8252 = vmatprep.mubr.msk.bf16.mxu1 %vm13141_vm14, %v3053_v58  ;;  %v5024_v7 = vand.u32 3, %v13142_v37  ;;  %v5127_v55 = vand.u32 3, %v13143_v62  ;;  %v2730_v8 = vadd.s32 3, %v13107_v30  ;;  %vm13145_vm1 = vmmov %vm13141_vm14 }
 0x3bf   : > { %v1177_v10 = vsel %vm1166_vm7, nan, %v1176_v19  ;;  %vm4291_vm4 = vweird.f32 %v13144_v40  ;;  %v2834_v57 = vadd.s32 3, %v13108_v6  ;;  %v2938_v54 = vadd.s32 3, %v13124_v39  ;;  %vm13147_vm14 = vmmov %vm13145_vm1 }
 0x3c0   : > { %v1181_v11 = vpack.c.bf16 %v1177_v10, %v1073_v53  ;;  %vm5025_vm5 = vcmp.lt.s32.totalorder %v5024_v7, 2  ;;  %vm5026_vm0 = vcmp.eq.s32.totalorder %v5024_v7, 0  ;;  %vm5029_vm6 = vcmp.eq.s32.totalorder %v5024_v7, 2 }
 0x3c1   : > { %vm5128_vm2 = vcmp.lt.s32.totalorder %v5127_v55, 2  ;;  %v5028_v0 = vsel %vm5026_vm0, %v13138_v29, %v4192_v22  ;;  %v5031_v30 = vsel %vm5029_vm6, %v4195_v49, %v13131_v41  ;;  %vm5129_vm7 = vcmp.eq.s32.totalorder %v5127_v55, 0 }
 0x3c2   : > { %8237 = vmatmul.mubr.msk.bf16.gmra.mrb[4].mxu0 %vm13145_vm1, %v1181_v11  ;;  %vm5132_vm3 = vcmp.eq.s32.totalorder %v5127_v55, 2  ;;  %v5032_v58 = vsel %vm5025_vm5, %v5028_v0, %v5031_v30  ;;  %v5131_v6 = vsel %vm5129_vm7, %v13140_v31, %v4296_v59  ;;  %v2731_v53 = vand.u32 3, %v2730_v8 }
 0x3c3   : > { %v5134_v39 = vsel %vm5132_vm3, %v4299_v45, %v13139_v23  ;;  %v5033_v21 = vsel %vm4187_vm13, nan, %v5032_v58  ;;  %v2835_v10 = vand.u32 3, %v2834_v57  ;;  %v2939_v7 = vand.u32 3, %v2938_v54 }
 0x3c4   : > { %v5135_v19 = vsel %vm5128_vm2, %v5131_v6, %v5134_v39  ;;  %vm2733_vm10 = vcmp.eq.s32.totalorder %v2731_v53, 0  ;;  %vm2736_vm15 = vcmp.eq.s32.totalorder %v2731_v53, 2  ;;  %v3042_v55 = vadd.s32 3, %v13125_v43  ;;  %vm13150_vm2 = vmmov %vm13145_vm1 }
 0x3c5   : > { %v5136_v11 = vsel %vm4291_vm4, nan, %v5135_v19  ;;  %v13146_v0 = vpack.c.bf16 %v12120_v16, %v12106_v32  ;;  %vm2732_vm5 = vcmp.lt.s32.totalorder %v2731_v53, 2  ;;  %v13148_v8 = vxor.u32 2147483648, %v13102_v61  ;;  %v13155_v19 = vld [vmem:[#allocation53_spill] sm:$0xff] }
 0x3c6   : > { %v5755_v30 = vpack.c.bf16 %v5136_v11, %v5033_v21  ;;  %v13149_v57 = vxor.u32 2147483648, %v13104_v4  ;;  %8620 = vsinq.f32 %v12049_v2  ;;  %vm2837_vm0 = vcmp.eq.s32.totalorder %v2835_v10, 0 }
 0x3c7   : > { %8253 = vmatmul.mubr.msk.bf16.vlgmr.msra.gmra.mrb[0].mxu1 %vm13147_vm14, %v13146_v0  ;;  %v2735_v58 = vsel %vm2733_vm10, %v13104_v4, %v13148_v8  ;;  %vm2840_vm6 = vcmp.eq.s32.totalorder %v2835_v10, 2  ;;  %vm2836_vm1 = vcmp.lt.s32.totalorder %v2835_v10, 2  ;;  %v13151_v32 = vxor.u32 2147483648, %v10722_v34  ;;  %vm13154_vm10 = vmmov %vm13150_vm2  ;;  %v13160_v10 = vld [vmem:[#allocation74_spill] sm:$0xff] }
 0x3c8   : > { %v2738_v54 = vsel %vm2736_vm15, %v13149_v57, %v13102_v61  ;;  %8281 = vmatpush3.bf16.msra.mxu1 %v12043_v46  ;;  %8262 = vmatprep.mubr.msk.bf16.mxu0 %vm13150_vm2, %v5755_v30  ;;  %v13152_v43 = vxor.u32 2147483648, %v13106_v63  ;;  %vm2941_vm7 = vcmp.eq.s32.totalorder %v2939_v7, 0  ;;  %vm2944_vm3 = vcmp.eq.s32.totalorder %v2939_v7, 2  ;;  %v13161_v0 = vld [vmem:[#allocation70_spill] sm:$0xff] }
 0x3c9   : > { %v2739_v6 = vsel %vm2732_vm5, %v2735_v58, %v2738_v54  ;;  %v2839_v16 = vsel %vm2837_vm0, %v13106_v63, %v13151_v32  ;;  %8290 = vmatprep.subr.bf16.mxu1 %v12269_v9  ;;  %v2943_v61 = vsel %vm2941_vm7, %v13121_v15, %v2942_v51  ;;  %v3043_v46 = vand.u32 3, %v3042_v55  ;;  %vm13158_vm0 = vmmov %vm13150_vm2 }
 0x3ca   : > { %v2842_v39 = vsel %vm2840_vm6, %v13152_v43, %v10722_v34  ;;  %v2740_v4 = vsel %vm2729_vm11, nan, %v2739_v6  ;;  %v13153_v63 = vpack.c.bf16 %v11319_v52, %v11325_v60  ;;  %vm2940_vm15 = vcmp.lt.s32.totalorder %v2939_v7, 2  ;;  %v13157_v52 = vld [vmem:[#allocation75_spill] sm:$0xff]  ;;  %v13163_v43 = vld [vmem:[#allocation41_spill] sm:$0xff] }
 0x3cb   : > { %v2843_v2 = vsel %vm2836_vm1, %v2839_v16, %v2842_v39  ;;  %v2946_v34 = vsel %vm2944_vm3, %v2945_v38, %v13120_v48  ;;  %vm3045_vm14 = vcmp.eq.s32.totalorder %v3043_v46, 0  ;;  %vm6053_vm5 = vweird.f32 %v13155_v19  ;;  %vm13162_vm3 = vmmov %vm13158_vm0 }
 0x3cc   : > { %v2844_v53 = vsel %vm2833_vm9, nan, %v2843_v2  ;;  %8263 = vmatmul.mubr.msk.bf16.vlgmr.msra.gmra.mrb[8].mxu0 %vm13154_vm10, %v13153_v63  ;;  %v2947_v51 = vsel %vm2940_vm15, %v2943_v61, %v2946_v34  ;;  %vm3044_vm11 = vcmp.lt.s32.totalorder %v3043_v46, 2  ;;  %v13156_v25 = vxor.u32 2147483648, %v13122_v47  ;;  %v13164_v2 = vld [vmem:[#allocation68_spill] sm:$0xff]  ;;  %v13165_v63 = vld [vmem:[#allocation67_spill] sm:$0xff] }
 0x3cd   : > { %v3055_v21 = vpack.c.bf16 %v2844_v53, %v2740_v4  ;;  %8271 = vmatpush3.bf16.msra.mxu0 %v12269_v9  ;;  %vm3048_vm9 = vcmp.eq.s32.totalorder %v3043_v46, 2  ;;  %v6058_v60 = vxor.u32 2147483648, %v13157_v52  ;;  %v2948_v48 = vsel %vm2937_vm8, nan, %v2947_v51 }
 0x3ce   : > { %v3047_v33 = vsel %vm3045_vm14, %v13123_v5, %v13156_v25  ;;  %v13159_v15 = vxor.u32 2147483648, %v13123_v5  ;;  %v6061_v7 = vxor.u32 2147483648, %v13160_v10  ;;  %vm6157_vm6 = vweird.f32 %v11026_v3 }
 0x3cf   : > { %8256 = vmatprep.mubr.msk.bf16.mxu1 %vm13158_vm0, %v3055_v21  ;;  %v6162_v55 = vxor.u32 2147483648, %v11614_v28  ;;  %v6890_v30 = vand.u32 3, %v13161_v0  ;;  %v6993_v8 = vand.u32 3, %v11511_v14  ;;  %v6165_v44 = vxor.u32 2147483648, %v11602_v20  ;;  %v13166_v21 = vld [vmem:[#allocation61_spill] sm:$0xff] }
 0x3d0   : > { %v3050_v38 = vsel %vm3048_vm9, %v13159_v15, %v13122_v47  ;;  %vm4603_vm8 = vweird.f32 %v11107_v1  ;;  %v4608_v47 = vxor.u32 2147483648, %v11894_v26  ;;  %v4611_v57 = vxor.u32 2147483648, %v11883_v12  ;;  %v12383_v54 = vpop.eup %8620 }
 0x3d1   : > { %v3051_v11 = vsel %vm3044_vm11, %v3047_v33, %v3050_v38  ;;  %vm6892_vm2 = vcmp.eq.s32.totalorder %v6890_v30, 0  ;;  %vm6895_vm1 = vcmp.eq.s32.totalorder %v6890_v30, 2  ;;  %vm6891_vm7 = vcmp.lt.s32.totalorder %v6890_v30, 2 }
 0x3d2   : > { %v3052_v58 = vsel %vm3041_vm12, nan, %v3051_v11  ;;  %v6894_v6 = vsel %vm6892_vm2, %v13160_v10, %v6058_v60  ;;  %v6897_v50 = vsel %vm6895_vm1, %v6061_v7, %v13157_v52  ;;  %vm6995_vm12 = vcmp.eq.s32.totalorder %v6993_v8, 0 }
 0x3d3   : > { %v3056_v5 = vpack.c.bf16 %v3052_v58, %v2948_v48  ;;  %v6898_v32 = vsel %vm6891_vm7, %v6894_v6, %v6897_v50  ;;  %v6997_v16 = vsel %vm6995_vm12, %v11602_v20, %v6162_v55  ;;  %vm6998_vm10 = vcmp.eq.s32.totalorder %v6993_v8, 2  ;;  %vm13167_vm12 = vmmov %vm13162_vm3 }
 0x3d4   : > { %vm4707_vm15 = vweird.f32 %v13163_v43  ;;  %vm6994_vm14 = vcmp.lt.s32.totalorder %v6993_v8, 2  ;;  %v7000_v39 = vsel %vm6998_vm10, %v6165_v44, %v11614_v28  ;;  %v4712_v61 = vxor.u32 2147483648, %v13164_v2 }
 0x3d5   : > { %8257 = vmatmul.mubr.msk.bf16.gmra.mrb[4].mxu1 %vm13162_vm3, %v3056_v5  ;;  %v5436_v46 = vand.u32 3, %v11655_v35  ;;  %v6899_v4 = vsel %vm6053_vm5, nan, %v6898_v32  ;;  %v7001_v53 = vsel %vm6994_vm14, %v6997_v16, %v7000_v39  ;;  %v4715_v34 = vxor.u32 2147483648, %v13165_v63  ;;  %v13168_v39 = vld [vmem:[#allocation77_spill] sm:$0xff] }
 0x3d6   : > { %v5539_v51 = vand.u32 3, %v13166_v21  ;;  %v7002_v25 = vsel %vm6157_vm6, nan, %v7001_v53  ;;  %v4816_v33 = vxor.u32 2147483648, %v11979_v42  ;;  %v4819_v5 = vxor.u32 2147483648, %v11898_v36 }
 0x3d7   : > { %vm5438_vm11 = vcmp.eq.s32.totalorder %v5436_v46, 0  ;;  %vm5441_vm9 = vcmp.eq.s32.totalorder %v5436_v46, 2  ;;  %v7621_v48 = vpack.c.bf16 %v7002_v25, %v6899_v4  ;;  %vm5437_vm0 = vcmp.lt.s32.totalorder %v5436_v46, 2  ;;  %v13169_v46 = vld [vmem:[#allocation92_spill] sm:$0xff] }
 0x3d8   : > { %v5440_v15 = vsel %vm5438_vm11, %v11883_v12, %v4608_v47  ;;  %v5443_v38 = vsel %vm5441_vm9, %v4611_v57, %v11894_v26  ;;  %vm5540_vm2 = vcmp.lt.s32.totalorder %v5539_v51, 2  ;;  %vm5541_vm1 = vcmp.eq.s32.totalorder %v5539_v51, 0 }
 0x3d9   : > { %v5444_v11 = vsel %vm5437_vm0, %v5440_v15, %v5443_v38  ;;  %vm5544_vm7 = vcmp.eq.s32.totalorder %v5539_v51, 2  ;;  %8282 = vmatprep.mubr.msk.bf16.mxu1 %vm13167_vm12, %v7621_v48  ;;  %v5543_v8 = vsel %vm5541_vm1, %v13165_v63, %v4712_v61  ;;  %v4920_v50 = vxor.u32 2147483648, %v12084_v17 }
 0x3da   : > { %v5445_v30 = vsel %vm4603_vm8, nan, %v5444_v11  ;;  %v5546_v58 = vsel %vm5544_vm7, %v4715_v34, %v13164_v2  ;;  %v4923_v32 = vxor.u32 2147483648, %v11983_v56  ;;  %v5642_v16 = vand.u32 3, %v11822_v13 }
 0x3db   : > { %v5547_v6 = vsel %vm5540_vm2, %v5543_v8, %v5546_v58  ;;  %v13170_v4 = vpack.c.bf16 %v13168_v39, %v13169_v46  ;;  %v5745_v51 = vand.u32 3, %v11868_v24  ;;  %v4188_v25 = vadd.s32 3, %v13142_v37  ;;  %vm13171_vm2 = vmmov %vm13162_vm3 }
 0x3dc   : > { %v5548_v53 = vsel %vm4707_vm15, nan, %v5547_v6  ;;  %v4292_v48 = vadd.s32 3, %v13143_v62  ;;  %vm4811_vm10 = vweird.f32 %v11110_v27  ;;  %vm5644_vm14 = vcmp.eq.s32.totalorder %v5642_v16, 0 }
 0x3dd   : > { %8283 = vmatmul.mubr.msk.bf16.vlgmr.msra.gmra.mrb[8].mxu1 %vm13162_vm3, %v13170_v4  ;;  %v5757_v15 = vpack.c.bf16 %v5548_v53, %v5445_v30  ;;  %vm5647_vm11 = vcmp.eq.s32.totalorder %v5642_v16, 2  ;;  %vm5643_vm9 = vcmp.lt.s32.totalorder %v5642_v16, 2  ;;  %v5646_v38 = vsel %vm5644_vm14, %v11898_v36, %v4816_v33  ;;  %v13173_v53 = vld [vmem:[#allocation64_spill] sm:$0xff] }
 0x3de   : > { %8291 = vmatpush3.bf16.msra.mxu1 %v12269_v9  ;;  %v5649_v11 = vsel %vm5647_vm11, %v4819_v5, %v11979_v42  ;;  %vm5747_vm0 = vcmp.eq.s32.totalorder %v5745_v51, 0  ;;  %vm5750_vm1 = vcmp.eq.s32.totalorder %v5745_v51, 2  ;;  %v4189_v30 = vand.u32 3, %v4188_v25  ;;  %v13172_v9 = vld [vmem:[#allocation85_spill] sm:$0xff] }
 0x3df   : > { %8266 = vmatprep.mubr.msk.bf16.mxu0 %vm13171_vm2, %v5757_v15  ;;  %v5650_v37 = vsel %vm5643_vm9, %v5646_v38, %v5649_v11  ;;  %v5749_v62 = vsel %vm5747_vm0, %v11983_v56, %v4920_v50  ;;  %vm4915_vm7 = vweird.f32 %v13172_v9  ;;  %vm5746_vm12 = vcmp.lt.s32.totalorder %v5745_v51, 2  ;;  %v13176_v38 = vld [vmem:[#allocation84_spill] sm:$0xff] }
 0x3e0   : > { %v5752_v8 = vsel %vm5750_vm1, %v4923_v32, %v12084_v17  ;;  %v4293_v58 = vand.u32 3, %v4292_v48  ;;  %v5651_v6 = vsel %vm4811_vm10, nan, %v5650_v37  ;;  %vm4191_vm3 = vcmp.eq.s32.totalorder %v4189_v30, 0  ;;  %v13177_v37 = vld [vmem:[#allocation11_spill] sm:$0xff] }
 0x3e1   : > { %v5753_v16 = vsel %vm5746_vm12, %v5749_v62, %v5752_v8  ;;  %vm4194_vm14 = vcmp.eq.s32.totalorder %v4189_v30, 2  ;;  %vm4190_vm11 = vcmp.lt.s32.totalorder %v4189_v30, 2  ;;  %v4193_v46 = vsel %vm4191_vm3, %v13138_v29, %v4192_v22  ;;  %v13175_v29 = vld [vmem:[#allocation86_spill] sm:$0xff]  ;;  %v13178_v30 = vld [vmem:[#allocation4_spill] sm:$0xff] }
 0x3e2   : > { %v5754_v39 = vsel %vm4915_vm7, nan, %v5753_v16  ;;  %v4196_v4 = vsel %vm4194_vm14, %v4195_v49, %v13131_v41  ;;  %vm6469_vm9 = vweird.f32 %v13173_v53  ;;  %vm4295_vm0 = vcmp.eq.s32.totalorder %v4293_v58, 0 }
 0x3e3   : > { %v5758_v51 = vpack.c.bf16 %v5754_v39, %v5651_v6  ;;  %v4197_v25 = vsel %vm4190_vm11, %v4193_v46, %v4196_v4  ;;  %vm4298_vm2 = vcmp.eq.s32.totalorder %v4293_v58, 2  ;;  %vm4294_vm1 = vcmp.lt.s32.totalorder %v4293_v58, 2  ;;  %v13179_v58 = vld [vmem:[#allocation78_spill] sm:$0xff]  ;;  %v13180_v6 = vld [vmem:[#allocation19_spill] sm:$0xff] }
 0x3e4   : > { %v4198_v48 = vsel %vm4187_vm13, nan, %v4197_v25  ;;  %v4297_v15 = vsel %vm4295_vm0, %v13140_v31, %v4296_v59  ;;  %v4300_v22 = vsel %vm4298_vm2, %v4299_v45, %v13139_v23  ;;  %vm13174_vm12 = vcmask 130048   ;;  %v13181_v23 = vld [vmem:[#allocation88_spill] sm:$0xff] }
 0x3e5   : > { %8267 = vmatmul.mubr.msk.bf16.gmra.mrb[12].mxu0 %vm13174_vm12, %v5758_v51  ;;  %v4301_v41 = vsel %vm4294_vm1, %v4297_v15, %v4300_v22  ;;  %v6474_v49 = vxor.u32 2147483648, %v13175_v29  ;;  %v6477_v11 = vxor.u32 2147483648, %v13176_v38  ;;  %v6578_v62 = vxor.u32 2147483648, %v13177_v37  ;;  %vm13182_vm2 = vmmov %vm13174_vm12 }
 0x3e6   : > { %v4302_v18 = vsel %vm4291_vm4, nan, %v4301_v41  ;;  %v6581_v8 = vxor.u32 2147483648, %v13178_v30  ;;  %v7302_v59 = vand.u32 3, %v13179_v58  ;;  %v7405_v16 = vand.u32 3, %v13180_v6 }
 0x3e7   : > { %v4927_v31 = vpack.c.bf16 %v4302_v18, %v4198_v48  ;;  %vm12831_vm13 = vweird.f32 %v13181_v23  ;;  %v4604_v45 = vadd.s32 3, %v11655_v35  ;;  %v4708_v39 = vadd.s32 3, %v13166_v21  ;;  %v13183_v18 = vld [vmem:[#allocation89_spill] sm:$0xff] }
 0x3e8   : > { %vm7303_vm3 = vcmp.lt.s32.totalorder %v7302_v59, 2  ;;  %vm7304_vm14 = vcmp.eq.s32.totalorder %v7302_v59, 0  ;;  %vm7307_vm11 = vcmp.eq.s32.totalorder %v7302_v59, 2  ;;  %vm7406_vm0 = vcmp.lt.s32.totalorder %v7405_v16, 2 }
 0x3e9   : > { %8272 = vmatprep.mubr.msk.bf16.mxu0 %vm13182_vm2, %v4927_v31  ;;  %v7306_v40 = vsel %vm7304_vm14, %v13176_v38, %v6474_v49  ;;  %v7309_v46 = vsel %vm7307_vm11, %v6477_v11, %v13175_v29  ;;  %vm7407_vm4 = vcmp.eq.s32.totalorder %v7405_v16, 0  ;;  %vm7410_vm1 = vcmp.eq.s32.totalorder %v7405_v16, 2  ;;  %v13184_v16 = vld [vmem:[#allocation82_spill] sm:$0xff]  ;;  %v13185_v31 = vld [vmem:[#allocation81_spill] sm:$0xff] }
 0x3ea   : > { %v7310_v4 = vsel %vm7303_vm3, %v7306_v40, %v7309_v46  ;;  %v7409_v35 = vsel %vm7407_vm4, %v13178_v30, %v6578_v62  ;;  %v7412_v21 = vsel %vm7410_vm1, %v6581_v8, %v13177_v37  ;;  %v4605_v51 = vand.u32 3, %v4604_v45 }
 0x3eb   : > { %v7311_v25 = vsel %vm6469_vm9, nan, %v7310_v4  ;;  %v7413_v48 = vsel %vm7406_vm0, %v7409_v35, %v7412_v21  ;;  %v4709_v15 = vand.u32 3, %v4708_v39  ;;  %v6682_v22 = vxor.u32 2147483648, %v12383_v54  ;;  %v13187_v4 = vld [vmem:[#allocation25_spill] sm:$0xff] }
 0x3ec   : > { %v7414_v41 = vsel %vm12831_vm13, nan, %v7413_v48  ;;  %vm4606_vm12 = vcmp.lt.s32.totalorder %v4605_v51, 2  ;;  %vm4607_vm3 = vcmp.eq.s32.totalorder %v4605_v51, 0  ;;  %vm4610_vm14 = vcmp.eq.s32.totalorder %v4605_v51, 2  ;;  %vm13188_vm13 = vmmov %vm13182_vm2  ;;  %v13191_v48 = vld [vmem:[#allocation87_spill] sm:$0xff] }
 0x3ed   : > { %vm6677_vm11 = vweird.f32 %v13183_v18  ;;  %v7623_v59 = vpack.c.bf16 %v7414_v41, %v7311_v25  ;;  %v13186_v40 = vpack.c.bf16 %v13184_v16, %v13185_v31  ;;  %v4609_v45 = vsel %vm4607_vm3, %v11883_v12, %v4608_v47  ;;  %v13192_v41 = vld [vmem:[#allocation5_spill] sm:$0xff]  ;;  %v13193_v16 = vld [vmem:[#allocation83_spill] sm:$0xff] }
 0x3ee   : > { %v4612_v39 = vsel %vm4610_vm14, %v4611_v57, %v11894_v26  ;;  %vm4710_vm0 = vcmp.lt.s32.totalorder %v4709_v15, 2  ;;  %vm4711_vm4 = vcmp.eq.s32.totalorder %v4709_v15, 0  ;;  %vm4714_vm1 = vcmp.eq.s32.totalorder %v4709_v15, 2  ;;  %v13189_v26 = vld [vmem:[#allocation69_spill] sm:$0xff]  ;;  %v13190_v57 = vld [vmem:[#allocation90_spill] sm:$0xff] }
 0x3ef   : > { %8273 = vmatmul.mubr.msk.bf16.vlgmr.msra.gmra.mrb[8].mxu0 %vm13182_vm2, %v13186_v40  ;;  %v4613_v46 = vsel %vm4606_vm12, %v4609_v45, %v4612_v39  ;;  %v6685_v35 = vxor.u32 2147483648, %v13187_v4  ;;  %8286 = vmatprep.mubr.msk.bf16.mxu1 %vm13188_vm13, %v7623_v59  ;;  %v4713_v51 = vsel %vm4711_vm4, %v13165_v63, %v4712_v61  ;;  %v4716_v12 = vsel %vm4714_vm1, %v4715_v34, %v13164_v2 }
 0x3f0   : > { %v4614_v21 = vsel %vm4603_vm8, nan, %v4613_v46  ;;  %vm6781_vm3 = vweird.f32 %v13189_v26  ;;  %v4717_v47 = vsel %vm4710_vm0, %v4713_v51, %v4716_v12  ;;  %v6786_v25 = vxor.u32 2147483648, %v13190_v57 }
 0x3f1   : > { %v6789_v15 = vxor.u32 2147483648, %v13191_v48  ;;  %v7508_v59 = vand.u32 3, %v13192_v41  ;;  %v4718_v1 = vsel %vm4707_vm15, nan, %v4717_v47  ;;  %v7611_v31 = vand.u32 3, %v13193_v16 }
 0x3f2   : > { %v6054_v61 = vadd.s32 3, %v13161_v0  ;;  %v6158_v40 = vadd.s32 3, %v11511_v14  ;;  %v4929_v63 = vpack.c.bf16 %v4718_v1, %v4614_v21  ;;  %v4812_v21 = vadd.s32 3, %v11822_v13 }
 0x3f3   : > { %vm7509_vm8 = vcmp.lt.s32.totalorder %v7508_v59, 2  ;;  %vm7510_vm13 = vcmp.eq.s32.totalorder %v7508_v59, 0  ;;  %vm7513_vm12 = vcmp.eq.s32.totalorder %v7508_v59, 2  ;;  %vm7612_vm14 = vcmp.lt.s32.totalorder %v7611_v31, 2 }
 0x3f4   : > { %v7512_v2 = vsel %vm7510_vm13, %v13187_v4, %v6682_v22  ;;  %v7515_v34 = vsel %vm7513_vm12, %v6685_v35, %v12383_v54  ;;  %vm7613_vm15 = vcmp.eq.s32.totalorder %v7611_v31, 0  ;;  %8276 = vmatprep.mubr.msk.bf16.mxu0 %vm13182_vm2, %v4929_v63  ;;  %vm7616_vm0 = vcmp.eq.s32.totalorder %v7611_v31, 2 }
 0x3f5   : > { %v7516_v43 = vsel %vm7509_vm8, %v7512_v2, %v7515_v34  ;;  %v7615_v14 = vsel %vm7613_vm15, %v13191_v48, %v6786_v25  ;;  %v6055_v0 = vand.u32 3, %v6054_v61  ;;  %v7618_v39 = vsel %vm7616_vm0, %v6789_v15, %v13190_v57 }
 0x3f6   : > { %v7517_v45 = vsel %vm6677_vm11, nan, %v7516_v43  ;;  %v6159_v46 = vand.u32 3, %v6158_v40  ;;  %v7619_v51 = vsel %vm7612_vm14, %v7615_v14, %v7618_v39  ;;  %v4813_v40 = vand.u32 3, %v4812_v21  ;;  %vm13194_vm14 = vmmov %vm13182_vm2 }
 0x3f7   : > { %vm6056_vm4 = vcmp.lt.s32.totalorder %v6055_v0, 2  ;;  %vm6057_vm1 = vcmp.eq.s32.totalorder %v6055_v0, 0  ;;  %vm6060_vm8 = vcmp.eq.s32.totalorder %v6055_v0, 2  ;;  %v7620_v12 = vsel %vm6781_vm3, nan, %v7619_v51 }
 0x3f8   : > { %v6059_v47 = vsel %vm6057_vm1, %v13160_v10, %v6058_v60  ;;  %v6062_v59 = vsel %vm6060_vm8, %v6061_v7, %v13157_v52  ;;  %vm6160_vm13 = vcmp.lt.s32.totalorder %v6159_v46, 2  ;;  %v7624_v1 = vpack.c.bf16 %v7620_v12, %v7517_v45 }
 0x3f9   : > { %v6063_v31 = vsel %vm6056_vm4, %v6059_v47, %v6062_v59  ;;  %vm6161_vm12 = vcmp.eq.s32.totalorder %v6159_v46, 0  ;;  %vm6164_vm15 = vcmp.eq.s32.totalorder %v6159_v46, 2  ;;  %v4916_v10 = vadd.s32 3, %v11868_v24  ;;  %vm13195_vm4 = vmmov %vm13194_vm14 }
 0x3fa   : > { %v6064_v13 = vsel %vm6053_vm5, nan, %v6063_v31  ;;  %v6163_v61 = vsel %vm6161_vm12, %v11602_v20, %v6162_v55  ;;  %v6166_v60 = vsel %vm6164_vm15, %v6165_v44, %v11614_v28  ;;  %8287 = vmatmul.mubr.msk.bf16.gmra.mrb[12].mxu1 %vm13194_vm14, %v7624_v1  ;;  %v6470_v7 = vadd.s32 3, %v13179_v58 }
 0x3fb   : > { %v6167_v52 = vsel %vm6160_vm13, %v6163_v61, %v6166_v60  ;;  %v6574_v63 = vadd.s32 3, %v13180_v6  ;;  %vm4814_vm5 = vcmp.lt.s32.totalorder %v4813_v40, 2  ;;  %vm4815_vm2 = vcmp.eq.s32.totalorder %v4813_v40, 0 }
 0x3fc   : > { %v6168_v19 = vsel %vm6157_vm6, nan, %v6167_v52  ;;  %vm4818_vm0 = vcmp.eq.s32.totalorder %v4813_v40, 2  ;;  %v4817_v20 = vsel %vm4815_vm2, %v11898_v36, %v4816_v33  ;;  %v4917_v24 = vand.u32 3, %v4916_v10  ;;  %vm13199_vm2 = vmmov %vm13195_vm4 }
 0x3fd   : > { %v6793_v55 = vpack.c.bf16 %v6168_v19, %v6064_v13  ;;  %v4820_v28 = vsel %vm4818_vm0, %v4819_v5, %v11979_v42  ;;  %v6471_v58 = vand.u32 3, %v6470_v7  ;;  %v6575_v2 = vand.u32 3, %v6574_v63 }
 0x3fe   : > { %v4821_v44 = vsel %vm4814_vm5, %v4817_v20, %v4820_v28  ;;  %v6678_v6 = vadd.s32 3, %v13192_v41  ;;  %vm4918_vm6 = vcmp.lt.s32.totalorder %v4917_v24, 2  ;;  %vm4919_vm1 = vcmp.eq.s32.totalorder %v4917_v24, 0  ;;  %v8177_v28 = vld [vmem:[%s12662_s6] ss:$0 sm:$0xff] }
 0x3ff   : > { %8292 = vmatprep.mubr.msk.bf16.mxu1 %vm13195_vm4, %v6793_v55  ;;  %v4822_v3 = vsel %vm4811_vm10, nan, %v4821_v44  ;;  %vm4922_vm8 = vcmp.eq.s32.totalorder %v4917_v24, 2  ;;  %v4921_v33 = vsel %vm4919_vm1, %v11983_v56, %v4920_v50  ;;  %vm6472_vm13 = vcmp.lt.s32.totalorder %v6471_v58, 2 }
 0x400   : > { %v4924_v36 = vsel %vm4922_vm8, %v4923_v32, %v12084_v17  ;;  %vm6473_vm12 = vcmp.eq.s32.totalorder %v6471_v58, 0  ;;  %vm6476_vm15 = vcmp.eq.s32.totalorder %v6471_v58, 2  ;;  %vm6576_vm10 = vcmp.lt.s32.totalorder %v6575_v2, 2  ;;  %v13196_v17 = vld [vmem:[#allocation76_spill] sm:$0xff]  ;;  %v13197_v32 = vld [vmem:[#allocation91_spill] sm:$0xff]  ;;  %vm13202_vm8 = vmmov %vm13199_vm2 }
 0x401   : > { %v4925_v42 = vsel %vm4918_vm6, %v4921_v33, %v4924_v36  ;;  %v6475_v5 = vsel %vm6473_vm12, %v13176_v38, %v6474_v49  ;;  %v6478_v50 = vsel %vm6476_vm15, %v6477_v11, %v13175_v29  ;;  %vm6577_vm14 = vcmp.eq.s32.totalorder %v6575_v2, 0  ;;  %vm13203_vm15 = vmmov %vm13199_vm2 }
 0x402   : > { %v4926_v27 = vsel %vm4915_vm7, nan, %v4925_v42  ;;  %vm6580_vm5 = vcmp.eq.s32.totalorder %v6575_v2, 2  ;;  %v13198_v41 = vpack.c.bf16 %v13196_v17, %v13197_v32  ;;  %v6479_v34 = vsel %vm6472_vm13, %v6475_v5, %v6478_v50  ;;  %vm13200_vm7 = vmmov %vm13199_vm2 }
 0x403   : > { %v4930_v56 = vpack.c.bf16 %v4926_v27, %v4822_v3  ;;  %v6579_v49 = vsel %vm6577_vm14, %v13178_v30, %v6578_v62  ;;  %v6582_v9 = vsel %vm6580_vm5, %v6581_v8, %v13177_v37  ;;  %v6679_v38 = vand.u32 3, %v6678_v6 }
 0x404   : > { %8293 = vmatmul.mubr.msk.bf16.vlgmr.msra.gmra.mrb[8].mxu1 %vm13199_vm2, %v13198_v41  ;;  %v6583_v43 = vsel %vm6576_vm10, %v6579_v49, %v6582_v9  ;;  %v6782_v29 = vadd.s32 3, %v13193_v16  ;;  %v6480_v11 = vsel %vm6469_vm9, nan, %v6479_v34  ;;  %vm13201_vm0 = vweird.f32 %v13181_v23 }
 0x405   : > { %8277 = vmatmul.mubr.msk.bf16.gmra.mrb[12].mxu0 %vm13200_vm7, %v4930_v56  ;;  %v6584_v14 = vsel %vm13201_vm0, nan, %v6583_v43  ;;  %vm6681_vm4 = vcmp.eq.s32.totalorder %v6679_v38, 0  ;;  %vm6684_vm6 = vcmp.eq.s32.totalorder %v6679_v38, 2  ;;  %vm6680_vm1 = vcmp.lt.s32.totalorder %v6679_v38, 2 }
 0x406   : > { %v6795_v0 = vpack.c.bf16 %v6584_v14, %v6480_v11  ;;  %v6683_v37 = vsel %vm6681_vm4, %v13187_v4, %v6682_v22  ;;  %v6686_v62 = vsel %vm6684_vm6, %v6685_v35, %v12383_v54  ;;  %v6783_v30 = vand.u32 3, %v6782_v29 }
 0x407   : > { %v6687_v53 = vsel %vm6680_vm1, %v6683_v37, %v6686_v62 }
 0x408   : > { %8296 = vmatprep.mubr.msk.bf16.mxu1 %vm13202_vm8, %v6795_v0  ;;  %vm6785_vm9 = vcmp.eq.s32.totalorder %v6783_v30, 0  ;;  %vm6788_vm13 = vcmp.eq.s32.totalorder %v6783_v30, 2  ;;  %v6688_v8 = vsel %vm6677_vm11, nan, %v6687_v53  ;;  %vm6784_vm12 = vcmp.lt.s32.totalorder %v6783_v30, 2 }
 0x409   : > { %v6787_v23 = vsel %vm6785_vm9, %v13191_v48, %v6786_v25  ;;  %v6790_v22 = vsel %vm6788_vm13, %v6789_v15, %v13190_v57  ;;  %vm7810_vm11 = vcmask 261120  }
 0x40a   : > { %v6791_v4 = vsel %vm6784_vm12, %v6787_v23, %v6790_v22 }
 0x40b   : > { %v6792_v54 = vsel %vm6781_vm3, nan, %v6791_v4 }
 0x40c   : > { %v6796_v35 = vpack.c.bf16 %v6792_v54, %v6688_v8 }
 0x40e   : > { %8297 = vmatmul.mubr.msk.bf16.gmra.mrb[12].mxu1 %vm13203_vm15, %v6796_v35 }
 0x488   : > { %v8234_v16 = vpop.f32.mrb[0].mxu0 }
 0x489   : > { %v2150_v45 = vpop.f32.mrb[1].mxu0 }
 0x48a   : > { %v8235_v18 = vpop.f32.mrb[2].mxu0 }
 0x48b   : > { %v2153_v39 = vpop.f32.mrb[3].mxu0 }
 0x495   : > { %v8238_v46 = vpop.f32.mrb[4].mxu0 }
 0x496   : > { %v2166_v21 = vpop.f32.mrb[5].mxu0 }
 0x497   : > { %v8239_v51 = vpop.f32.mrb[6].mxu0 }
 0x498   : > { %v2169_v12 = vpop.f32.mrb[7].mxu0 }
 0x49a   : > { %v8254_v25 = vpop.f32.mrb[0].mxu1 }
 0x49b   : > { %v4024_v47 = vpop.f32.mrb[1].mxu1 }
 0x49c   : > { %v8255_v59 = vpop.f32.mrb[2].mxu1 }
 0x49d   : > { %v4027_v48 = vpop.f32.mrb[3].mxu1 }
 0x4a8   : > { %v8258_v57 = vpop.f32.mrb[4].mxu1 }
 0x4a9   : > { %v4040_v15 = vpop.f32.mrb[5].mxu1 }
 0x4aa   : > { %v8259_v1 = vpop.f32.mrb[6].mxu1 }
 0x4ab   : > { %v4043_v26 = vpop.f32.mrb[7].mxu1 }
 0x4c2   : > { %v8274_v31 = vpop.f32.mrb[8].mxu0 }
 0x4c3   : > { %v5915_v13 = vmax.f32 %v8254_v25, %v8274_v31  ;;  %v5882_v61 = vpop.f32.mrb[9].mxu0 }
 0x4c4   : > { %v5913_v60 = vmax.f32 %v4024_v47, %v5882_v61  ;;  %v8275_v40 = vpop.f32.mrb[10].mxu0 }
 0x4c5   : > { %v5916_v52 = vmax.f32 %v8255_v59, %v8275_v40  ;;  %v5885_v10 = vpop.f32.mrb[11].mxu0 }
 0x4c6   : > { %v5914_v7 = vmax.f32 %v4027_v48, %v5885_v10 }
 0x4d7   : > { %v8294_v63 = vpop.f32.mrb[8].mxu1 }
 0x4d8   : > { %v7781_v19 = vmax.f32 %v5915_v13, %v8294_v63  ;;  %v7748_v55 = vpop.f32.mrb[9].mxu1  ;;  %v8278_v20 = vpop.f32.mrb[12].mxu0 }
 0x4d9   : > { %v7779_v24 = vmax.f32 %v5913_v60, %v7748_v55  ;;  %v8295_v44 = vpop.f32.mrb[10].mxu1  ;;  %v5919_v58 = vmax.f32 %v8258_v57, %v8278_v20  ;;  %v5898_v2 = vpop.f32.mrb[13].mxu0 }
 0x4da   : > { %v7789_v6 = vadd.f32 %v8234_v16, %v7781_v19  ;;  %v7782_v3 = vmax.f32 %v5916_v52, %v8295_v44  ;;  %v7751_v33 = vpop.f32.mrb[11].mxu1  ;;  %v5917_v36 = vmax.f32 %v4040_v15, %v5898_v2  ;;  %v8279_v42 = vpop.f32.mrb[14].mxu0 }
 0x4db   : > { %v7787_v5 = vadd.f32 %v7779_v24, %v2150_v45  ;;  %v7780_v27 = vmax.f32 %v5914_v7, %v7751_v33  ;;  %v5920_v56 = vmax.f32 %v8259_v1, %v8279_v42  ;;  %v5901_v17 = vpop.f32.mrb[15].mxu0 }
 0x4dc   : > { %v7804_v50 = vadd.f32 %v8177_v28, %v7789_v6  ;;  %v7790_v32 = vadd.f32 %v8235_v18, %v7782_v3  ;;  %v5918_v34 = vmax.f32 %v4043_v26, %v5901_v17 }
 0x4dd   : > { %v7802_v41 = vadd.f32 %v8177_v28, %v7787_v5  ;;  %v7788_v49 = vadd.f32 %v7780_v27, %v2153_v39 }
 0x4de   : > { %7813 = vst.msk [vmem:[%s12635_s14 + $0x10] sm:$0xff] %vm7810_vm11, %v7804_v50  ;;  %v7805_v9 = vadd.f32 %v8177_v28, %v7790_v32 }
 0x4df   : > { %7811 = vst.msk [vmem:[%s12635_s14] sm:$0xff] %vm7810_vm11, %v7802_v41  ;;  %v7803_v43 = vadd.f32 %v8177_v28, %v7788_v49 }
 0x4e0   : > { %7814 = vst.msk [vmem:[%s12635_s14 + $0x18] sm:$0xff] %vm7810_vm11, %v7805_v9 }
 0x4e1   : > { %7812 = vst.msk [vmem:[%s12635_s14 + $0x8] sm:$0xff] %vm7810_vm11, %v7803_v43  ;;  %v8298_v38 = vpop.f32.mrb[12].mxu1 }
 0x4e2   : > { %v7785_v29 = vmax.f32 %v5919_v58, %v8298_v38  ;;  %v7764_v11 = vpop.f32.mrb[13].mxu1 }
 0x4e3   : > { %v7783_v14 = vmax.f32 %v5917_v36, %v7764_v11  ;;  %v8299_v0 = vpop.f32.mrb[14].mxu1 }
 0x4e4   : > { %v7793_v37 = vadd.f32 %v8238_v46, %v7785_v29  ;;  %v7786_v62 = vmax.f32 %v5920_v56, %v8299_v0  ;;  %v7767_v30 = vpop.f32.mrb[15].mxu1 }
 0x4e5   : > { %v7791_v53 = vadd.f32 %v7783_v14, %v2166_v21  ;;  %v7784_v8 = vmax.f32 %v5918_v34, %v7767_v30 }
 0x4e6   : > { %v7808_v23 = vadd.f32 %v8177_v28, %v7793_v37  ;;  %v7794_v22 = vadd.f32 %v8239_v51, %v7786_v62 }
 0x4e7   : > { %v7806_v4 = vadd.f32 %v8177_v28, %v7791_v53  ;;  %v7792_v54 = vadd.f32 %v7784_v8, %v2169_v12 }
 0x4e8   : > { %7817 = vst.msk [vmem:[%s12635_s14 + $0x30] sm:$0xff] %vm7810_vm11, %v7808_v23  ;;  %v7809_v35 = vadd.f32 %v8177_v28, %v7794_v22 }
 0x4e9   : > { %7815 = vst.msk [vmem:[%s12635_s14 + $0x20] sm:$0xff] %vm7810_vm11, %v7806_v4  ;;  %v7807_v16 = vadd.f32 %v8177_v28, %v7792_v54 }
 0x4ea   : > { %7818 = vst.msk [vmem:[%s12635_s14 + $0x38] sm:$0xff] %vm7810_vm11, %v7809_v35 }
 0x4eb   : > { %7816 = vst.msk [vmem:[%s12635_s14 + $0x28] sm:$0xff] %vm7810_vm11, %v7807_v16 }
 0x4ec PF: > { %s17_s24 = sadd.s32 1, %s8634_s24  }
 0x4ed   : > { %p14_p4 = scmp.ge.s32.totalorder %s17_s24, 10  }
 0x4ef   :  { %16 = sbr.rel (!%p14_p4) target bundleno = 1 (0x1), region = 78 }

</bundles_post_ra>
